<compile_context>
chip_gen: v7x
topology: tpu7x:2x2x1
jax: 0.10.0
libtpu: 0.0.40
codegen_flags: <defaults>
</compile_context>

<pallas_src>
import functools

import jax
import jax.numpy as jnp
from jax.experimental import pallas as pl
from jax.experimental.pallas import tpu as pltpu

EPS = 1e-5  # torch.nn.LayerNorm default


def _gelu(x):
    # exact (erf) GELU — matches torch.nn.GELU() default.
    # TODO(synk): switch to tanh-approx GELU (EUP slot) only if a bundle dump
    #             shows the VALU slot saturating before the MXU.
    return 0.5 * x * (1.0 + jax.lax.erf(x * (1.0 / jnp.sqrt(2.0))))


def _layernorm(x, gamma, beta, inv_h, lane_mask):
    """LayerNorm over the real hidden lanes of a zero-padded (bm, Hp) tile."""
    # padded lanes of x are exactly zero, so the plain lane-sum is already the
    # sum over the real H lanes; only the centered term needs masking.
    mean = jnp.sum(x, axis=-1, keepdims=True) * inv_h
    d = jnp.where(lane_mask, x - mean, 0.0)
    var = jnp.sum(d * d, axis=-1, keepdims=True) * inv_h
    inv = jax.lax.rsqrt(var + EPS)  # EUP slot (cheap)
    # gamma/beta are zero on padded lanes -> padded output stays exactly zero.
    return d * inv * gamma + beta


def _ffn_residual(h, w1, b1, w2, b2, gamma, beta, inv_h, lane_mask):
    # LayerNorm -> Linear -> (Dropout=id) -> GELU -> Linear -> (Dropout=id)
    ln = _layernorm(h, gamma, beta, inv_h, lane_mask)
    f = jnp.dot(ln.astype(w1.dtype), w1, preferred_element_type=jnp.float32) + b1
    f = _gelu(f)
    f = jnp.dot(f.astype(w2.dtype), w2, preferred_element_type=jnp.float32) + b2
    return f


def resnet_kernel(num_blocks, hidden, stream,
                  x_ref, w_in_ref, vin_ref, w1_ref, w2_ref, vblk_ref,
                  w_out_ref, b_out_ref, o_ref, *scratch):
    hp = w_in_ref.shape[1]
    w_dtype = w_in_ref.dtype
    inv_h = jnp.float32(1.0 / hidden)
    lane_mask = jax.lax.broadcasted_iota(jnp.int32, (1, hp), 1) < hidden

    vin = vin_ref[...]                 # (8, Hp) f32: rows [b_in, gamma_out, beta_out]
    b_in, gamma_out, beta_out = vin[0:1], vin[1:2], vin[2:3]

    # input_linear -> dropout (identity in eval) -> GELU
    x = x_ref[...]
    h = jnp.dot(x.astype(w_dtype), w_in_ref[...],
                preferred_element_type=jnp.float32) + b_in
    h = _gelu(h)

    def residual_step(hc, k, w1k, w2k):
        vb = vblk_ref[k]               # (8, Hp) f32: rows [b1, b2, gamma, beta]
        return hc + _ffn_residual(hc, w1k, vb[0:1], w2k, vb[1:2],
                                  vb[2:3], vb[3:4], inv_h, lane_mask)

    if not stream:
        # w1/w2 fully resident in VMEM.
        if num_blocks <= 4:
            for k in range(num_blocks):  # full unroll: LLO scheduling visibility
                h = residual_step(h, k, w1_ref[k], w2_ref[k])
        else:
            def body(k, hc):
                return residual_step(hc, k, w1_ref[k], w2_ref[k])
            h = jax.lax.fori_loop(0, num_blocks, body, h)
    else:
        # w1/w2 stay in HBM; per-block (Hp, Hp) pair is double-buffered and the
        # next block's weights are prefetched behind this block's two matmuls.
        w1_buf, w2_buf, sem = scratch

        def fetch(k, slot):
            pltpu.make_async_copy(w1_ref.at[k], w1_buf.at[slot], sem.at[0, slot]).start()
            pltpu.make_async_copy(w2_ref.at[k], w2_buf.at[slot], sem.at[1, slot]).start()

        def wait(slot):
            pltpu.make_async_copy(w1_ref.at[0], w1_buf.at[slot], sem.at[0, slot]).wait()
            pltpu.make_async_copy(w2_ref.at[0], w2_buf.at[slot], sem.at[1, slot]).wait()

        fetch(0, 0)

        def body(k, hc):
            slot = jax.lax.rem(k, 2)
            wait(slot)

            @pl.when(k + 1 < num_blocks)
            def _():
                fetch(k + 1, 1 - slot)

            return residual_step(hc, k, w1_buf[slot], w2_buf[slot])

        h = jax.lax.fori_loop(0, num_blocks, body, h)

    # output LayerNorm -> output linear (O is tiny, plain bm x O store is fine)
    ln = _layernorm(h, gamma_out, beta_out, inv_h, lane_mask)
    out = jnp.dot(ln.astype(w_dtype), w_out_ref[...],
                  preferred_element_type=jnp.float32) + b_out_ref[...]
    o_ref[...] = out.astype(o_ref.dtype)


def _round_up(x, m):
    return (x + m - 1) // m * m


def _pad_last(a, target):
    pad = target - a.shape[-1]
    if pad > 0:
        a = jnp.pad(a, [(0, 0)] * (a.ndim - 1) + [(0, pad)])
    return a


def _vmem_capacity_bytes():
    try:
        info = pltpu.get_tpu_info()
        cap = getattr(info, "vmem_capacity_bytes", None)
        if cap:
            return int(cap)
    except Exception:
        pass
    return 128 * 1024 * 1024


def resnet_forward(x, params, *, block_rows=256, weights_dtype=jnp.bfloat16,
                   stream_weights=None):
    """x: [N, F] float32.  Returns [N] (output_dim == 1, squeezed)."""
    N, F = x.shape
    H = params["w_in"].shape[1]
    B = params["w1"].shape[0]
    O = params["w_out"].shape[1]
    assert O == 1, "ResNet.forward squeezes dim 1 => output_dim must be 1"

    # Hidden dim padded to an MXU/lane-native multiple of 128 (masked LN in-kernel).
    Hp = _round_up(H, 128)

    # Node tile: big M for the MXU, but keep >= 2 tiles for v7x's 2 TensorCores.
    N8 = _round_up(N, 8)
    bm = min(block_rows, N8)
    if bm == N8 and N8 > 128:
        bm = 128
    Np = _round_up(N, bm)
    if Np != N:
        x = jnp.pad(x, ((0, Np - N), (0, 0)))
    num_tiles = Np // bm

    # --- parameter prep: zero-pad H->Hp, bf16 matmul weights, packed vectors ---
    w_dtype = jnp.dtype(weights_dtype)
    w_in = _pad_last(params["w_in"], Hp).astype(w_dtype)                          # (F, Hp)
    w1 = jnp.pad(params["w1"], ((0, 0), (0, Hp - H), (0, Hp - H))).astype(w_dtype)  # (B,Hp,Hp)
    w2 = jnp.pad(params["w2"], ((0, 0), (0, Hp - H), (0, Hp - H))).astype(w_dtype)  # (B,Hp,Hp)
    w_out = jnp.pad(params["w_out"], ((0, Hp - H), (0, 0))).astype(w_dtype)       # (Hp, O)
    b_out = params["b_out"].astype(jnp.float32)                                   # (1, O)

    vin = jnp.concatenate([_pad_last(params["b_in"], Hp),
                           _pad_last(params["gamma_out"], Hp),
                           _pad_last(params["beta_out"], Hp)], axis=0)
    vin = jnp.pad(vin, ((0, 8 - vin.shape[0]), (0, 0))).astype(jnp.float32)       # (8, Hp)

    vblk = jnp.concatenate([_pad_last(params["b1"], Hp),
                            _pad_last(params["b2"], Hp),
                            _pad_last(params["gamma"], Hp),
                            _pad_last(params["beta"], Hp)], axis=1)               # (B, 4, Hp)
    vblk = jnp.pad(vblk, ((0, 0), (0, 8 - vblk.shape[1]), (0, 0))).astype(jnp.float32)

    # --- VMEM budgeting: derived limit + streaming fallback for large B*Hp^2 ---
    w_item = w_dtype.itemsize
    small_bytes = (F * Hp + Hp * O) * w_item + (8 * Hp + B * 8 * Hp + 8 * 128) * 4
    block_w_bytes = 2 * B * Hp * Hp * w_item
    act_bytes = 2 * bm * F * 4 + 2 * bm * O * 4 + 8 * bm * Hp * 4
    cap = _vmem_capacity_bytes()
    hard_cap = min(cap - (8 << 20), 100 << 20)   # headroom; ~56 MiB on v7x, 100 MiB v5e/v6e
    if stream_weights is None:
        stream_weights = (small_bytes + block_w_bytes + act_bytes) > hard_cap
    if stream_weights:
        footprint = small_bytes + 2 * 2 * Hp * Hp * w_item + act_bytes
    else:
        footprint = small_bytes + block_w_bytes + act_bytes
    vmem_limit = int(min(hard_cap, max(32 << 20, footprint + (8 << 20))))

    def resident(shape):
        # fully resident weight/bias: constant index_map + single buffer
        nd = len(shape)
        return pl.BlockSpec(shape, lambda *i: (0,) * nd,
                            pipeline_mode=pl.Buffered(1))

    if stream_weights:
        w1_spec = pl.BlockSpec(memory_space=pl.ANY)
        w2_spec = pl.BlockSpec(memory_space=pl.ANY)
        scratch_shapes = [pltpu.VMEM((2, Hp, Hp), w_dtype),
                          pltpu.VMEM((2, Hp, Hp), w_dtype),
                          pltpu.SemaphoreType.DMA((2, 2))]
    else:
        w1_spec = resident((B, Hp, Hp))
        w2_spec = resident((B, Hp, Hp))
        scratch_shapes = []

    kernel = functools.partial(resnet_kernel, B, H, bool(stream_weights))

    # Advisory cost estimate for XLA scheduling around the custom call.
    flops = 2 * Np * (F * Hp + 2 * B * Hp * Hp + Hp * O)
    transcendentals = Np * Hp * (1 + B)
    weight_bytes = small_bytes + block_w_bytes
    bytes_accessed = (Np * F * 4 + Np * O * 4
                      + weight_bytes * (num_tiles if stream_weights else 1))

    out = pl.pallas_call(
        kernel,
        out_shape=jax.ShapeDtypeStruct((Np, O), jnp.float32),
        grid_spec=pltpu.PrefetchScalarGridSpec(
            num_scalar_prefetch=0,
            grid=(num_tiles,),
            in_specs=[
                pl.BlockSpec((bm, F), lambda i: (i, 0)),   # x node tile
                resident((F, Hp)),                         # w_in
                resident((8, Hp)),                         # packed b_in/gamma_out/beta_out
                w1_spec,                                   # w1 (resident VMEM or HBM)
                w2_spec,                                   # w2 (resident VMEM or HBM)
                resident((B, 8, Hp)),                      # packed b1/b2/gamma/beta
                resident((Hp, O)),                         # w_out
                resident((1, O)),                          # b_out
            ],
            out_specs=pl.BlockSpec((bm, O), lambda i: (i, 0)),
            scratch_shapes=scratch_shapes,
        ),
        compiler_params=pltpu.CompilerParams(
            dimension_semantics=("parallel",),
            vmem_limit_bytes=vmem_limit,
        ),
        cost_estimate=pl.CostEstimate(
            flops=int(flops),
            transcendentals=int(transcendentals),
            bytes_accessed=int(bytes_accessed),
        ),
    )(x, w_in, vin, w1, w2, vblk, w_out, b_out)

    # (Np, 1) -> drop padding -> [N]  (== .squeeze(1))
    return out[:N, 0]


def resnet_reference(x, params):
    """Pure-JAX f32 reference (same math, original layouts) for correctness."""
    def ln_ref(v, gamma, beta):
        mean = jnp.mean(v, axis=-1, keepdims=True)
        var = jnp.mean((v - mean) ** 2, axis=-1, keepdims=True)
        return (v - mean) * jax.lax.rsqrt(var + EPS) * gamma + beta

    h = x @ params["w_in"] + params["b_in"]
    h = _gelu(h)
    B = params["w1"].shape[0]
    for k in range(B):
        ln = ln_ref(h, params["gamma"][k], params["beta"][k])
        f = _gelu(ln @ params["w1"][k] + params["b1"][k])
        f = f @ params["w2"][k] + params["b2"][k]
        h = h + f
    ln = ln_ref(h, params["gamma_out"], params["beta_out"])
    out = ln @ params["w_out"] + params["b_out"]
    return out[:, 0]


def init_params(key, *, features_dim, hidden_dim, output_dim, num_blocks):
    ks = jax.random.split(key, 8)
    s = 0.1
    params = {
        "w_in": jax.random.normal(ks[0], (features_dim, hidden_dim), jnp.float32) * s,
        "b_in": jax.random.normal(ks[1], (1, hidden_dim), jnp.float32) * s,
        "w1": jax.random.normal(ks[2], (num_blocks, hidden_dim, hidden_dim), jnp.float32) * s,
        "b1": jax.random.normal(ks[3], (num_blocks, 1, hidden_dim), jnp.float32) * s,
        "w2": jax.random.normal(ks[4], (num_blocks, hidden_dim, hidden_dim), jnp.float32) * s,
        "b2": jax.random.normal(ks[5], (num_blocks, 1, hidden_dim), jnp.float32) * s,
        "gamma": jnp.ones((num_blocks, 1, hidden_dim), jnp.float32),
        "beta": jnp.zeros((num_blocks, 1, hidden_dim), jnp.float32),
        "gamma_out": jnp.ones((1, hidden_dim), jnp.float32),
        "beta_out": jnp.zeros((1, hidden_dim), jnp.float32),
        "w_out": jax.random.normal(ks[6], (hidden_dim, output_dim), jnp.float32) * s,
        "b_out": jax.random.normal(ks[7], (1, output_dim), jnp.float32) * s,
    }
    return params


if __name__ == "__main__":
    num_nodes = 512            # 2 node tiles of 256 rows -> both TCs busy on v7x
    features_dim = 8
    hidden_dim = 32
    output_dim = 1
    num_residual_blocks = 2

    key = jax.random.PRNGKey(0)
    k_x, k_p = jax.random.split(key)
    x = jax.random.normal(k_x, (num_nodes, features_dim), jnp.float32)
    params = init_params(k_p, features_dim=features_dim, hidden_dim=hidden_dim,
                         output_dim=output_dim, num_blocks=num_residual_blocks)

    y_ref = resnet_reference(x, params)

    # 1) f32 datapath, resident weights: exact-math check (padding + masked LN).
    y_f32 = jax.block_until_ready(
        resnet_forward(x, params, weights_dtype=jnp.float32))
    assert y_f32.shape == (num_nodes,)
    assert jnp.allclose(y_f32, y_ref, rtol=1e-4, atol=1e-4)

    # 2) bf16 MXU datapath (default), resident weights: perf config.
    y_bf16 = jax.block_until_ready(resnet_forward(x, params))
    assert y_bf16.shape == (num_nodes,)
    assert jnp.allclose(y_bf16, y_ref, rtol=3e-2, atol=3e-2)

    # 3) bf16 + per-block weight streaming from HBM (v7x large-H fallback).
    y_stream = jax.block_until_ready(
        resnet_forward(x, params, stream_weights=True))
    assert jnp.allclose(y_stream, y_bf16, rtol=1e-3, atol=1e-3)

    print("KERNEL_OK")
</pallas_src>

<mosaic_0001>
module attributes {stable_mosaic.version = 11 : i64} {
  func.func @resnet_kernel(%arg0: i32, %arg1: memref<256x8xf32, #tpu.memory_space<vmem>>, %arg2: memref<8x128xf32, #tpu.memory_space<vmem>>, %arg3: memref<8x128xf32, #tpu.memory_space<vmem>>, %arg4: memref<2x128x128xf32, #tpu.memory_space<vmem>>, %arg5: memref<2x128x128xf32, #tpu.memory_space<vmem>>, %arg6: memref<2x8x128xf32, #tpu.memory_space<vmem>>, %arg7: memref<128x1xf32, #tpu.memory_space<vmem>>, %arg8: memref<1x1xf32, #tpu.memory_space<vmem>>, %arg9: memref<256x1xf32, #tpu.memory_space<vmem>>) attributes {dimension_semantics = [#tpu.dimension_semantics<parallel>], iteration_bounds = array<i64: 2>, scalar_prefetch = 0 : i64, scratch_operands = 0 : i64, tpu.core_type = #tpu.core_type<tc>, window_params = [{transform_indices = @transform_0, window_bounds = array<i64: 256, 8>}, {pipeline_mode = #tpu.pipeline_mode<synchronous>, transform_indices = @transform_1, window_bounds = array<i64: 8, 128>}, {pipeline_mode = #tpu.pipeline_mode<synchronous>, transform_indices = @transform_2, window_bounds = array<i64: 8, 128>}, {pipeline_mode = #tpu.pipeline_mode<synchronous>, transform_indices = @transform_3, window_bounds = array<i64: 2, 128, 128>}, {pipeline_mode = #tpu.pipeline_mode<synchronous>, transform_indices = @transform_4, window_bounds = array<i64: 2, 128, 128>}, {pipeline_mode = #tpu.pipeline_mode<synchronous>, transform_indices = @transform_5, window_bounds = array<i64: 2, 8, 128>}, {pipeline_mode = #tpu.pipeline_mode<synchronous>, transform_indices = @transform_6, window_bounds = array<i64: 128, 1>}, {pipeline_mode = #tpu.pipeline_mode<synchronous>, transform_indices = @transform_7, window_bounds = array<i64: 1, 1>}, {transform_indices = @transform_8, window_bounds = array<i64: 256, 1>}]} {
    %0 = tpu.iota {dimensions = array<i32: 1>} : vector<1x128xi32>
    %c32_i32 = arith.constant 32 : i32
    %1 = vector.broadcast %c32_i32 : i32 to vector<1x128xi32>
    %2 = arith.cmpi slt, %0, %1 : vector<1x128xi32>
    %c0 = arith.constant 0 : index
    %c0_0 = arith.constant 0 : index
    %3 = vector.load %arg3[%c0, %c0_0] : memref<8x128xf32, #tpu.memory_space<vmem>>, vector<8x128xf32>
    %4 = vector.extract_strided_slice %3 {offsets = [0, 0], sizes = [1, 128], strides = [1, 1]} : vector<8x128xf32> to vector<1x128xf32>
    %5 = vector.extract_strided_slice %3 {offsets = [1, 0], sizes = [1, 128], strides = [1, 1]} : vector<8x128xf32> to vector<1x128xf32>
    %6 = vector.extract_strided_slice %3 {offsets = [2, 0], sizes = [1, 128], strides = [1, 1]} : vector<8x128xf32> to vector<1x128xf32>
    %c0_1 = arith.constant 0 : index
    %c0_2 = arith.constant 0 : index
    %7 = vector.load %arg1[%c0_1, %c0_2] : memref<256x8xf32, #tpu.memory_space<vmem>>, vector<256x8xf32>
    %c0_3 = arith.constant 0 : index
    %c0_4 = arith.constant 0 : index
    %8 = vector.load %arg2[%c0_3, %c0_4] : memref<8x128xf32, #tpu.memory_space<vmem>>, vector<8x128xf32>
    %cst = arith.constant dense<0.000000e+00> : vector<256x128xf32>
    %9 = tpu.matmul %7, %8, %cst {dimension_numbers = #tpu.dot_dimension_numbers<[1], [0], [0], [1], [0, 0, 1, 1], [], []>} : vector<256x8xf32>, vector<8x128xf32>, vector<256x128xf32> -> vector<256x128xf32>
    %10 = vector.broadcast %4 : vector<1x128xf32> to vector<256x128xf32>
    %11 = arith.addf %9, %10 : vector<256x128xf32>
    %cst_5 = arith.constant 5.000000e-01 : f32
    %12 = vector.broadcast %cst_5 : f32 to vector<256x128xf32>
    %13 = arith.mulf %12, %11 : vector<256x128xf32>
    %cst_6 = arith.constant 2.000000e+00 : f32
    %14 = math.sqrt %cst_6 : f32
    %cst_7 = arith.constant 1.000000e+00 : f32
    %15 = arith.divf %cst_7, %14 : f32
    %16 = vector.broadcast %15 : f32 to vector<256x128xf32>
    %17 = arith.mulf %11, %16 : vector<256x128xf32>
    %18 = math.erf %17 : vector<256x128xf32>
    %cst_8 = arith.constant 1.000000e+00 : f32
    %19 = vector.broadcast %cst_8 : f32 to vector<256x128xf32>
    %20 = arith.addf %19, %18 : vector<256x128xf32>
    %21 = arith.mulf %13, %20 : vector<256x128xf32>
    %c0_9 = arith.constant 0 : index
    %c0_10 = arith.constant 0 : index
    %c0_11 = arith.constant 0 : index
    %22 = vector.load %arg4[%c0_9, %c0_10, %c0_11] : memref<2x128x128xf32, #tpu.memory_space<vmem>>, vector<1x128x128xf32>
    %23 = vector.shape_cast %22 : vector<1x128x128xf32> to vector<128x128xf32>
    %c0_12 = arith.constant 0 : index
    %c0_13 = arith.constant 0 : index
    %c0_14 = arith.constant 0 : index
    %24 = vector.load %arg5[%c0_12, %c0_13, %c0_14] : memref<2x128x128xf32, #tpu.memory_space<vmem>>, vector<1x128x128xf32>
    %25 = vector.shape_cast %24 : vector<1x128x128xf32> to vector<128x128xf32>
    %c0_15 = arith.constant 0 : index
    %c0_16 = arith.constant 0 : index
    %c0_17 = arith.constant 0 : index
    %26 = vector.load %arg6[%c0_15, %c0_16, %c0_17] : memref<2x8x128xf32, #tpu.memory_space<vmem>>, vector<1x8x128xf32>
    %27 = vector.shape_cast %26 : vector<1x8x128xf32> to vector<8x128xf32>
    %28 = vector.extract_strided_slice %27 {offsets = [0, 0], sizes = [1, 128], strides = [1, 1]} : vector<8x128xf32> to vector<1x128xf32>
    %29 = vector.extract_strided_slice %27 {offsets = [1, 0], sizes = [1, 128], strides = [1, 1]} : vector<8x128xf32> to vector<1x128xf32>
    %30 = vector.extract_strided_slice %27 {offsets = [2, 0], sizes = [1, 128], strides = [1, 1]} : vector<8x128xf32> to vector<1x128xf32>
    %31 = vector.extract_strided_slice %27 {offsets = [3, 0], sizes = [1, 128], strides = [1, 1]} : vector<8x128xf32> to vector<1x128xf32>
    %cst_18 = arith.constant dense<0.000000e+00> : vector<256xf32>
    %32 = vector.multi_reduction <add>, %21, %cst_18 [1] : vector<256x128xf32> to vector<256xf32>
    %33 = vector.shape_cast %32 : vector<256xf32> to vector<256x1xf32>
    %cst_19 = arith.constant 3.125000e-02 : f32
    %34 = vector.broadcast %cst_19 : f32 to vector<256x1xf32>
    %35 = arith.mulf %33, %34 : vector<256x1xf32>
    %36 = vector.broadcast %35 : vector<256x1xf32> to vector<256x128xf32>
    %37 = arith.subf %21, %36 : vector<256x128xf32>
    %cst_20 = arith.constant 0.000000e+00 : f32
    %38 = vector.shape_cast %2 : vector<1x128xi1> to vector<1x128xi1>
    %39 = vector.broadcast %38 : vector<1x128xi1> to vector<256x128xi1>
    %40 = vector.broadcast %cst_20 : f32 to vector<256x128xf32>
    %41 = arith.select %39, %37, %40 : vector<256x128xi1>, vector<256x128xf32>
    %42 = arith.mulf %41, %41 : vector<256x128xf32>
    %cst_21 = arith.constant dense<0.000000e+00> : vector<256xf32>
    %43 = vector.multi_reduction <add>, %42, %cst_21 [1] : vector<256x128xf32> to vector<256xf32>
    %44 = vector.shape_cast %43 : vector<256xf32> to vector<256x1xf32>
    %cst_22 = arith.constant 3.125000e-02 : f32
    %45 = vector.broadcast %cst_22 : f32 to vector<256x1xf32>
    %46 = arith.mulf %44, %45 : vector<256x1xf32>
    %cst_23 = arith.constant 9.99999974E-6 : f32
    %47 = vector.broadcast %cst_23 : f32 to vector<256x1xf32>
    %48 = arith.addf %46, %47 : vector<256x1xf32>
    %49 = math.rsqrt %48 : vector<256x1xf32>
    %50 = vector.broadcast %49 : vector<256x1xf32> to vector<256x128xf32>
    %51 = arith.mulf %41, %50 : vector<256x128xf32>
    %52 = vector.broadcast %30 : vector<1x128xf32> to vector<256x128xf32>
    %53 = arith.mulf %51, %52 : vector<256x128xf32>
    %54 = vector.broadcast %31 : vector<1x128xf32> to vector<256x128xf32>
    %55 = arith.addf %53, %54 : vector<256x128xf32>
    %cst_24 = arith.constant dense<0.000000e+00> : vector<256x128xf32>
    %56 = tpu.matmul %55, %23, %cst_24 {dimension_numbers = #tpu.dot_dimension_numbers<[1], [0], [0], [1], [0, 0, 1, 1], [], []>} : vector<256x128xf32>, vector<128x128xf32>, vector<256x128xf32> -> vector<256x128xf32>
    %57 = vector.broadcast %28 : vector<1x128xf32> to vector<256x128xf32>
    %58 = arith.addf %56, %57 : vector<256x128xf32>
    %cst_25 = arith.constant 5.000000e-01 : f32
    %59 = vector.broadcast %cst_25 : f32 to vector<256x128xf32>
    %60 = arith.mulf %59, %58 : vector<256x128xf32>
    %cst_26 = arith.constant 2.000000e+00 : f32
    %61 = math.sqrt %cst_26 : f32
    %cst_27 = arith.constant 1.000000e+00 : f32
    %62 = arith.divf %cst_27, %61 : f32
    %63 = vector.broadcast %62 : f32 to vector<256x128xf32>
    %64 = arith.mulf %58, %63 : vector<256x128xf32>
    %65 = math.erf %64 : vector<256x128xf32>
    %cst_28 = arith.constant 1.000000e+00 : f32
    %66 = vector.broadcast %cst_28 : f32 to vector<256x128xf32>
    %67 = arith.addf %66, %65 : vector<256x128xf32>
    %68 = arith.mulf %60, %67 : vector<256x128xf32>
    %cst_29 = arith.constant dense<0.000000e+00> : vector<256x128xf32>
    %69 = tpu.matmul %68, %25, %cst_29 {dimension_numbers = #tpu.dot_dimension_numbers<[1], [0], [0], [1], [0, 0, 1, 1], [], []>} : vector<256x128xf32>, vector<128x128xf32>, vector<256x128xf32> -> vector<256x128xf32>
    %70 = vector.broadcast %29 : vector<1x128xf32> to vector<256x128xf32>
    %71 = arith.addf %69, %70 : vector<256x128xf32>
    %72 = arith.addf %21, %71 : vector<256x128xf32>
    %c1 = arith.constant 1 : index
    %c0_30 = arith.constant 0 : index
    %c0_31 = arith.constant 0 : index
    %73 = vector.load %arg4[%c1, %c0_30, %c0_31] : memref<2x128x128xf32, #tpu.memory_space<vmem>>, vector<1x128x128xf32>
    %74 = vector.shape_cast %73 : vector<1x128x128xf32> to vector<128x128xf32>
    %c1_32 = arith.constant 1 : index
    %c0_33 = arith.constant 0 : index
    %c0_34 = arith.constant 0 : index
    %75 = vector.load %arg5[%c1_32, %c0_33, %c0_34] : memref<2x128x128xf32, #tpu.memory_space<vmem>>, vector<1x128x128xf32>
    %76 = vector.shape_cast %75 : vector<1x128x128xf32> to vector<128x128xf32>
    %c1_35 = arith.constant 1 : index
    %c0_36 = arith.constant 0 : index
    %c0_37 = arith.constant 0 : index
    %77 = vector.load %arg6[%c1_35, %c0_36, %c0_37] : memref<2x8x128xf32, #tpu.memory_space<vmem>>, vector<1x8x128xf32>
    %78 = vector.shape_cast %77 : vector<1x8x128xf32> to vector<8x128xf32>
    %79 = vector.extract_strided_slice %78 {offsets = [0, 0], sizes = [1, 128], strides = [1, 1]} : vector<8x128xf32> to vector<1x128xf32>
    %80 = vector.extract_strided_slice %78 {offsets = [1, 0], sizes = [1, 128], strides = [1, 1]} : vector<8x128xf32> to vector<1x128xf32>
    %81 = vector.extract_strided_slice %78 {offsets = [2, 0], sizes = [1, 128], strides = [1, 1]} : vector<8x128xf32> to vector<1x128xf32>
    %82 = vector.extract_strided_slice %78 {offsets = [3, 0], sizes = [1, 128], strides = [1, 1]} : vector<8x128xf32> to vector<1x128xf32>
    %cst_38 = arith.constant dense<0.000000e+00> : vector<256xf32>
    %83 = vector.multi_reduction <add>, %72, %cst_38 [1] : vector<256x128xf32> to vector<256xf32>
    %84 = vector.shape_cast %83 : vector<256xf32> to vector<256x1xf32>
    %cst_39 = arith.constant 3.125000e-02 : f32
    %85 = vector.broadcast %cst_39 : f32 to vector<256x1xf32>
    %86 = arith.mulf %84, %85 : vector<256x1xf32>
    %87 = vector.broadcast %86 : vector<256x1xf32> to vector<256x128xf32>
    %88 = arith.subf %72, %87 : vector<256x128xf32>
    %cst_40 = arith.constant 0.000000e+00 : f32
    %89 = vector.shape_cast %2 : vector<1x128xi1> to vector<1x128xi1>
    %90 = vector.broadcast %89 : vector<1x128xi1> to vector<256x128xi1>
    %91 = vector.broadcast %cst_40 : f32 to vector<256x128xf32>
    %92 = arith.select %90, %88, %91 : vector<256x128xi1>, vector<256x128xf32>
    %93 = arith.mulf %92, %92 : vector<256x128xf32>
    %cst_41 = arith.constant dense<0.000000e+00> : vector<256xf32>
    %94 = vector.multi_reduction <add>, %93, %cst_41 [1] : vector<256x128xf32> to vector<256xf32>
    %95 = vector.shape_cast %94 : vector<256xf32> to vector<256x1xf32>
    %cst_42 = arith.constant 3.125000e-02 : f32
    %96 = vector.broadcast %cst_42 : f32 to vector<256x1xf32>
    %97 = arith.mulf %95, %96 : vector<256x1xf32>
    %cst_43 = arith.constant 9.99999974E-6 : f32
    %98 = vector.broadcast %cst_43 : f32 to vector<256x1xf32>
    %99 = arith.addf %97, %98 : vector<256x1xf32>
    %100 = math.rsqrt %99 : vector<256x1xf32>
    %101 = vector.broadcast %100 : vector<256x1xf32> to vector<256x128xf32>
    %102 = arith.mulf %92, %101 : vector<256x128xf32>
    %103 = vector.broadcast %81 : vector<1x128xf32> to vector<256x128xf32>
    %104 = arith.mulf %102, %103 : vector<256x128xf32>
    %105 = vector.broadcast %82 : vector<1x128xf32> to vector<256x128xf32>
    %106 = arith.addf %104, %105 : vector<256x128xf32>
    %cst_44 = arith.constant dense<0.000000e+00> : vector<256x128xf32>
    %107 = tpu.matmul %106, %74, %cst_44 {dimension_numbers = #tpu.dot_dimension_numbers<[1], [0], [0], [1], [0, 0, 1, 1], [], []>} : vector<256x128xf32>, vector<128x128xf32>, vector<256x128xf32> -> vector<256x128xf32>
    %108 = vector.broadcast %79 : vector<1x128xf32> to vector<256x128xf32>
    %109 = arith.addf %107, %108 : vector<256x128xf32>
    %cst_45 = arith.constant 5.000000e-01 : f32
    %110 = vector.broadcast %cst_45 : f32 to vector<256x128xf32>
    %111 = arith.mulf %110, %109 : vector<256x128xf32>
    %cst_46 = arith.constant 2.000000e+00 : f32
    %112 = math.sqrt %cst_46 : f32
    %cst_47 = arith.constant 1.000000e+00 : f32
    %113 = arith.divf %cst_47, %112 : f32
    %114 = vector.broadcast %113 : f32 to vector<256x128xf32>
    %115 = arith.mulf %109, %114 : vector<256x128xf32>
    %116 = math.erf %115 : vector<256x128xf32>
    %cst_48 = arith.constant 1.000000e+00 : f32
    %117 = vector.broadcast %cst_48 : f32 to vector<256x128xf32>
    %118 = arith.addf %117, %116 : vector<256x128xf32>
    %119 = arith.mulf %111, %118 : vector<256x128xf32>
    %cst_49 = arith.constant dense<0.000000e+00> : vector<256x128xf32>
    %120 = tpu.matmul %119, %76, %cst_49 {dimension_numbers = #tpu.dot_dimension_numbers<[1], [0], [0], [1], [0, 0, 1, 1], [], []>} : vector<256x128xf32>, vector<128x128xf32>, vector<256x128xf32> -> vector<256x128xf32>
    %121 = vector.broadcast %80 : vector<1x128xf32> to vector<256x128xf32>
    %122 = arith.addf %120, %121 : vector<256x128xf32>
    %123 = arith.addf %72, %122 : vector<256x128xf32>
    %cst_50 = arith.constant dense<0.000000e+00> : vector<256xf32>
    %124 = vector.multi_reduction <add>, %123, %cst_50 [1] : vector<256x128xf32> to vector<256xf32>
    %125 = vector.shape_cast %124 : vector<256xf32> to vector<256x1xf32>
    %cst_51 = arith.constant 3.125000e-02 : f32
    %126 = vector.broadcast %cst_51 : f32 to vector<256x1xf32>
    %127 = arith.mulf %125, %126 : vector<256x1xf32>
    %128 = vector.broadcast %127 : vector<256x1xf32> to vector<256x128xf32>
    %129 = arith.subf %123, %128 : vector<256x128xf32>
    %cst_52 = arith.constant 0.000000e+00 : f32
    %130 = vector.shape_cast %2 : vector<1x128xi1> to vector<1x128xi1>
    %131 = vector.broadcast %130 : vector<1x128xi1> to vector<256x128xi1>
    %132 = vector.broadcast %cst_52 : f32 to vector<256x128xf32>
    %133 = arith.select %131, %129, %132 : vector<256x128xi1>, vector<256x128xf32>
    %134 = arith.mulf %133, %133 : vector<256x128xf32>
    %cst_53 = arith.constant dense<0.000000e+00> : vector<256xf32>
    %135 = vector.multi_reduction <add>, %134, %cst_53 [1] : vector<256x128xf32> to vector<256xf32>
    %136 = vector.shape_cast %135 : vector<256xf32> to vector<256x1xf32>
    %cst_54 = arith.constant 3.125000e-02 : f32
    %137 = vector.broadcast %cst_54 : f32 to vector<256x1xf32>
    %138 = arith.mulf %136, %137 : vector<256x1xf32>
    %cst_55 = arith.constant 9.99999974E-6 : f32
    %139 = vector.broadcast %cst_55 : f32 to vector<256x1xf32>
    %140 = arith.addf %138, %139 : vector<256x1xf32>
    %141 = math.rsqrt %140 : vector<256x1xf32>
    %142 = vector.broadcast %141 : vector<256x1xf32> to vector<256x128xf32>
    %143 = arith.mulf %133, %142 : vector<256x128xf32>
    %144 = vector.broadcast %5 : vector<1x128xf32> to vector<256x128xf32>
    %145 = arith.mulf %143, %144 : vector<256x128xf32>
    %146 = vector.broadcast %6 : vector<1x128xf32> to vector<256x128xf32>
    %147 = arith.addf %145, %146 : vector<256x128xf32>
    %c0_56 = arith.constant 0 : index
    %c0_57 = arith.constant 0 : index
    %148 = vector.load %arg7[%c0_56, %c0_57] : memref<128x1xf32, #tpu.memory_space<vmem>>, vector<128x1xf32>
    %cst_58 = arith.constant dense<0.000000e+00> : vector<256x1xf32>
    %149 = tpu.matmul %147, %148, %cst_58 {dimension_numbers = #tpu.dot_dimension_numbers<[1], [0], [0], [1], [0, 0, 1, 1], [], []>} : vector<256x128xf32>, vector<128x1xf32>, vector<256x1xf32> -> vector<256x1xf32>
    %c0_59 = arith.constant 0 : index
    %c0_60 = arith.constant 0 : index
    %150 = vector.load %arg8[%c0_59, %c0_60] : memref<1x1xf32, #tpu.memory_space<vmem>>, vector<1x1xf32>
    %151 = vector.broadcast %150 : vector<1x1xf32> to vector<256x1xf32>
    %152 = arith.addf %149, %151 : vector<256x1xf32>
    %c0_61 = arith.constant 0 : index
    %c0_62 = arith.constant 0 : index
    %153 = vector.load %arg9[%c0_61, %c0_62] : memref<256x1xf32, #tpu.memory_space<vmem>>, vector<256x1xf32>
    tpu.vector_store %arg9[%c0_61, %c0_62], %152 {strides = array<i32>} : memref<256x1xf32, #tpu.memory_space<vmem>>, vector<256x1xf32>,
    return
  }
  func.func @transform_0(%arg0: i32) -> (i32, i32) {
    %c0_i32 = arith.constant 0 : i32
    %c0_i32_0 = arith.constant 0 : i32
    return %arg0, %c0_i32 : i32, i32
  }
  func.func @transform_1(%arg0: i32) -> (i32, i32) {
    %c0_i32 = arith.constant 0 : i32
    %c0_i32_0 = arith.constant 0 : i32
    %c0_i32_1 = arith.constant 0 : i32
    return %c0_i32, %c0_i32_0 : i32, i32
  }
  func.func @transform_2(%arg0: i32) -> (i32, i32) {
    %c0_i32 = arith.constant 0 : i32
    %c0_i32_0 = arith.constant 0 : i32
    %c0_i32_1 = arith.constant 0 : i32
    return %c0_i32, %c0_i32_0 : i32, i32
  }
  func.func @transform_3(%arg0: i32) -> (i32, i32, i32) {
    %c0_i32 = arith.constant 0 : i32
    %c0_i32_0 = arith.constant 0 : i32
    %c0_i32_1 = arith.constant 0 : i32
    %c0_i32_2 = arith.constant 0 : i32
    return %c0_i32, %c0_i32_0, %c0_i32_1 : i32, i32, i32
  }
  func.func @transform_4(%arg0: i32) -> (i32, i32, i32) {
    %c0_i32 = arith.constant 0 : i32
    %c0_i32_0 = arith.constant 0 : i32
    %c0_i32_1 = arith.constant 0 : i32
    %c0_i32_2 = arith.constant 0 : i32
    return %c0_i32, %c0_i32_0, %c0_i32_1 : i32, i32, i32
  }
  func.func @transform_5(%arg0: i32) -> (i32, i32, i32) {
    %c0_i32 = arith.constant 0 : i32
    %c0_i32_0 = arith.constant 0 : i32
    %c0_i32_1 = arith.constant 0 : i32
    %c0_i32_2 = arith.constant 0 : i32
    return %c0_i32, %c0_i32_0, %c0_i32_1 : i32, i32, i32
  }
  func.func @transform_6(%arg0: i32) -> (i32, i32) {
    %c0_i32 = arith.constant 0 : i32
    %c0_i32_0 = arith.constant 0 : i32
    %c0_i32_1 = arith.constant 0 : i32
    return %c0_i32, %c0_i32_0 : i32, i32
  }
  func.func @transform_7(%arg0: i32) -> (i32, i32) {
    %c0_i32 = arith.constant 0 : i32
    %c0_i32_0 = arith.constant 0 : i32
    %c0_i32_1 = arith.constant 0 : i32
    return %c0_i32, %c0_i32_0 : i32, i32
  }
  func.func @transform_8(%arg0: i32) -> (i32, i32) {
    %c0_i32 = arith.constant 0 : i32
    %c0_i32_0 = arith.constant 0 : i32
    return %arg0, %c0_i32 : i32, i32
  }
}

</mosaic_0001>

<bundles_post_ra>
// kernel: tpu_custom_call.1
= control target key start
LH: loop header
LB: loop body
LE: loop exit
PB: predicated region body
PF: predicated region fallthrough
CT: control target
= control target key end

     0   :  { %s5337_s29 = smov 0   ;;  %s7570_s0 = inlined_call_operand.vmem [shape: f32[512,8], index: 0, kind: input, shape index: {}]   ;;  %s7571_s1 = inlined_call_operand.vmem [shape: f32[8,128], index: 1, kind: input, shape index: {}]   ;;  %s7572_s2 = inlined_call_operand.vmem [shape: f32[8,128], index: 2, kind: input, shape index: {}]   ;;  %s7573_s3 = inlined_call_operand.vmem [shape: f32[2,128,128], index: 3, kind: input, shape index: {}]   ;;  %s7574_s4 = inlined_call_operand.vmem [shape: f32[2,128,128], index: 4, kind: input, shape index: {}]   ;;  %s7575_s5 = inlined_call_operand.vmem [shape: f32[2,8,128], index: 5, kind: input, shape index: {}]   ;;  %s7576_s6 = inlined_call_operand.vmem [shape: f32[128,1], index: 6, kind: input, shape index: {}]   ;;  %s7577_s7 = inlined_call_operand.<no memory space> [shape: f32[1,1], index: 7, kind: input, shape index: {}]   ;;  %s7578_s8 = inlined_call_operand.vmem [shape: f32[512,1], index: 8, kind: output, shape index: {}]  }
   0x1   :  { %v13_v0 = vstv %s7577_s7 }
   0x2   :  { %14 = vst [vmem:[#allocation2] sm:$0x1] %v13_v0 }
   0x3 LB: > { %s3910_s30 = sadd.s32 4294967295, %s5287_s29   ;;  %p3914_p0 = scmp.ge.s32.totalorder %s5287_s29, 1  ;;  %s5287_s29 = sphi %s5337_s29, %s20_s29  }
   0x4   : > { %p265_p1 = scmp.lt.s32.totalorder %s5287_s29, 3 }
   0x6   : > { %p266_p2 = pnand %p3914_p0, %p265_p1 }
   0x8   : > { %269 = sbr.rel (%p266_p2) target bundleno = 2383 (0x94f), region = 52 }
   0xf   : > { %v347_v1 = vld [vmem:[%s7571_s1] sm:$0xff]  ;;  %s3915_s7 = sshll.u32 %s3910_s30, 5  ;;  %vm352_vm0 = vcmask 64512   ;;  %v311_v34 = vlaneseq  ;;  %vm3821_vm2 = vcmask 7168  }
  0x10   : > { %4260 = vmatprep.subr.mxu0 %v347_v1  ;;  %p300_p3 = scmp.lt.s32.totalorder %s3915_s7, 63  ;;  %v314_v37 = vld [vmem:[%s7572_s2] sm:$0xff] }
  0x11   : > { %4261 = vmatpush3.msra.mxu0 %v347_v1  ;;  %v5423_v35 = vshrl.u32 %v311_v34, 7 }
  0x12   : > { %s7731_s7 = smov (!%p300_p3, %s3915_s7), 63 }
  0x13   : > { %s3916_s11 = sshll.u32 %s7731_s7, 3  ;;  %v5426_v36 = vsub.s32 0, %v5423_v35 }
  0x14   : > { %s5356_s14 = scalar_lea.vmem %s7570_s0, %s3916_s11  ;;  %s7469_s30 = scalar_lea.vmem %s7578_s8, %s3916_s11 }
  0x15   : > { %v315_v2 = vld [vmem:[%s5356_s14] sm:$0xff]  ;;  %v316_v3 = vld [vmem:[%s5356_s14 + $0x8] sm:$0xff]  ;;  %v317_v4 = vld [vmem:[%s5356_s14 + $0x10] sm:$0xff]  ;;  %v5432_v38 = vrot.slane %v314_v37, %v5426_v36 }
  0x16   : > { %4262 = vmatprep.mubr.msk.f32.mxu0 %vm352_vm0, %v315_v2  ;;  %v318_v5 = vld [vmem:[%s5356_s14 + $0x18] sm:$0xff]  ;;  %v319_v6 = vld [vmem:[%s5356_s14 + $0x20] sm:$0xff]  ;;  %v320_v7 = vld [vmem:[%s5356_s14 + $0x28] sm:$0xff] }
  0x17   : > { %4263 = vmatmul.mubr.msk.f32.vlgmr.msra.gmra.mrb[0].mxu0 %vm352_vm0, %v316_v3  ;;  %v321_v8 = vld [vmem:[%s5356_s14 + $0x30] sm:$0xff]  ;;  %v322_v9 = vld [vmem:[%s5356_s14 + $0x38] sm:$0xff]  ;;  %v323_v10 = vld [vmem:[%s5356_s14 + $0x40] sm:$0xff] }
  0x18   : > { %4265 = vmatprep.mubr.msk.f32.mxu0 %vm352_vm0, %v317_v4  ;;  %v324_v11 = vld [vmem:[%s5356_s14 + $0x48] sm:$0xff]  ;;  %v325_v12 = vld [vmem:[%s5356_s14 + $0x50] sm:$0xff]  ;;  %v326_v13 = vld [vmem:[%s5356_s14 + $0x58] sm:$0xff] }
  0x19   : > { %v327_v14 = vld [vmem:[%s5356_s14 + $0x60] sm:$0xff]  ;;  %v328_v15 = vld [vmem:[%s5356_s14 + $0x68] sm:$0xff]  ;;  %v329_v16 = vld [vmem:[%s5356_s14 + $0x70] sm:$0xff] }
  0x1a   : > { %v330_v17 = vld [vmem:[%s5356_s14 + $0x78] sm:$0xff]  ;;  %v331_v18 = vld [vmem:[%s5356_s14 + $0x80] sm:$0xff]  ;;  %v332_v19 = vld [vmem:[%s5356_s14 + $0x88] sm:$0xff] }
  0x1b   : > { %4266 = vmatmul.mubr.msk.f32.gmra.mrb[2].mxu0 %vm352_vm0, %v318_v5  ;;  %v333_v20 = vld [vmem:[%s5356_s14 + $0x90] sm:$0xff]  ;;  %v334_v21 = vld [vmem:[%s5356_s14 + $0x98] sm:$0xff]  ;;  %v335_v22 = vld [vmem:[%s5356_s14 + $0xa0] sm:$0xff] }
  0x1c   : > { %4268 = vmatprep.mubr.msk.f32.mxu0 %vm352_vm0, %v319_v6  ;;  %v336_v23 = vld [vmem:[%s5356_s14 + $0xa8] sm:$0xff]  ;;  %v337_v24 = vld [vmem:[%s5356_s14 + $0xb0] sm:$0xff]  ;;  %v338_v25 = vld [vmem:[%s5356_s14 + $0xb8] sm:$0xff] }
  0x1d   : > { %v339_v26 = vld [vmem:[%s5356_s14 + $0xc0] sm:$0xff]  ;;  %v340_v27 = vld [vmem:[%s5356_s14 + $0xc8] sm:$0xff]  ;;  %v341_v28 = vld [vmem:[%s5356_s14 + $0xd0] sm:$0xff] }
  0x1e   : > { %v342_v29 = vld [vmem:[%s5356_s14 + $0xd8] sm:$0xff]  ;;  %v343_v30 = vld [vmem:[%s5356_s14 + $0xe0] sm:$0xff]  ;;  %v344_v31 = vld [vmem:[%s5356_s14 + $0xe8] sm:$0xff] }
  0x1f   : > { %4269 = vmatmul.mubr.msk.f32.gmra.mrb[4].mxu0 %vm352_vm0, %v320_v7  ;;  %v345_v32 = vld [vmem:[%s5356_s14 + $0xf0] sm:$0xff]  ;;  %v346_v33 = vld [vmem:[%s5356_s14 + $0xf8] sm:$0xff] }
  0x20   : > { %4271 = vmatprep.mubr.msk.f32.mxu0 %vm352_vm0, %v321_v8 }
  0x23   : > { %4272 = vmatmul.mubr.msk.f32.gmra.mrb[6].mxu0 %vm352_vm0, %v322_v9 }
  0x24   : > { %4274 = vmatprep.mubr.msk.f32.mxu0 %vm352_vm0, %v323_v10 }
  0x27   : > { %4275 = vmatmul.mubr.msk.f32.gmra.mrb[8].mxu0 %vm352_vm0, %v324_v11 }
  0x28   : > { %4277 = vmatprep.mubr.msk.f32.mxu0 %vm352_vm0, %v325_v12 }
  0x2b   : > { %4278 = vmatmul.mubr.msk.f32.gmra.mrb[10].mxu0 %vm352_vm0, %v326_v13 }
  0x2c   : > { %4280 = vmatprep.mubr.msk.f32.mxu0 %vm352_vm0, %v327_v14 }
  0x2f   : > { %4281 = vmatmul.mubr.msk.f32.gmra.mrb[12].mxu0 %vm352_vm0, %v328_v15 }
  0x30   : > { %4283 = vmatprep.mubr.msk.f32.mxu0 %vm352_vm0, %v329_v16 }
  0x33   : > { %4284 = vmatmul.mubr.msk.f32.gmra.mrb[14].mxu0 %vm352_vm0, %v330_v17 }
  0x34   : > { %4286 = vmatprep.mubr.msk.f32.mxu0 %vm352_vm0, %v331_v18 }
  0x37   : > { %4287 = vmatmul.mubr.msk.f32.gmra.mrb[16].mxu0 %vm352_vm0, %v332_v19 }
  0x38   : > { %4289 = vmatprep.mubr.msk.f32.mxu0 %vm352_vm0, %v333_v20 }
  0x3b   : > { %4290 = vmatmul.mubr.msk.f32.gmra.mrb[18].mxu0 %vm352_vm0, %v334_v21 }
  0x3c   : > { %4292 = vmatprep.mubr.msk.f32.mxu0 %vm352_vm0, %v335_v22 }
  0x3f   : > { %4293 = vmatmul.mubr.msk.f32.gmra.mrb[20].mxu0 %vm352_vm0, %v336_v23 }
  0x40   : > { %4295 = vmatprep.mubr.msk.f32.mxu0 %vm352_vm0, %v337_v24 }
  0x43   : > { %4296 = vmatmul.mubr.msk.f32.gmra.mrb[22].mxu0 %vm352_vm0, %v338_v25 }
  0x44   : > { %4298 = vmatprep.mubr.msk.f32.mxu0 %vm352_vm0, %v339_v26 }
  0x47   : > { %4299 = vmatmul.mubr.msk.f32.gmra.mrb[24].mxu0 %vm352_vm0, %v340_v27 }
  0x48   : > { %4301 = vmatprep.mubr.msk.f32.mxu0 %vm352_vm0, %v341_v28 }
  0x4b   : > { %4302 = vmatmul.mubr.msk.f32.gmra.mrb[26].mxu0 %vm352_vm0, %v342_v29 }
  0x4c   : > { %4304 = vmatprep.mubr.msk.f32.mxu0 %vm352_vm0, %v343_v30 }
  0x4f   : > { %4305 = vmatmul.mubr.msk.f32.gmra.mrb[28].mxu0 %vm352_vm0, %v344_v31 }
  0x50   : > { %4307 = vmatprep.mubr.msk.f32.mxu0 %vm352_vm0, %v345_v32 }
  0x53   : > { %4308 = vmatmul.mubr.msk.f32.gmra.mrb[30].mxu0 %vm352_vm0, %v346_v33 }
  0xea   : > { %v4264_v39 = vpop.f32.mrb[0].mxu0 }
  0xeb   : > { %v521_v40 = vadd.f32 %v4264_v39, %v5432_v38  ;;  %v515_v41 = vpop.f32.mrb[1].mxu0 }
  0xec   : > { %v516_v42 = vadd.f32 %v515_v41, %v5432_v38 }
  0xed   : > { %v707_v43 = vmul.f32 0.70710677, %v521_v40  ;;  %v675_v12 = vmul.f32 0.5, %v521_v40 }
  0xee   : > { %v706_v44 = vmul.f32 0.70710677, %v516_v42  ;;  %v4267_v45 = vpop.f32.mrb[2].mxu0  ;;  %v674_v2 = vmul.f32 0.5, %v516_v42 }
  0xef   : > { %4894 = verf.f32 %v707_v43  ;;  %v531_v46 = vadd.f32 %v4267_v45, %v5432_v38  ;;  %v525_v47 = vpop.f32.mrb[3].mxu0 }
  0xf0   : > { %4896 = verf.f32 %v706_v44  ;;  %v526_v48 = vadd.f32 %v525_v47, %v5432_v38 }
  0xf1   : > { %v709_v49 = vmul.f32 0.70710677, %v531_v46  ;;  %v677_v26 = vmul.f32 0.5, %v531_v46 }
  0xf2   : > { %v708_v50 = vmul.f32 0.70710677, %v526_v48  ;;  %v4270_v51 = vpop.f32.mrb[4].mxu0  ;;  %v676_v15 = vmul.f32 0.5, %v526_v48 }
  0xf3   : > { %4898 = verf.f32 %v709_v49  ;;  %v5439_v52 = vadd.f32 %v4270_v51, %v5432_v38  ;;  %v535_v53 = vpop.f32.mrb[5].mxu0 }
  0xf4   : > { %4900 = verf.f32 %v708_v50  ;;  %v536_v54 = vadd.f32 %v535_v53, %v5432_v38 }
  0xf5   : > { %v711_v55 = vmul.f32 0.70710677, %v5439_v52  ;;  %v679_v44 = vmul.f32 0.5, %v5439_v52 }
  0xf6   : > { %v710_v56 = vmul.f32 0.70710677, %v536_v54  ;;  %v4273_v57 = vpop.f32.mrb[6].mxu0  ;;  %v678_v29 = vmul.f32 0.5, %v536_v54 }
  0xf7   : > { %4902 = verf.f32 %v711_v55  ;;  %v5444_v58 = vadd.f32 %v4273_v57, %v5432_v38  ;;  %v545_v59 = vpop.f32.mrb[7].mxu0 }
  0xf8   : > { %4904 = verf.f32 %v710_v56  ;;  %v546_v60 = vadd.f32 %v545_v59, %v5432_v38 }
  0xf9   : > { %v4895_v61 = vpop.eup %4894  ;;  %v713_v62 = vmul.f32 0.70710677, %v5444_v58  ;;  %v681_v59 = vmul.f32 0.5, %v5444_v58 }
  0xfa   : > { %v4897_v63 = vpop.eup %4896  ;;  %v712_v0 = vmul.f32 0.70710677, %v546_v60  ;;  %v4276_v1 = vpop.f32.mrb[8].mxu0  ;;  %v771_v8 = vadd.f32 1.0, %v4895_v61  ;;  %v680_v47 = vmul.f32 0.5, %v546_v60 }
  0xfb   : > { %v770_v3 = vadd.f32 1.0, %v4897_v63  ;;  %4906 = verf.f32 %v713_v62  ;;  %v5449_v4 = vadd.f32 %v4276_v1, %v5432_v38  ;;  %v555_v5 = vpop.f32.mrb[9].mxu0 }
  0xfc   : > { %4908 = verf.f32 %v712_v0  ;;  %v556_v6 = vadd.f32 %v555_v5, %v5432_v38  ;;  %v5465_v24 = vmul.f32 %v771_v8, %v675_v12 }
  0xfd   : > { %v4899_v7 = vpop.eup %4898  ;;  %v715_v9 = vmul.f32 0.70710677, %v5449_v4  ;;  %v5453_v10 = vmul.f32 %v770_v3, %v674_v2 }
  0xfe   : > { %v4901_v11 = vpop.eup %4900  ;;  %v714_v13 = vmul.f32 0.70710677, %v556_v6  ;;  %v4279_v14 = vpop.f32.mrb[10].mxu0  ;;  %v773_v21 = vadd.f32 1.0, %v4899_v7  ;;  %v682_v62 = vmul.f32 0.5, %v556_v6 }
  0xff   : > { %v772_v16 = vadd.f32 1.0, %v4901_v11  ;;  %4910 = verf.f32 %v715_v9  ;;  %v5456_v17 = vadd.f32 %v4279_v14, %v5432_v38  ;;  %v565_v18 = vpop.f32.mrb[11].mxu0  ;;  %867 = vadd.xlane.f32.xlu0 %v5453_v10  ;;  %v683_v9 = vmul.f32 0.5, %v5449_v4 }
 0x100   : > { %4912 = verf.f32 %v714_v13  ;;  %v5460_v19 = vadd.f32 %v565_v18, %v5432_v38  ;;  %v5477_v41 = vmul.f32 %v773_v21, %v677_v26 }
 0x101   : > { %v4903_v20 = vpop.eup %4902  ;;  %v717_v22 = vmul.f32 0.70710677, %v5456_v17  ;;  %v5463_v23 = vmul.f32 %v772_v16, %v676_v15  ;;  %v685_v26 = vmul.f32 0.5, %v5456_v17 }
 0x102   : > { %v4905_v25 = vpop.eup %4904  ;;  %v716_v27 = vmul.f32 0.70710677, %v5460_v19  ;;  %v4282_v28 = vpop.f32.mrb[12].mxu0  ;;  %v775_v39 = vadd.f32 1.0, %v4903_v20  ;;  %v684_v13 = vmul.f32 0.5, %v5460_v19 }
 0x103   : > { %v774_v30 = vadd.f32 1.0, %v4905_v25  ;;  %4914 = verf.f32 %v717_v22  ;;  %v5469_v31 = vadd.f32 %v4282_v28, %v5432_v38  ;;  %v575_v32 = vpop.f32.mrb[13].mxu0  ;;  %871 = vadd.xlane.f32.xlu1 %v5463_v23  ;;  %869 = vadd.xlane.f32.xlu0 %v5465_v24 }
 0x104   : > { %4916 = verf.f32 %v716_v27  ;;  %v5474_v33 = vadd.f32 %v575_v32, %v5432_v38  ;;  %v5492_v55 = vmul.f32 %v775_v39, %v679_v44 }
 0x105   : > { %v4907_v37 = vpop.eup %4906  ;;  %v719_v40 = vmul.f32 0.70710677, %v5469_v31  ;;  %v5479_v42 = vmul.f32 %v774_v30, %v678_v29 }
 0x106   : > { %v4909_v43 = vpop.eup %4908  ;;  %v718_v45 = vmul.f32 0.70710677, %v5474_v33  ;;  %v4285_v46 = vpop.f32.mrb[14].mxu0  ;;  %v777_v52 = vadd.f32 1.0, %v4907_v37  ;;  %v686_v29 = vmul.f32 0.5, %v5474_v33 }
 0x107   : > { %v776_v48 = vadd.f32 1.0, %v4909_v43  ;;  %4918 = verf.f32 %v719_v40  ;;  %v5484_v49 = vadd.f32 %v4285_v46, %v5432_v38  ;;  %v585_v50 = vpop.f32.mrb[15].mxu0  ;;  %873 = vadd.xlane.f32.xlu1 %v5477_v41  ;;  %875 = vadd.xlane.f32.xlu0 %v5479_v42  ;;  %v687_v46 = vmul.f32 0.5, %v5469_v31 }
 0x108   : > { %4920 = verf.f32 %v718_v45  ;;  %v5489_v51 = vadd.f32 %v585_v50, %v5432_v38  ;;  %v5507_v7 = vmul.f32 %v777_v52, %v681_v59 }
 0x109   : > { %v4911_v53 = vpop.eup %4910  ;;  %v721_v54 = vmul.f32 0.70710677, %v5484_v49  ;;  %v5494_v56 = vmul.f32 %v776_v48, %v680_v47 }
 0x10a   : > { %v4913_v57 = vpop.eup %4912  ;;  %v720_v60 = vmul.f32 0.70710677, %v5489_v51  ;;  %v4288_v61 = vpop.f32.mrb[16].mxu0  ;;  %v779_v58 = vadd.f32 1.0, %v4911_v53  ;;  %v688_v50 = vmul.f32 0.5, %v5489_v51 }
 0x10b   : > { %v778_v63 = vadd.f32 1.0, %v4913_v57  ;;  %4922 = verf.f32 %v721_v54  ;;  %v5499_v0 = vadd.f32 %v4288_v61, %v5432_v38  ;;  %v595_v1 = vpop.f32.mrb[17].mxu0  ;;  %877 = vadd.xlane.f32.xlu1 %v5492_v55  ;;  %879 = vadd.xlane.f32.xlu0 %v5494_v56 }
 0x10c   : > { %4924 = verf.f32 %v720_v60  ;;  %v5504_v2 = vadd.f32 %v595_v1, %v5432_v38  ;;  %v5523_v22 = vmul.f32 %v779_v58, %v683_v9 }
 0x10d   : > { %v4915_v3 = vpop.eup %4914  ;;  %v723_v5 = vmul.f32 0.70710677, %v5499_v0  ;;  %v5509_v6 = vmul.f32 %v778_v63, %v682_v62  ;;  %v689_v63 = vmul.f32 0.5, %v5484_v49 }
 0x10e   : > { %v4917_v8 = vpop.eup %4916  ;;  %v722_v11 = vmul.f32 0.70710677, %v5504_v2  ;;  %v4291_v12 = vpop.f32.mrb[18].mxu0  ;;  %v781_v20 = vadd.f32 1.0, %v4915_v3  ;;  %7632 = vst [vmem:[#allocation4_spill] sm:$0xff] %v5523_v22  ;;  %v690_v58 = vmul.f32 0.5, %v5504_v2 }
 0x10f   : > { %7631 = vst [vmem:[#allocation3_spill] sm:$0xff] %v5509_v6  ;;  %v780_v14 = vadd.f32 1.0, %v4917_v8  ;;  %4926 = verf.f32 %v723_v5  ;;  %v5515_v15 = vadd.f32 %v4291_v12, %v5432_v38  ;;  %v605_v16 = vpop.f32.mrb[19].mxu0  ;;  %881 = vadd.xlane.f32.xlu1 %v5507_v7  ;;  %883 = vadd.xlane.f32.xlu0 %v5509_v6 }
 0x110   : > { %4928 = verf.f32 %v722_v11  ;;  %v5520_v18 = vadd.f32 %v605_v16, %v5432_v38  ;;  %v5539_v44 = vmul.f32 %v781_v20, %v685_v26 }
 0x111   : > { %v4919_v4 = vpop.eup %4918  ;;  %v725_v21 = vmul.f32 0.70710677, %v5515_v15  ;;  %v5525_v19 = vmul.f32 %v780_v14, %v684_v13 }
 0x112   : > { %v4921_v25 = vpop.eup %4920  ;;  %v724_v27 = vmul.f32 0.70710677, %v5520_v18  ;;  %v4294_v28 = vpop.f32.mrb[20].mxu0  ;;  %v783_v40 = vadd.f32 1.0, %v4919_v4  ;;  %7634 = vst [vmem:[#allocation6_spill] sm:$0xff] %v5539_v44  ;;  %v691_v4 = vmul.f32 0.5, %v5499_v0 }
 0x113   : > { %7633 = vst [vmem:[#allocation5_spill] sm:$0xff] %v5525_v19  ;;  %v782_v30 = vadd.f32 1.0, %v4921_v25  ;;  %4930 = verf.f32 %v725_v21  ;;  %v5531_v32 = vadd.f32 %v4294_v28, %v5432_v38  ;;  %v615_v37 = vpop.f32.mrb[21].mxu0  ;;  %885 = vadd.xlane.f32.xlu1 %v5523_v22  ;;  %887 = vadd.xlane.f32.xlu0 %v5525_v19  ;;  %v692_v25 = vmul.f32 0.5, %v5520_v18 }
 0x114   : > { %4932 = verf.f32 %v724_v27  ;;  %v5536_v39 = vadd.f32 %v615_v37, %v5432_v38  ;;  %v5555_v61 = vmul.f32 %v783_v40, %v687_v46 }
 0x115   : > { %v4923_v17 = vpop.eup %4922  ;;  %v727_v43 = vmul.f32 0.70710677, %v5531_v32  ;;  %v5541_v33 = vmul.f32 %v782_v30, %v686_v29 }
 0x116   : > { %v4925_v45 = vpop.eup %4924  ;;  %v726_v47 = vmul.f32 0.70710677, %v5536_v39  ;;  %v4297_v48 = vpop.f32.mrb[22].mxu0  ;;  %v785_v59 = vadd.f32 1.0, %v4923_v17  ;;  %7636 = vst [vmem:[#allocation8_spill] sm:$0xff] %v5555_v61 }
 0x117   : > { %7635 = vst [vmem:[#allocation7_spill] sm:$0xff] %v5541_v33  ;;  %v784_v53 = vadd.f32 1.0, %v4925_v45  ;;  %4934 = verf.f32 %v727_v43  ;;  %v5547_v52 = vadd.f32 %v4297_v48, %v5432_v38  ;;  %v625_v54 = vpop.f32.mrb[23].mxu0  ;;  %889 = vadd.xlane.f32.xlu1 %v5539_v44  ;;  %891 = vadd.xlane.f32.xlu0 %v5541_v33  ;;  %v693_v43 = vmul.f32 0.5, %v5515_v15 }
 0x118   : > { %4936 = verf.f32 %v726_v47  ;;  %v5552_v57 = vadd.f32 %v625_v54, %v5432_v38  ;;  %v5569_v14 = vmul.f32 %v785_v59, %v689_v63  ;;  %v694_v47 = vmul.f32 0.5, %v5536_v39 }
 0x119   : > { %v4927_v31 = vpop.eup %4926  ;;  %v729_v60 = vmul.f32 0.70710677, %v5547_v52  ;;  %v5557_v51 = vmul.f32 %v784_v53, %v688_v50  ;;  %v695_v63 = vmul.f32 0.5, %v5531_v32 }
 0x11a   : > { %v4929_v62 = vpop.eup %4928  ;;  %v728_v1 = vmul.f32 0.70710677, %v5552_v57  ;;  %v4300_v3 = vpop.f32.mrb[24].mxu0  ;;  %v787_v49 = vadd.f32 1.0, %v4927_v31  ;;  %7638 = vst [vmem:[#allocation10_spill] sm:$0xff] %v5569_v14 }
 0x11b   : > { %7637 = vst [vmem:[#allocation9_spill] sm:$0xff] %v5557_v51  ;;  %v786_v5 = vadd.f32 1.0, %v4929_v62  ;;  %4938 = verf.f32 %v729_v60  ;;  %v5563_v8 = vadd.f32 %v4300_v3, %v5432_v38  ;;  %v635_v9 = vpop.f32.mrb[25].mxu0  ;;  %893 = vadd.xlane.f32.xlu1 %v5555_v61  ;;  %895 = vadd.xlane.f32.xlu0 %v5557_v51 }
 0x11c   : > { %4940 = verf.f32 %v728_v1  ;;  %v636_v11 = vadd.f32 %v635_v9, %v5432_v38  ;;  %v5582_v17 = vmul.f32 %v787_v49, %v691_v4 }
 0x11d   : > { %v4931_v12 = vpop.eup %4930  ;;  %v731_v13 = vmul.f32 0.70710677, %v5563_v8  ;;  %v5571_v2 = vmul.f32 %v786_v5, %v690_v58  ;;  %v696_v58 = vmul.f32 0.5, %v5552_v57 }
 0x11e   : > { %v4933_v16 = vpop.eup %4932  ;;  %v730_v20 = vmul.f32 0.70710677, %v636_v11  ;;  %v4303_v21 = vpop.f32.mrb[26].mxu0  ;;  %v789_v37 = vadd.f32 1.0, %v4931_v12  ;;  %7640 = vst [vmem:[#allocation12_spill] sm:$0xff] %v5582_v17 }
 0x11f   : > { %7639 = vst [vmem:[#allocation11_spill] sm:$0xff] %v5571_v2  ;;  %v788_v26 = vadd.f32 1.0, %v4933_v16  ;;  %4942 = verf.f32 %v731_v13  ;;  %v5576_v27 = vadd.f32 %v4303_v21, %v5432_v38  ;;  %v645_v28 = vpop.f32.mrb[27].mxu0  ;;  %897 = vadd.xlane.f32.xlu1 %v5569_v14  ;;  %899 = vadd.xlane.f32.xlu0 %v5571_v2 }
 0x120   : > { %4944 = verf.f32 %v730_v20  ;;  %v646_v29 = vadd.f32 %v645_v28, %v5432_v38  ;;  %v5592_v15 = vmul.f32 %v789_v37, %v693_v43  ;;  %v699_v43 = vmul.f32 0.5, %v5563_v8 }
 0x121   : > { %v4935_v30 = vpop.eup %4934  ;;  %v733_v0 = vmul.f32 0.70710677, %v5576_v27  ;;  %v5584_v18 = vmul.f32 %v788_v26, %v692_v25  ;;  %v697_v25 = vmul.f32 0.5, %v5547_v52  ;;  %v698_v26 = vmul.f32 0.5, %v636_v11 }
 0x122   : > { %v4937_v40 = vpop.eup %4936  ;;  %v732_v45 = vmul.f32 0.70710677, %v646_v29  ;;  %v4306_v46 = vpop.f32.mrb[28].mxu0  ;;  %v791_v59 = vadd.f32 1.0, %v4935_v30  ;;  %7642 = vst [vmem:[#allocation14_spill] sm:$0xff] %v5592_v15 }
 0x123   : > { %7641 = vst [vmem:[#allocation13_spill] sm:$0xff] %v5584_v18  ;;  %v790_v48 = vadd.f32 1.0, %v4937_v40  ;;  %4946 = verf.f32 %v733_v0  ;;  %v661_v50 = vadd.f32 %v4306_v46, %v5432_v38  ;;  %v655_v53 = vpop.f32.mrb[29].mxu0  ;;  %901 = vadd.xlane.f32.xlu1 %v5582_v17  ;;  %903 = vadd.xlane.f32.xlu0 %v5584_v18 }
 0x124   : > { %4948 = verf.f32 %v732_v45  ;;  %v656_v54 = vadd.f32 %v655_v53, %v5432_v38  ;;  %v5602_v32 = vmul.f32 %v791_v59, %v695_v63  ;;  %v700_v45 = vmul.f32 0.5, %v646_v29 }
 0x125   : > { %v4939_v31 = vpop.eup %4938  ;;  %v735_v60 = vmul.f32 0.70710677, %v661_v50  ;;  %v5594_v62 = vmul.f32 %v790_v48, %v694_v47 }
 0x126   : > { %v4941_v39 = vpop.eup %4940  ;;  %v734_v1 = vmul.f32 0.70710677, %v656_v54  ;;  %v4309_v3 = vpop.f32.mrb[30].mxu0  ;;  %v793_v16 = vadd.f32 1.0, %v4939_v31  ;;  %7644 = vst [vmem:[#allocation16_spill] sm:$0xff] %v5602_v32  ;;  %v701_v31 = vmul.f32 0.5, %v5576_v27 }
 0x127   : > { %7643 = vst [vmem:[#allocation15_spill] sm:$0xff] %v5594_v62  ;;  %v792_v5 = vadd.f32 1.0, %v4941_v39  ;;  %4950 = verf.f32 %v735_v60  ;;  %v671_v9 = vadd.f32 %v4309_v3, %v5432_v38  ;;  %v665_v12 = vpop.f32.mrb[31].mxu0  ;;  %905 = vadd.xlane.f32.xlu1 %v5592_v15  ;;  %907 = vadd.xlane.f32.xlu0 %v5594_v62  ;;  %v702_v59 = vmul.f32 0.5, %v656_v54 }
 0x128   : > { %4952 = verf.f32 %v734_v1  ;;  %v666_v49 = vadd.f32 %v665_v12, %v5432_v38  ;;  %v5609_v37 = vmul.f32 %v793_v16, %v697_v25  ;;  %v703_v3 = vmul.f32 0.5, %v661_v50  ;;  %v834_v50 = vld [vmem:[%s7573_s3] sm:$0xff] }
 0x129   : > { %v4943_v13 = vpop.eup %4942  ;;  %v737_v4 = vmul.f32 0.70710677, %v671_v9  ;;  %v5604_v20 = vmul.f32 %v792_v5, %v696_v58  ;;  %v5651_v25 = vand.u32 127, %v311_v34 }
 0x12a   : > { %v4945_v57 = vpop.eup %4944  ;;  %v736_v21 = vmul.f32 0.70710677, %v666_v49  ;;  %v795_v30 = vadd.f32 1.0, %v4943_v13  ;;  %7646 = vst [vmem:[#allocation18_spill] sm:$0xff] %v5609_v37  ;;  %v704_v58 = vmul.f32 0.5, %v666_v49  ;;  %v705_v13 = vmul.f32 0.5, %v671_v9 }
 0x12b   : > { %7645 = vst [vmem:[#allocation17_spill] sm:$0xff] %v5604_v20  ;;  %v794_v28 = vadd.f32 1.0, %v4945_v57  ;;  %4954 = verf.f32 %v737_v4  ;;  %909 = vadd.xlane.f32.xlu1 %v5602_v32  ;;  %911 = vadd.xlane.f32.xlu0 %v5604_v20  ;;  %v835_v49 = vld [vmem:[%s7573_s3 + $0x8] sm:$0xff]  ;;  %v836_v9 = vld [vmem:[%s7573_s3 + $0x10] sm:$0xff]  ;;  %v837_v57 = vld [vmem:[%s7573_s3 + $0x18] sm:$0xff]  ;;  %vm313_vm1 = vcmp.lt.s32.totalorder %v5651_v25, 32 }
 0x12c   : > { %4956 = verf.f32 %v736_v21  ;;  %v5616_v47 = vmul.f32 %v795_v30, %v699_v43  ;;  %v4710_v4 = vpack.c.bf16 %v835_v49, %v834_v50  ;;  %v4714_v21 = vpack.c.bf16 %v837_v57, %v836_v9  ;;  %7655 = vst [vmem:[#allocation27_spill] sm:$0xff] %v5651_v25 }
 0x12d   : > { %v4947_v38 = vpop.eup %4946  ;;  %v5611_v0 = vmul.f32 %v794_v28, %v698_v26 }
 0x12e   : > { %v4949_v40 = vpop.eup %4948  ;;  %v797_v11 = vadd.f32 1.0, %v4947_v38  ;;  %7648 = vst [vmem:[#allocation20_spill] sm:$0xff] %v5616_v47  ;;  %4711 = vmatprep.subr.bf16.mxu1 %v4710_v4 }
 0x12f   : > { %7647 = vst [vmem:[#allocation19_spill] sm:$0xff] %v5611_v0  ;;  %v796_v46 = vadd.f32 1.0, %v4949_v40  ;;  %913 = vadd.xlane.f32.xlu1 %v5609_v37  ;;  %915 = vadd.xlane.f32.xlu0 %v5611_v0 }
 0x130   : > { %v5623_v39 = vmul.f32 %v797_v11, %v701_v31  ;;  %4713 = vmatpush3.bf16.msra.mxu1 %v4710_v4 }
 0x131   : > { %v4951_v52 = vpop.eup %4950  ;;  %v5618_v48 = vmul.f32 %v796_v46, %v700_v45  ;;  %4715 = vmatprep.subr.bf16.mxu1 %v4714_v21 }
 0x132   : > { %v4953_v53 = vpop.eup %4952  ;;  %v799_v29 = vadd.f32 1.0, %v4951_v52  ;;  %7650 = vst [vmem:[#allocation22_spill] sm:$0xff] %v5623_v39 }
 0x133   : > { %7649 = vst [vmem:[#allocation21_spill] sm:$0xff] %v5618_v48  ;;  %v798_v60 = vadd.f32 1.0, %v4953_v53  ;;  %917 = vadd.xlane.f32.xlu1 %v5616_v47  ;;  %919 = vadd.xlane.f32.xlu0 %v5618_v48 }
 0x134   : > { %v5629_v54 = vmul.f32 %v799_v29, %v703_v3  ;;  %4717 = vmatpush3.bf16.msra.mxu1 %v4714_v21 }
 0x135   : > { %v4955_v8 = vpop.eup %4954  ;;  %v5625_v63 = vmul.f32 %v798_v60, %v702_v59 }
 0x136   : > { %v4957_v1 = vpop.eup %4956  ;;  %v801_v27 = vadd.f32 1.0, %v4955_v8  ;;  %7652 = vst [vmem:[#allocation24_spill] sm:$0xff] %v5629_v54 }
 0x137   : > { %7651 = vst [vmem:[#allocation23_spill] sm:$0xff] %v5625_v63  ;;  %v800_v5 = vadd.f32 1.0, %v4957_v1  ;;  %921 = vadd.xlane.f32.xlu1 %v5623_v39  ;;  %923 = vadd.xlane.f32.xlu0 %v5625_v63 }
 0x138   : > { %v5635_v16 = vmul.f32 %v801_v27, %v705_v13 }
 0x139   : > { %v5631_v12 = vmul.f32 %v800_v5, %v704_v58 }
 0x13a   : > { %7654 = vst [vmem:[#allocation26_spill] sm:$0xff] %v5635_v16 }
 0x13b   : > { %7653 = vst [vmem:[#allocation25_spill] sm:$0xff] %v5631_v12  ;;  %925 = vadd.xlane.f32.xlu1 %v5629_v54  ;;  %927 = vadd.xlane.f32.xlu0 %v5631_v12 }
 0x13f   : > { %929 = vadd.xlane.f32.xlu1 %v5635_v16 }
 0x18c   : > { %v868_v26 = vpop.xlane.xlu0 %867 }
 0x18d   : > { %v931_v28 = vmul.f32 0.03125, %v868_v26 }
 0x18f   : > { %v963_v38 = vsub.f32 %v5453_v10, %v931_v28 }
 0x190   : > { %v872_v30 = vpop.xlane.xlu1 %871  ;;  %v870_v40 = vpop.xlane.xlu0 %869 }
 0x191   : > { %v933_v43 = vmul.f32 0.03125, %v872_v30  ;;  %v932_v45 = vmul.f32 0.03125, %v870_v40  ;;  %v5657_v46 = vsel %vm313_vm1, %v963_v38, 0.0 }
 0x192   : > { %v1029_v52 = vmul.f32 %v5657_v46, %v5657_v46 }
 0x193   : > { %v965_v34 = vsub.f32 %v5463_v23, %v933_v43  ;;  %v964_v11 = vsub.f32 %v5465_v24, %v932_v45 }
 0x194   : > { %v874_v53 = vpop.xlane.xlu1 %873  ;;  %1061 = vadd.xlane.f32.xlu0 %v1029_v52  ;;  %v876_v31 = vpop.xlane.xlu0 %875 }
 0x195   : > { %v934_v59 = vmul.f32 0.03125, %v874_v53  ;;  %v935_v60 = vmul.f32 0.03125, %v876_v31  ;;  %v5665_v8 = vsel %vm313_vm1, %v965_v34, 0.0  ;;  %v5669_v29 = vsel %vm313_vm1, %v964_v11, 0.0 }
 0x196   : > { %v1031_v1 = vmul.f32 %v5665_v8, %v5665_v8  ;;  %v1030_v3 = vmul.f32 %v5669_v29, %v5669_v29 }
 0x197   : > { %v966_v58 = vsub.f32 %v5477_v41, %v934_v59  ;;  %v967_v5 = vsub.f32 %v5479_v42, %v935_v60 }
 0x198   : > { %v878_v27 = vpop.xlane.xlu1 %877  ;;  %1065 = vadd.xlane.f32.xlu0 %v1031_v1  ;;  %1063 = vadd.xlane.f32.xlu1 %v1030_v3  ;;  %v880_v13 = vpop.xlane.xlu0 %879  ;;  %v838_v1 = vld [vmem:[%s7573_s3 + $0x20] sm:$0xff]  ;;  %v839_v3 = vld [vmem:[%s7573_s3 + $0x28] sm:$0xff] }
 0x199   : > { %v936_v50 = vmul.f32 0.03125, %v878_v27  ;;  %v937_v49 = vmul.f32 0.03125, %v880_v13  ;;  %v5679_v9 = vsel %vm313_vm1, %v966_v58, 0.0  ;;  %v5683_v4 = vsel %vm313_vm1, %v967_v5, 0.0 }
 0x19a   : > { %v1032_v57 = vmul.f32 %v5679_v9, %v5679_v9  ;;  %v1033_v21 = vmul.f32 %v5683_v4, %v5683_v4 }
 0x19b   : > { %v968_v26 = vsub.f32 %v5492_v55, %v936_v50  ;;  %v969_v28 = vsub.f32 %v5494_v56, %v937_v49 }
 0x19c   : > { %v882_v38 = vpop.xlane.xlu1 %881  ;;  %1067 = vadd.xlane.f32.xlu1 %v1032_v57  ;;  %1069 = vadd.xlane.f32.xlu0 %v1033_v21  ;;  %v884_v30 = vpop.xlane.xlu0 %883  ;;  %v4718_v57 = vpack.c.bf16 %v839_v3, %v838_v1 }
 0x19d   : > { %v938_v40 = vmul.f32 0.03125, %v882_v38  ;;  %v939_v43 = vmul.f32 0.03125, %v884_v30  ;;  %v5693_v45 = vsel %vm313_vm1, %v968_v26, 0.0  ;;  %v5697_v52 = vsel %vm313_vm1, %v969_v28, 0.0 }
 0x19e   : > { %v1034_v34 = vmul.f32 %v5693_v45, %v5693_v45  ;;  %v1035_v11 = vmul.f32 %v5697_v52, %v5697_v52  ;;  %4719 = vmatprep.subr.bf16.mxu1 %v4718_v57 }
 0x19f   : > { %v970_v53 = vsub.f32 %v5507_v7, %v938_v40  ;;  %v971_v31 = vsub.f32 %v5509_v6, %v939_v43  ;;  %4721 = vmatpush3.bf16.msra.mxu1 %v4718_v57  ;;  %v842_v57 = vld [vmem:[%s7573_s3 + $0x40] sm:$0xff] }
 0x1a0   : > { %v886_v59 = vpop.xlane.xlu1 %885  ;;  %1071 = vadd.xlane.f32.xlu1 %v1034_v34  ;;  %1073 = vadd.xlane.f32.xlu0 %v1035_v11  ;;  %v888_v60 = vpop.xlane.xlu0 %887  ;;  %v840_v11 = vld [vmem:[%s7573_s3 + $0x30] sm:$0xff] }
 0x1a1   : > { %v940_v58 = vmul.f32 0.03125, %v886_v59  ;;  %v941_v5 = vmul.f32 0.03125, %v888_v60  ;;  %v5713_v27 = vsel %vm313_vm1, %v970_v53, 0.0  ;;  %v5717_v13 = vsel %vm313_vm1, %v971_v31, 0.0  ;;  %v841_v53 = vld [vmem:[%s7573_s3 + $0x38] sm:$0xff] }
 0x1a2   : > { %v1036_v50 = vmul.f32 %v5713_v27, %v5713_v27  ;;  %v1037_v49 = vmul.f32 %v5717_v13, %v5717_v13  ;;  %v4722_v60 = vpack.c.bf16 %v841_v53, %v840_v11 }
 0x1a3   : > { %v972_v21 = vsub.f32 %v5523_v22, %v940_v58  ;;  %v973_v26 = vsub.f32 %v5525_v19, %v941_v5 }
 0x1a4   : > { %v890_v28 = vpop.xlane.xlu1 %889  ;;  %1075 = vadd.xlane.f32.xlu1 %v1036_v50  ;;  %1077 = vadd.xlane.f32.xlu0 %v1037_v49  ;;  %v892_v38 = vpop.xlane.xlu0 %891 }
 0x1a5   : > { %v942_v30 = vmul.f32 0.03125, %v890_v28  ;;  %v943_v40 = vmul.f32 0.03125, %v892_v38  ;;  %v5727_v43 = vsel %vm313_vm1, %v972_v21, 0.0  ;;  %v5731_v34 = vsel %vm313_vm1, %v973_v26, 0.0  ;;  %4723 = vmatprep.subr.bf16.mxu1 %v4722_v60  ;;  %v843_v28 = vld [vmem:[%s7573_s3 + $0x48] sm:$0xff] }
 0x1a6   : > { %v1038_v31 = vmul.f32 %v5727_v43, %v5727_v43  ;;  %v1039_v59 = vmul.f32 %v5731_v34, %v5731_v34  ;;  %4725 = vmatpush3.bf16.msra.mxu1 %v4722_v60  ;;  %v844_v60 = vld [vmem:[%s7573_s3 + $0x50] sm:$0xff] }
 0x1a7   : > { %v974_v1 = vsub.f32 %v5539_v44, %v942_v30  ;;  %v975_v3 = vsub.f32 %v5541_v33, %v943_v40  ;;  %v4726_v40 = vpack.c.bf16 %v843_v28, %v842_v57 }
 0x1a8   : > { %v894_v58 = vpop.xlane.xlu1 %893  ;;  %1079 = vadd.xlane.f32.xlu1 %v1038_v31  ;;  %1081 = vadd.xlane.f32.xlu0 %v1039_v59  ;;  %v896_v5 = vpop.xlane.xlu0 %895 }
 0x1a9   : > { %v944_v50 = vmul.f32 0.03125, %v894_v58  ;;  %v945_v49 = vmul.f32 0.03125, %v896_v5  ;;  %v5747_v21 = vsel %vm313_vm1, %v974_v1, 0.0  ;;  %v5751_v26 = vsel %vm313_vm1, %v975_v3, 0.0  ;;  %4727 = vmatprep.subr.bf16.mxu1 %v4726_v40 }
 0x1aa   : > { %v1040_v38 = vmul.f32 %v5747_v21, %v5747_v21  ;;  %v1041_v30 = vmul.f32 %v5751_v26, %v5751_v26  ;;  %4729 = vmatpush3.bf16.msra.mxu1 %v4726_v40  ;;  %v846_v40 = vld [vmem:[%s7573_s3 + $0x60] sm:$0xff] }
 0x1ab   : > { %v976_v11 = vsub.f32 %v5555_v61, %v944_v50  ;;  %v977_v53 = vsub.f32 %v5557_v51, %v945_v49  ;;  %v845_v50 = vld [vmem:[%s7573_s3 + $0x58] sm:$0xff] }
 0x1ac   : > { %v898_v31 = vpop.xlane.xlu1 %897  ;;  %1083 = vadd.xlane.f32.xlu1 %v1040_v38  ;;  %1085 = vadd.xlane.f32.xlu0 %v1041_v30  ;;  %v900_v59 = vpop.xlane.xlu0 %899  ;;  %v4730_v28 = vpack.c.bf16 %v845_v50, %v844_v60 }
 0x1ad   : > { %v946_v1 = vmul.f32 0.03125, %v898_v31  ;;  %v947_v3 = vmul.f32 0.03125, %v900_v59  ;;  %v5767_v58 = vsel %vm313_vm1, %v976_v11, 0.0  ;;  %v5771_v5 = vsel %vm313_vm1, %v977_v53, 0.0 }
 0x1ae   : > { %v1042_v49 = vmul.f32 %v5767_v58, %v5767_v58  ;;  %v1043_v57 = vmul.f32 %v5771_v5, %v5771_v5  ;;  %4731 = vmatprep.subr.bf16.mxu1 %v4730_v28 }
 0x1af   : > { %v978_v38 = vsub.f32 %v5569_v14, %v946_v1  ;;  %v979_v30 = vsub.f32 %v5571_v2, %v947_v3  ;;  %v847_v1 = vld [vmem:[%s7573_s3 + $0x68] sm:$0xff]  ;;  %4733 = vmatpush3.bf16.msra.mxu1 %v4730_v28  ;;  %v848_v28 = vld [vmem:[%s7573_s3 + $0x70] sm:$0xff] }
 0x1b0   : > { %v902_v11 = vpop.xlane.xlu1 %901  ;;  %1087 = vadd.xlane.f32.xlu1 %v1042_v49  ;;  %1089 = vadd.xlane.f32.xlu0 %v1043_v57  ;;  %v904_v53 = vpop.xlane.xlu0 %903  ;;  %v4734_v50 = vpack.c.bf16 %v847_v1, %v846_v40 }
 0x1b1   : > { %v948_v31 = vmul.f32 0.03125, %v902_v11  ;;  %v949_v59 = vmul.f32 0.03125, %v904_v53  ;;  %v5787_v51 = vsel %vm313_vm1, %v978_v38, 0.0  ;;  %v5791_v33 = vsel %vm313_vm1, %v979_v30, 0.0 }
 0x1b2   : > { %v1044_v3 = vmul.f32 %v5787_v51, %v5787_v51  ;;  %v1045_v60 = vmul.f32 %v5791_v33, %v5791_v33  ;;  %4735 = vmatprep.subr.bf16.mxu1 %v4734_v50 }
 0x1b3   : > { %v980_v49 = vsub.f32 %v5582_v17, %v948_v31  ;;  %v981_v57 = vsub.f32 %v5584_v18, %v949_v59  ;;  %v849_v31 = vld [vmem:[%s7573_s3 + $0x78] sm:$0xff]  ;;  %4737 = vmatpush3.bf16.msra.mxu1 %v4734_v50 }
 0x1b4   : > { %v906_v38 = vpop.xlane.xlu1 %905  ;;  %1091 = vadd.xlane.f32.xlu1 %v1044_v3  ;;  %1093 = vadd.xlane.f32.xlu0 %v1045_v60  ;;  %v908_v30 = vpop.xlane.xlu0 %907  ;;  %v4738_v1 = vpack.c.bf16 %v849_v31, %v848_v28 }
 0x1b5   : > { %v950_v11 = vmul.f32 0.03125, %v906_v38  ;;  %v951_v53 = vmul.f32 0.03125, %v908_v30  ;;  %v5807_v2 = vsel %vm313_vm1, %v980_v49, 0.0  ;;  %v5811_v14 = vsel %vm313_vm1, %v981_v57, 0.0 }
 0x1b6   : > { %v1046_v59 = vmul.f32 %v5807_v2, %v5807_v2  ;;  %v1047_v40 = vmul.f32 %v5811_v14, %v5811_v14  ;;  %4739 = vmatprep.subr.bf16.mxu1 %v4738_v1 }
 0x1b7   : > { %v982_v3 = vsub.f32 %v5592_v15, %v950_v11  ;;  %v983_v60 = vsub.f32 %v5594_v62, %v951_v53  ;;  %4741 = vmatpush3.bf16.msra.mxu1 %v4738_v1 }
 0x1b8   : > { %v910_v49 = vpop.xlane.xlu1 %909  ;;  %1095 = vadd.xlane.f32.xlu1 %v1046_v59  ;;  %1097 = vadd.xlane.f32.xlu0 %v1047_v40  ;;  %v912_v57 = vpop.xlane.xlu0 %911 }
 0x1b9   : > { %v952_v38 = vmul.f32 0.03125, %v910_v49  ;;  %v953_v30 = vmul.f32 0.03125, %v912_v57  ;;  %v5827_v18 = vsel %vm313_vm1, %v982_v3, 0.0  ;;  %v5831_v17 = vsel %vm313_vm1, %v983_v60, 0.0 }
 0x1ba   : > { %v1048_v50 = vmul.f32 %v5827_v18, %v5827_v18  ;;  %v1049_v11 = vmul.f32 %v5831_v17, %v5831_v17 }
 0x1bb   : > { %v984_v53 = vsub.f32 %v5602_v32, %v952_v38  ;;  %v985_v28 = vsub.f32 %v5604_v20, %v953_v30 }
 0x1bc   : > { %v914_v31 = vpop.xlane.xlu1 %913  ;;  %1099 = vadd.xlane.f32.xlu1 %v1048_v50  ;;  %1101 = vadd.xlane.f32.xlu0 %v1049_v11  ;;  %v916_v59 = vpop.xlane.xlu0 %915 }
 0x1bd   : > { %v954_v40 = vmul.f32 0.03125, %v914_v31  ;;  %v955_v3 = vmul.f32 0.03125, %v916_v59  ;;  %v5841_v60 = vsel %vm313_vm1, %v984_v53, 0.0  ;;  %v5845_v49 = vsel %vm313_vm1, %v985_v28, 0.0 }
 0x1be   : > { %v1050_v1 = vmul.f32 %v5841_v60, %v5841_v60  ;;  %v1051_v57 = vmul.f32 %v5845_v49, %v5845_v49 }
 0x1bf   : > { %v986_v38 = vsub.f32 %v5609_v37, %v954_v40  ;;  %v987_v30 = vsub.f32 %v5611_v0, %v955_v3 }
 0x1c0   : > { %v918_v50 = vpop.xlane.xlu1 %917  ;;  %1103 = vadd.xlane.f32.xlu1 %v1050_v1  ;;  %1105 = vadd.xlane.f32.xlu0 %v1051_v57  ;;  %v920_v11 = vpop.xlane.xlu0 %919 }
 0x1c1   : > { %v956_v53 = vmul.f32 0.03125, %v918_v50  ;;  %v957_v31 = vmul.f32 0.03125, %v920_v11  ;;  %v5855_v28 = vsel %vm313_vm1, %v986_v38, 0.0  ;;  %v5859_v59 = vsel %vm313_vm1, %v987_v30, 0.0 }
 0x1c2   : > { %v1052_v20 = vmul.f32 %v5855_v28, %v5855_v28  ;;  %v1053_v40 = vmul.f32 %v5859_v59, %v5859_v59 }
 0x1c3   : > { %v988_v3 = vsub.f32 %v5616_v47, %v956_v53  ;;  %v989_v1 = vsub.f32 %v5618_v48, %v957_v31 }
 0x1c4   : > { %v922_v57 = vpop.xlane.xlu1 %921  ;;  %1107 = vadd.xlane.f32.xlu1 %v1052_v20  ;;  %1109 = vadd.xlane.f32.xlu0 %v1053_v40  ;;  %v924_v50 = vpop.xlane.xlu0 %923 }
 0x1c5   : > { %v958_v38 = vmul.f32 0.03125, %v922_v57  ;;  %v959_v11 = vmul.f32 0.03125, %v924_v50  ;;  %v5869_v30 = vsel %vm313_vm1, %v988_v3, 0.0  ;;  %v5873_v0 = vsel %vm313_vm1, %v989_v1, 0.0 }
 0x1c6   : > { %v1054_v37 = vmul.f32 %v5869_v30, %v5869_v30  ;;  %v1055_v53 = vmul.f32 %v5873_v0, %v5873_v0 }
 0x1c7   : > { %v990_v20 = vsub.f32 %v5623_v39, %v958_v38  ;;  %v991_v31 = vsub.f32 %v5625_v63, %v959_v11 }
 0x1c8   : > { %v926_v40 = vpop.xlane.xlu1 %925  ;;  %1111 = vadd.xlane.f32.xlu1 %v1054_v37  ;;  %1113 = vadd.xlane.f32.xlu0 %v1055_v53  ;;  %v928_v57 = vpop.xlane.xlu0 %927 }
 0x1c9   : > { %v960_v3 = vmul.f32 0.03125, %v926_v40  ;;  %v961_v50 = vmul.f32 0.03125, %v928_v57  ;;  %v5883_v1 = vsel %vm313_vm1, %v990_v20, 0.0  ;;  %v5887_v48 = vsel %vm313_vm1, %v991_v31, 0.0 }
 0x1ca   : > { %v1056_v47 = vmul.f32 %v5883_v1, %v5883_v1  ;;  %v1057_v38 = vmul.f32 %v5887_v48, %v5887_v48 }
 0x1cb   : > { %v992_v37 = vsub.f32 %v5629_v54, %v960_v3  ;;  %v993_v11 = vsub.f32 %v5631_v12, %v961_v50 }
 0x1cc   : > { %v930_v53 = vpop.xlane.xlu1 %929  ;;  %1115 = vadd.xlane.f32.xlu1 %v1056_v47  ;;  %1117 = vadd.xlane.f32.xlu0 %v1057_v38 }
 0x1cd   : > { %v962_v40 = vmul.f32 0.03125, %v930_v53  ;;  %v5897_v20 = vsel %vm313_vm1, %v992_v37, 0.0  ;;  %v5901_v31 = vsel %vm313_vm1, %v993_v11, 0.0  ;;  %v850_v37 = vld [vmem:[%s7574_s4] sm:$0xff]  ;;  %v851_v11 = vld [vmem:[%s7574_s4 + $0x8] sm:$0xff]  ;;  %v852_v53 = vld [vmem:[%s7574_s4 + $0x10] sm:$0xff] }
 0x1ce   : > { %v1058_v57 = vmul.f32 %v5897_v20, %v5897_v20  ;;  %v1059_v3 = vmul.f32 %v5901_v31, %v5901_v31 }
 0x1cf   : > { %v994_v50 = vsub.f32 %v5635_v16, %v962_v40  ;;  %v4742_v40 = vpack.c.bf16 %v851_v11, %v850_v37  ;;  %v856_v37 = vld [vmem:[%s7574_s4 + $0x30] sm:$0xff]  ;;  %v857_v11 = vld [vmem:[%s7574_s4 + $0x38] sm:$0xff] }
 0x1d0   : > { %1119 = vadd.xlane.f32.xlu1 %v1058_v57  ;;  %1121 = vadd.xlane.f32.xlu0 %v1059_v3  ;;  %v853_v57 = vld [vmem:[%s7574_s4 + $0x18] sm:$0xff] }
 0x1d1   : > { %v5910_v47 = vsel %vm313_vm1, %v994_v50, 0.0  ;;  %v4746_v3 = vpack.c.bf16 %v853_v57, %v852_v53  ;;  %v854_v50 = vld [vmem:[%s7574_s4 + $0x20] sm:$0xff]  ;;  %4743 = vmatprep.subr.bf16.mxu0 %v4742_v40  ;;  %v4754_v53 = vpack.c.bf16 %v857_v11, %v856_v37 }
 0x1d2   : > { %v1060_v38 = vmul.f32 %v5910_v47, %v5910_v47  ;;  %4745 = vmatpush3.bf16.msra.mxu0 %v4742_v40  ;;  %v858_v57 = vld [vmem:[%s7574_s4 + $0x40] sm:$0xff]  ;;  %v859_v40 = vld [vmem:[%s7574_s4 + $0x48] sm:$0xff] }
 0x1d3   : > { %4747 = vmatprep.subr.bf16.mxu0 %v4746_v3 }
 0x1d4   : > { %1123 = vadd.xlane.f32.xlu1 %v1060_v38  ;;  %v855_v38 = vld [vmem:[%s7574_s4 + $0x28] sm:$0xff] }
 0x1d5   : > { %v4750_v25 = vpack.c.bf16 %v855_v38, %v854_v50  ;;  %v4758_v50 = vpack.c.bf16 %v859_v40, %v858_v57  ;;  %v860_v38 = vld [vmem:[%s7574_s4 + $0x50] sm:$0xff] }
 0x1d6   : > { %4749 = vmatpush3.bf16.msra.mxu0 %v4746_v3  ;;  %v861_v3 = vld [vmem:[%s7574_s4 + $0x58] sm:$0xff] }
 0x1d7   : > { %4751 = vmatprep.subr.bf16.mxu0 %v4750_v25  ;;  %v4762_v37 = vpack.c.bf16 %v861_v3, %v860_v38 }
 0x1da   : > { %4753 = vmatpush3.bf16.msra.mxu0 %v4750_v25 }
 0x1db   : > { %4755 = vmatprep.subr.bf16.mxu0 %v4754_v53 }
 0x1de   : > { %4757 = vmatpush3.bf16.msra.mxu0 %v4754_v53 }
 0x1df   : > { %4759 = vmatprep.subr.bf16.mxu0 %v4758_v50 }
 0x1e2   : > { %4761 = vmatpush3.bf16.msra.mxu0 %v4758_v50  ;;  %v5951_v50 = vsub.s32 2, %v5423_v35 }
 0x1e3   : > { %4763 = vmatprep.subr.bf16.mxu0 %v4762_v37 }
 0x1e4   : > { %7656 = vst [vmem:[#allocation28_spill] sm:$0xff] %v5951_v50 }
 0x1e6   : > { %4765 = vmatpush3.bf16.msra.mxu0 %v4762_v37  ;;  %v7605_v37 = vsub.s32 3, %v5423_v35 }
 0x221   : > { %v1062_v11 = vpop.xlane.xlu0 %1061 }
 0x222   : > { %v1125_v12 = vmul.f32 0.03125, %v1062_v11 }
 0x224   : > { %v1157_v16 = vadd.f32 1e-05, %v1125_v12  ;;  %v5956_v12 = vld [vmem:[%s7575_s5] sm:$0xff] }
 0x225   : > { %v1064_v25 = vpop.xlane.xlu1 %1063  ;;  %v1066_v63 = vpop.xlane.xlu0 %1065 }
 0x226   : > { %4958 = vrsqrt.f32 %v1157_v16  ;;  %v1126_v57 = vmul.f32 0.03125, %v1064_v25  ;;  %v1127_v40 = vmul.f32 0.03125, %v1066_v63 }
 0x228   : > { %v1158_v54 = vadd.f32 1e-05, %v1126_v57  ;;  %v1159_v39 = vadd.f32 1e-05, %v1127_v40 }
 0x229   : > { %v1068_v62 = vpop.xlane.xlu1 %1067  ;;  %v1070_v32 = vpop.xlane.xlu0 %1069 }
 0x22a   : > { %4960 = vrsqrt.f32 %v1158_v54  ;;  %v1128_v15 = vmul.f32 0.03125, %v1068_v62  ;;  %v1129_v53 = vmul.f32 0.03125, %v1070_v32  ;;  %v5961_v62 = vrot.slane %v5956_v12, %v5951_v50 }
 0x22b   : > { %4962 = vrsqrt.f32 %v1159_v39 }
 0x22c   : > { %v1160_v38 = vadd.f32 1e-05, %v1128_v15  ;;  %v1161_v3 = vadd.f32 1e-05, %v1129_v53  ;;  %v5967_v53 = vrot.slane %v5956_v12, %v7605_v37 }
 0x22d   : > { %v1072_v16 = vpop.xlane.xlu1 %1071  ;;  %v1074_v63 = vpop.xlane.xlu0 %1073 }
 0x22e   : > { %4964 = vrsqrt.f32 %v1160_v38  ;;  %v1130_v11 = vmul.f32 0.03125, %v1072_v16  ;;  %v1131_v54 = vmul.f32 0.03125, %v1074_v63 }
 0x22f   : > { %4966 = vrsqrt.f32 %v1161_v3 }
 0x230   : > { %v4959_v32 = vpop.eup %4958  ;;  %v1162_v15 = vadd.f32 1e-05, %v1130_v11  ;;  %v1163_v39 = vadd.f32 1e-05, %v1131_v54 }
 0x231   : > { %v1076_v25 = vpop.xlane.xlu1 %1075  ;;  %v1078_v57 = vpop.xlane.xlu0 %1077  ;;  %v1221_v40 = vmul.f32 %v4959_v32, %v5657_v46 }
 0x232   : > { %4968 = vrsqrt.f32 %v1162_v15  ;;  %v1132_v38 = vmul.f32 0.03125, %v1076_v25  ;;  %v1133_v16 = vmul.f32 0.03125, %v1078_v57 }
 0x233   : > { %4970 = vrsqrt.f32 %v1163_v39  ;;  %v1257_v3 = vmul.f32 %v5961_v62, %v1221_v40 }
 0x234   : > { %v4961_v63 = vpop.eup %4960  ;;  %v1164_v50 = vadd.f32 1e-05, %v1132_v38  ;;  %v1165_v61 = vadd.f32 1e-05, %v1133_v16 }
 0x235   : > { %v4963_v11 = vpop.eup %4962  ;;  %v1080_v54 = vpop.xlane.xlu1 %1079  ;;  %v1293_v44 = vadd.f32 %v5967_v53, %v1257_v3  ;;  %v1222_v46 = vmul.f32 %v4961_v63, %v5669_v29 }
 0x236   : > { %v1082_v19 = vpop.xlane.xlu0 %1081  ;;  %4972 = vrsqrt.f32 %v1164_v50  ;;  %v1134_v32 = vmul.f32 0.03125, %v1080_v54  ;;  %v1223_v15 = vmul.f32 %v4963_v11, %v5665_v8 }
 0x237   : > { %v1135_v37 = vmul.f32 0.03125, %v1082_v19  ;;  %4974 = vrsqrt.f32 %v1165_v61  ;;  %4342 = vmatprep.mubr.f32.mxu1 %v1293_v44  ;;  %v1258_v39 = vmul.f32 %v5961_v62, %v1222_v46 }
 0x238   : > { %v4965_v25 = vpop.eup %4964  ;;  %v1166_v57 = vadd.f32 1e-05, %v1134_v32  ;;  %v1259_v38 = vmul.f32 %v5961_v62, %v1223_v15 }
 0x239   : > { %v1167_v40 = vadd.f32 1e-05, %v1135_v37  ;;  %v4967_v16 = vpop.eup %4966  ;;  %v1084_v6 = vpop.xlane.xlu1 %1083  ;;  %v1294_v3 = vadd.f32 %v5967_v53, %v1258_v39  ;;  %v1224_v29 = vmul.f32 %v4965_v25, %v5679_v9 }
 0x23a   : > { %v1086_v22 = vpop.xlane.xlu0 %1085  ;;  %4976 = vrsqrt.f32 %v1166_v57  ;;  %v1136_v19 = vmul.f32 0.03125, %v1084_v6  ;;  %v1295_v61 = vadd.f32 %v5967_v53, %v1259_v38  ;;  %v1225_v8 = vmul.f32 %v4967_v16, %v5683_v4 }
 0x23b   : > { %v1137_v50 = vmul.f32 0.03125, %v1086_v22  ;;  %4978 = vrsqrt.f32 %v1167_v40  ;;  %4343 = vmatmul.mubr.f32.vlgmr.msra.gmra.mrb[0].mxu1 %v1294_v3  ;;  %v1260_v44 = vmul.f32 %v5961_v62, %v1224_v29 }
 0x23c   : > { %v4969_v37 = vpop.eup %4968  ;;  %v1168_v63 = vadd.f32 1e-05, %v1136_v19  ;;  %4345 = vmatprep.mubr.f32.mxu1 %v1295_v61  ;;  %v1261_v6 = vmul.f32 %v5961_v62, %v1225_v8 }
 0x23d   : > { %v1169_v11 = vadd.f32 1e-05, %v1137_v50  ;;  %v4971_v54 = vpop.eup %4970  ;;  %v1088_v46 = vpop.xlane.xlu1 %1087  ;;  %v1296_v9 = vadd.f32 %v5967_v53, %v1260_v44  ;;  %v1226_v22 = vmul.f32 %v4969_v37, %v5693_v45 }
 0x23e   : > { %v1090_v32 = vpop.xlane.xlu0 %1089  ;;  %4980 = vrsqrt.f32 %v1168_v63  ;;  %v1138_v15 = vmul.f32 0.03125, %v1088_v46  ;;  %v1227_v25 = vmul.f32 %v4971_v54, %v5697_v52  ;;  %v1297_v4 = vadd.f32 %v5967_v53, %v1261_v6 }
 0x23f   : > { %v1139_v39 = vmul.f32 0.03125, %v1090_v32  ;;  %4982 = vrsqrt.f32 %v1169_v11  ;;  %4346 = vmatmul.mubr.f32.gmra.mrb[2].mxu1 %v1296_v9  ;;  %v1262_v57 = vmul.f32 %v5961_v62, %v1226_v22 }
 0x240   : > { %v4973_v40 = vpop.eup %4972  ;;  %v1170_v38 = vadd.f32 1e-05, %v1138_v15  ;;  %v1263_v3 = vmul.f32 %v5961_v62, %v1227_v25  ;;  %4348 = vmatprep.mubr.f32.mxu1 %v1297_v4 }
 0x241   : > { %v1171_v16 = vadd.f32 1e-05, %v1139_v39  ;;  %v4975_v29 = vpop.eup %4974  ;;  %v1092_v19 = vpop.xlane.xlu1 %1091  ;;  %v1298_v50 = vadd.f32 %v5967_v53, %v1262_v57  ;;  %v1228_v61 = vmul.f32 %v4973_v40, %v5713_v27 }
 0x242   : > { %v1094_v45 = vpop.xlane.xlu0 %1093  ;;  %4984 = vrsqrt.f32 %v1170_v38  ;;  %v1140_v52 = vmul.f32 0.03125, %v1092_v19  ;;  %v1299_v8 = vadd.f32 %v5967_v53, %v1263_v3  ;;  %v1229_v63 = vmul.f32 %v4975_v29, %v5717_v13 }
 0x243   : > { %v1141_v44 = vmul.f32 0.03125, %v1094_v45  ;;  %4986 = vrsqrt.f32 %v1171_v16  ;;  %4349 = vmatmul.mubr.f32.gmra.mrb[4].mxu1 %v1298_v50  ;;  %v1264_v37 = vmul.f32 %v5961_v62, %v1228_v61 }
 0x244   : > { %v4977_v11 = vpop.eup %4976  ;;  %v1172_v54 = vadd.f32 1e-05, %v1140_v52  ;;  %4351 = vmatprep.mubr.f32.mxu1 %v1299_v8  ;;  %v1265_v22 = vmul.f32 %v5961_v62, %v1229_v63 }
 0x245   : > { %v1173_v46 = vadd.f32 1e-05, %v1141_v44  ;;  %v4979_v32 = vpop.eup %4978  ;;  %v1096_v9 = vpop.xlane.xlu1 %1095  ;;  %v1300_v27 = vadd.f32 %v5967_v53, %v1264_v37  ;;  %v1230_v15 = vmul.f32 %v4977_v11, %v5727_v43 }
 0x246   : > { %v1098_v6 = vpop.xlane.xlu0 %1097  ;;  %4988 = vrsqrt.f32 %v1172_v54  ;;  %v1142_v39 = vmul.f32 0.03125, %v1096_v9  ;;  %v1231_v4 = vmul.f32 %v4979_v32, %v5731_v34  ;;  %v1301_v13 = vadd.f32 %v5967_v53, %v1265_v22 }
 0x247   : > { %v1143_v25 = vmul.f32 0.03125, %v1098_v6  ;;  %4990 = vrsqrt.f32 %v1173_v46  ;;  %4352 = vmatmul.mubr.f32.gmra.mrb[6].mxu1 %v1300_v27  ;;  %v1266_v57 = vmul.f32 %v5961_v62, %v1230_v15 }
 0x248   : > { %v4981_v40 = vpop.eup %4980  ;;  %v1174_v38 = vadd.f32 1e-05, %v1142_v39  ;;  %v1267_v3 = vmul.f32 %v5961_v62, %v1231_v4  ;;  %4354 = vmatprep.mubr.f32.mxu1 %v1301_v13 }
 0x249   : > { %v1175_v16 = vadd.f32 1e-05, %v1143_v25  ;;  %v4983_v29 = vpop.eup %4982  ;;  %v1100_v19 = vpop.xlane.xlu1 %1099  ;;  %v1302_v45 = vadd.f32 %v5967_v53, %v1266_v57  ;;  %v1232_v50 = vmul.f32 %v4981_v40, %v5747_v21 }
 0x24a   : > { %v1102_v43 = vpop.xlane.xlu0 %1101  ;;  %4992 = vrsqrt.f32 %v1174_v38  ;;  %v1144_v34 = vmul.f32 0.03125, %v1100_v19  ;;  %v1303_v52 = vadd.f32 %v5967_v53, %v1267_v3  ;;  %v1233_v8 = vmul.f32 %v4983_v29, %v5751_v26 }
 0x24b   : > { %v1145_v61 = vmul.f32 0.03125, %v1102_v43  ;;  %4994 = vrsqrt.f32 %v1175_v16  ;;  %4355 = vmatmul.mubr.f32.gmra.mrb[8].mxu1 %v1302_v45  ;;  %v1268_v44 = vmul.f32 %v5961_v62, %v1232_v50 }
 0x24c   : > { %v4985_v37 = vpop.eup %4984  ;;  %v1176_v63 = vadd.f32 1e-05, %v1144_v34  ;;  %4357 = vmatprep.mubr.f32.mxu1 %v1303_v52  ;;  %v1269_v9 = vmul.f32 %v5961_v62, %v1233_v8 }
 0x24d   : > { %v1177_v11 = vadd.f32 1e-05, %v1145_v61  ;;  %v4987_v54 = vpop.eup %4986  ;;  %v1104_v46 = vpop.xlane.xlu1 %1103  ;;  %v1304_v21 = vadd.f32 %v5967_v53, %v1268_v44  ;;  %v1234_v6 = vmul.f32 %v4985_v37, %v5767_v58 }
 0x24e   : > { %v1106_v32 = vpop.xlane.xlu0 %1105  ;;  %4996 = vrsqrt.f32 %v1176_v63  ;;  %v1146_v27 = vmul.f32 0.03125, %v1104_v46  ;;  %v1235_v15 = vmul.f32 %v4987_v54, %v5771_v5  ;;  %v1305_v26 = vadd.f32 %v5967_v53, %v1269_v9 }
 0x24f   : > { %v1147_v22 = vmul.f32 0.03125, %v1106_v32  ;;  %4998 = vrsqrt.f32 %v1177_v11  ;;  %4358 = vmatmul.mubr.f32.gmra.mrb[10].mxu1 %v1304_v21  ;;  %v1270_v39 = vmul.f32 %v5961_v62, %v1234_v6 }
 0x250   : > { %v4989_v25 = vpop.eup %4988  ;;  %v1178_v4 = vadd.f32 1e-05, %v1146_v27  ;;  %v1271_v57 = vmul.f32 %v5961_v62, %v1235_v15  ;;  %4360 = vmatprep.mubr.f32.mxu1 %v1305_v26 }
 0x251   : > { %v1179_v13 = vadd.f32 1e-05, %v1147_v22  ;;  %v4991_v40 = vpop.eup %4990  ;;  %v1108_v38 = vpop.xlane.xlu1 %1107  ;;  %v1306_v16 = vadd.f32 %v5967_v53, %v1270_v39  ;;  %v1236_v3 = vmul.f32 %v4989_v25, %v5787_v51 }
 0x252   : > { %v1110_v58 = vpop.xlane.xlu0 %1109  ;;  %5000 = vrsqrt.f32 %v1178_v4  ;;  %v1148_v5 = vmul.f32 0.03125, %v1108_v38  ;;  %v1307_v19 = vadd.f32 %v5967_v53, %v1271_v57  ;;  %v1237_v45 = vmul.f32 %v4991_v40, %v5791_v33 }
 0x253   : > { %v1149_v29 = vmul.f32 0.03125, %v1110_v58  ;;  %5002 = vrsqrt.f32 %v1179_v13  ;;  %4361 = vmatmul.mubr.f32.gmra.mrb[12].mxu1 %v1306_v16  ;;  %v1272_v43 = vmul.f32 %v5961_v62, %v1236_v3 }
 0x254   : > { %v4993_v50 = vpop.eup %4992  ;;  %v1180_v34 = vadd.f32 1e-05, %v1148_v5  ;;  %4363 = vmatprep.mubr.f32.mxu1 %v1307_v19  ;;  %v1273_v37 = vmul.f32 %v5961_v62, %v1237_v45 }
 0x255   : > { %v1181_v61 = vadd.f32 1e-05, %v1149_v29  ;;  %v4995_v52 = vpop.eup %4994  ;;  %v1112_v44 = vpop.xlane.xlu1 %1111  ;;  %v1308_v51 = vadd.f32 %v5967_v53, %v1272_v43  ;;  %v1238_v63 = vmul.f32 %v4993_v50, %v5807_v2 }
 0x256   : > { %v1114_v8 = vpop.xlane.xlu0 %1113  ;;  %5004 = vrsqrt.f32 %v1180_v34  ;;  %v1150_v11 = vmul.f32 0.03125, %v1112_v44  ;;  %v1239_v46 = vmul.f32 %v4995_v52, %v5811_v14  ;;  %v1309_v33 = vadd.f32 %v5967_v53, %v1273_v37 }
 0x257   : > { %v1151_v54 = vmul.f32 0.03125, %v1114_v8  ;;  %5006 = vrsqrt.f32 %v1181_v61  ;;  %4364 = vmatmul.mubr.f32.gmra.mrb[14].mxu1 %v1308_v51  ;;  %v1274_v32 = vmul.f32 %v5961_v62, %v1238_v63 }
 0x258   : > { %v4997_v21 = vpop.eup %4996  ;;  %v1182_v9 = vadd.f32 1e-05, %v1150_v11  ;;  %v1275_v27 = vmul.f32 %v5961_v62, %v1239_v46  ;;  %4366 = vmatprep.mubr.f32.mxu1 %v1309_v33 }
 0x259   : > { %v1183_v6 = vadd.f32 1e-05, %v1151_v54  ;;  %v4999_v22 = vpop.eup %4998  ;;  %v1116_v15 = vpop.xlane.xlu1 %1115  ;;  %v1310_v26 = vadd.f32 %v5967_v53, %v1274_v32  ;;  %v1240_v39 = vmul.f32 %v4997_v21, %v5827_v18 }
 0x25a   : > { %v1118_v2 = vpop.xlane.xlu0 %1117  ;;  %5008 = vrsqrt.f32 %v1182_v9  ;;  %v1152_v14 = vmul.f32 0.03125, %v1116_v15  ;;  %v1311_v4 = vadd.f32 %v5967_v53, %v1275_v27  ;;  %v1241_v57 = vmul.f32 %v4999_v22, %v5831_v17 }
 0x25b   : > { %v1153_v25 = vmul.f32 0.03125, %v1118_v2  ;;  %5010 = vrsqrt.f32 %v1183_v6  ;;  %4367 = vmatmul.mubr.f32.gmra.mrb[16].mxu1 %v1310_v26  ;;  %v1276_v13 = vmul.f32 %v5961_v62, %v1240_v39 }
 0x25c   : > { %v5001_v40 = vpop.eup %5000  ;;  %v1184_v38 = vadd.f32 1e-05, %v1152_v14  ;;  %4369 = vmatprep.mubr.f32.mxu1 %v1311_v4  ;;  %v1277_v29 = vmul.f32 %v5961_v62, %v1241_v57 }
 0x25d   : > { %v1185_v58 = vadd.f32 1e-05, %v1153_v25  ;;  %v5003_v16 = vpop.eup %5002  ;;  %v1120_v3 = vpop.xlane.xlu1 %1119  ;;  %v1312_v18 = vadd.f32 %v5967_v53, %v1276_v13  ;;  %v1242_v19 = vmul.f32 %v5001_v40, %v5841_v60 }
 0x25e   : > { %v1122_v5 = vpop.xlane.xlu0 %1121  ;;  %5012 = vrsqrt.f32 %v1184_v38  ;;  %v1154_v43 = vmul.f32 0.03125, %v1120_v3  ;;  %v1243_v50 = vmul.f32 %v5003_v16, %v5845_v49  ;;  %v1313_v17 = vadd.f32 %v5967_v53, %v1277_v29 }
 0x25f   : > { %v1155_v45 = vmul.f32 0.03125, %v1122_v5  ;;  %5014 = vrsqrt.f32 %v1185_v58  ;;  %4370 = vmatmul.mubr.f32.gmra.mrb[18].mxu1 %v1312_v18  ;;  %v1278_v34 = vmul.f32 %v5961_v62, %v1242_v19 }
 0x260   : > { %v5005_v61 = vpop.eup %5004  ;;  %v1186_v52 = vadd.f32 1e-05, %v1154_v43  ;;  %v1279_v8 = vmul.f32 %v5961_v62, %v1243_v50  ;;  %4372 = vmatprep.mubr.f32.mxu1 %v1313_v17  ;;  %v863_v43 = vld [vmem:[%s7574_s4 + $0x68] sm:$0xff]  ;;  %v6078_v50 = vrot.slane %v5956_v12, %v5426_v36 }
 0x261   : > { %v1187_v44 = vadd.f32 1e-05, %v1155_v45  ;;  %v5007_v51 = vpop.eup %5006  ;;  %v1124_v37 = vpop.xlane.xlu1 %1123  ;;  %v1314_v60 = vadd.f32 %v5967_v53, %v1278_v34  ;;  %v1244_v63 = vmul.f32 %v5005_v61, %v5855_v28 }
 0x262   : > { %5016 = vrsqrt.f32 %v1186_v52  ;;  %v1156_v49 = vmul.f32 0.03125, %v1124_v37  ;;  %v1315_v11 = vadd.f32 %v5967_v53, %v1279_v8  ;;  %v1245_v54 = vmul.f32 %v5007_v51, %v5859_v59 }
 0x263   : > { %5018 = vrsqrt.f32 %v1187_v44  ;;  %4373 = vmatmul.mubr.f32.gmra.mrb[20].mxu1 %v1314_v60  ;;  %v1280_v46 = vmul.f32 %v5961_v62, %v1244_v63 }
 0x264   : > { %v5009_v33 = vpop.eup %5008  ;;  %v1188_v32 = vadd.f32 1e-05, %v1156_v49  ;;  %4375 = vmatprep.mubr.f32.mxu1 %v1315_v11  ;;  %v1281_v21 = vmul.f32 %v5961_v62, %v1245_v54 }
 0x265   : > { %v5011_v9 = vpop.eup %5010  ;;  %v1316_v6 = vadd.f32 %v5967_v53, %v1280_v46  ;;  %v1246_v28 = vmul.f32 %v5009_v33, %v5869_v30 }
 0x266   : > { %5020 = vrsqrt.f32 %v1188_v32  ;;  %v1317_v27 = vadd.f32 %v5967_v53, %v1281_v21  ;;  %v1247_v22 = vmul.f32 %v5011_v9, %v5873_v0 }
 0x267   : > { %4376 = vmatmul.mubr.f32.gmra.mrb[22].mxu1 %v1316_v6  ;;  %v1282_v59 = vmul.f32 %v5961_v62, %v1246_v28 }
 0x268   : > { %v5013_v15 = vpop.eup %5012  ;;  %4378 = vmatprep.mubr.f32.mxu1 %v1317_v27  ;;  %v1283_v2 = vmul.f32 %v5961_v62, %v1247_v22 }
 0x269   : > { %v5015_v26 = vpop.eup %5014  ;;  %v1318_v39 = vadd.f32 %v5967_v53, %v1282_v59  ;;  %v1248_v14 = vmul.f32 %v5013_v15, %v5883_v1 }
 0x26a   : > { %v1319_v25 = vadd.f32 %v5967_v53, %v1283_v2  ;;  %v1249_v30 = vmul.f32 %v5015_v26, %v5887_v48 }
 0x26b   : > { %4379 = vmatmul.mubr.f32.gmra.mrb[24].mxu1 %v1318_v39  ;;  %v1284_v4 = vmul.f32 %v5961_v62, %v1248_v14 }
 0x26c   : > { %v5017_v0 = vpop.eup %5016  ;;  %4381 = vmatprep.mubr.f32.mxu1 %v1319_v25  ;;  %v1285_v13 = vmul.f32 %v5961_v62, %v1249_v30 }
 0x26d   : > { %v5019_v57 = vpop.eup %5018  ;;  %v1320_v40 = vadd.f32 %v5967_v53, %v1284_v4  ;;  %v1250_v38 = vmul.f32 %v5017_v0, %v5897_v20 }
 0x26e   : > { %v1321_v58 = vadd.f32 %v5967_v53, %v1285_v13  ;;  %v1251_v1 = vmul.f32 %v5019_v57, %v5901_v31  ;;  %v862_v31 = vld [vmem:[%s7574_s4 + $0x60] sm:$0xff] }
 0x26f   : > { %4382 = vmatmul.mubr.f32.gmra.mrb[26].mxu1 %v1320_v40  ;;  %v1286_v16 = vmul.f32 %v5961_v62, %v1250_v38  ;;  %v4766_v45 = vpack.c.bf16 %v863_v43, %v862_v31 }
 0x270   : > { %v5021_v48 = vpop.eup %5020  ;;  %4384 = vmatprep.mubr.f32.mxu1 %v1321_v58  ;;  %v1287_v3 = vmul.f32 %v5961_v62, %v1251_v1 }
 0x271   : > { %v1322_v5 = vadd.f32 %v5967_v53, %v1286_v16  ;;  %v1252_v18 = vmul.f32 %v5021_v48, %v5910_v47  ;;  %4767 = vmatprep.subr.bf16.mxu0 %v4766_v45  ;;  %v864_v47 = vld [vmem:[%s7574_s4 + $0x70] sm:$0xff] }
 0x272   : > { %v1323_v29 = vadd.f32 %v5967_v53, %v1287_v3  ;;  %4769 = vmatpush3.bf16.msra.mxu0 %v4766_v45 }
 0x273   : > { %4385 = vmatmul.mubr.f32.gmra.mrb[28].mxu1 %v1322_v5  ;;  %v1288_v20 = vmul.f32 %v5961_v62, %v1252_v18  ;;  %v865_v62 = vld [vmem:[%s7574_s4 + $0x78] sm:$0xff] }
 0x274   : > { %4387 = vmatprep.mubr.f32.mxu1 %v1323_v29 }
 0x275   : > { %v1324_v19 = vadd.f32 %v5967_v53, %v1288_v20  ;;  %v4770_v53 = vpack.c.bf16 %v865_v62, %v864_v47 }
 0x277   : > { %4388 = vmatmul.mubr.f32.gmra.mrb[30].mxu1 %v1324_v19  ;;  %4771 = vmatprep.subr.bf16.mxu0 %v4770_v53 }
 0x278   : > { %4773 = vmatpush3.bf16.msra.mxu0 %v4770_v53 }
 0x30e   : > { %v4344_v17 = vpop.f32.mrb[0].mxu1 }
 0x30f   : > { %v1401_v34 = vadd.f32 %v4344_v17, %v6078_v50  ;;  %v1395_v61 = vpop.f32.mrb[1].mxu1 }
 0x310   : > { %v1396_v52 = vadd.f32 %v1395_v61, %v6078_v50 }
 0x311   : > { %v1587_v44 = vmul.f32 0.70710677, %v1401_v34  ;;  %v1555_v0 = vmul.f32 0.5, %v1401_v34 }
 0x312   : > { %v1586_v8 = vmul.f32 0.70710677, %v1396_v52  ;;  %v4347_v51 = vpop.f32.mrb[2].mxu1  ;;  %v1554_v14 = vmul.f32 0.5, %v1396_v52 }
 0x313   : > { %5022 = verf.f32 %v1587_v44  ;;  %v1411_v37 = vadd.f32 %v4347_v51, %v6078_v50  ;;  %v1405_v60 = vpop.f32.mrb[3].mxu1 }
 0x314   : > { %5024 = verf.f32 %v1586_v8  ;;  %v1406_v63 = vadd.f32 %v1405_v60, %v6078_v50 }
 0x315   : > { %v1589_v49 = vmul.f32 0.70710677, %v1411_v37  ;;  %v1557_v19 = vmul.f32 0.5, %v1411_v37 }
 0x316   : > { %v1588_v11 = vmul.f32 0.70710677, %v1406_v63  ;;  %v4350_v12 = vpop.f32.mrb[4].mxu1  ;;  %v1556_v5 = vmul.f32 0.5, %v1406_v63 }
 0x317   : > { %5026 = verf.f32 %v1589_v49  ;;  %v1421_v54 = vadd.f32 %v4350_v12, %v6078_v50  ;;  %v1415_v46 = vpop.f32.mrb[5].mxu1 }
 0x318   : > { %5028 = verf.f32 %v1588_v11  ;;  %v1416_v33 = vadd.f32 %v1415_v46, %v6078_v50 }
 0x319   : > { %v1591_v32 = vmul.f32 0.70710677, %v1421_v54  ;;  %v1559_v37 = vmul.f32 0.5, %v1421_v54 }
 0x31a   : > { %v1590_v21 = vmul.f32 0.70710677, %v1416_v33  ;;  %v4353_v9 = vpop.f32.mrb[6].mxu1  ;;  %v1558_v52 = vmul.f32 0.5, %v1416_v33 }
 0x31b   : > { %5030 = verf.f32 %v1591_v32  ;;  %v6087_v6 = vadd.f32 %v4353_v9, %v6078_v50  ;;  %v1425_v28 = vpop.f32.mrb[7].mxu1 }
 0x31c   : > { %5032 = verf.f32 %v1590_v21  ;;  %v1426_v27 = vadd.f32 %v1425_v28, %v6078_v50 }
 0x31d   : > { %v5023_v22 = vpop.eup %5022  ;;  %v1593_v59 = vmul.f32 0.70710677, %v6087_v6 }
 0x31e   : > { %v5025_v15 = vpop.eup %5024  ;;  %v1651_v2 = vadd.f32 1.0, %v5023_v22  ;;  %v1592_v26 = vmul.f32 0.70710677, %v1426_v27  ;;  %v4356_v39 = vpop.f32.mrb[8].mxu1  ;;  %v1560_v9 = vmul.f32 0.5, %v1426_v27 }
 0x31f   : > { %v1650_v25 = vadd.f32 1.0, %v5025_v15  ;;  %5034 = verf.f32 %v1593_v59  ;;  %v6092_v30 = vadd.f32 %v4356_v39, %v6078_v50  ;;  %v1435_v4 = vpop.f32.mrb[9].mxu1  ;;  %v1561_v59 = vmul.f32 0.5, %v6087_v6 }
 0x320   : > { %5036 = verf.f32 %v1592_v26  ;;  %v6095_v13 = vadd.f32 %v1435_v4, %v6078_v50  ;;  %v1683_v1 = vmul.f32 %v1651_v2, %v1555_v0 }
 0x321   : > { %v5027_v57 = vpop.eup %5026  ;;  %v1595_v40 = vmul.f32 0.70710677, %v6092_v30  ;;  %v1682_v38 = vmul.f32 %v1650_v25, %v1554_v14 }
 0x322   : > { %v5029_v58 = vpop.eup %5028  ;;  %v1653_v16 = vadd.f32 1.0, %v5027_v57  ;;  %v1594_v48 = vmul.f32 0.70710677, %v6095_v13  ;;  %v4359_v3 = vpop.f32.mrb[10].mxu1  ;;  %v1562_v57 = vmul.f32 0.5, %v6095_v13 }
 0x323   : > { %v1652_v18 = vadd.f32 1.0, %v5029_v58  ;;  %5038 = verf.f32 %v1595_v40  ;;  %v6100_v29 = vadd.f32 %v4359_v3, %v6078_v50  ;;  %v1445_v20 = vpop.f32.mrb[11].mxu1  ;;  %4422 = vmatprep.mubr.f32.mxu0 %v1682_v38  ;;  %v1563_v58 = vmul.f32 0.5, %v6092_v30 }
 0x324   : > { %5040 = verf.f32 %v1594_v48  ;;  %v6103_v31 = vadd.f32 %v1445_v20, %v6078_v50  ;;  %4423 = vmatmul.mubr.f32.vlgmr.msra.gmra.mrb[32].mxu0 %v1683_v1  ;;  %v1685_v61 = vmul.f32 %v1653_v16, %v1557_v19 }
 0x325   : > { %v5031_v43 = vpop.eup %5030  ;;  %v1597_v45 = vmul.f32 0.70710677, %v6100_v29  ;;  %v1684_v47 = vmul.f32 %v1652_v18, %v1556_v5 }
 0x326   : > { %v5033_v62 = vpop.eup %5032  ;;  %v1655_v53 = vadd.f32 1.0, %v5031_v43  ;;  %v1596_v17 = vmul.f32 0.70710677, %v6103_v31  ;;  %v4362_v34 = vpop.f32.mrb[12].mxu1  ;;  %v1564_v43 = vmul.f32 0.5, %v6103_v31 }
 0x327   : > { %v1654_v44 = vadd.f32 1.0, %v5033_v62  ;;  %5042 = verf.f32 %v1597_v45  ;;  %v6108_v8 = vadd.f32 %v4362_v34, %v6078_v50  ;;  %v1455_v51 = vpop.f32.mrb[13].mxu1  ;;  %4425 = vmatprep.mubr.f32.mxu0 %v1684_v47  ;;  %v1565_v62 = vmul.f32 0.5, %v6100_v29 }
 0x328   : > { %5044 = verf.f32 %v1596_v17  ;;  %v6111_v60 = vadd.f32 %v1455_v51, %v6078_v50  ;;  %4426 = vmatmul.mubr.f32.gmra.mrb[34].mxu0 %v1685_v61  ;;  %v1687_v21 = vmul.f32 %v1655_v53, %v1559_v37 }
 0x329   : > { %v5035_v63 = vpop.eup %5034  ;;  %v1599_v49 = vmul.f32 0.70710677, %v6108_v8  ;;  %v1686_v11 = vmul.f32 %v1654_v44, %v1558_v52 }
 0x32a   : > { %v5037_v12 = vpop.eup %5036  ;;  %v1657_v46 = vadd.f32 1.0, %v5035_v63  ;;  %v1598_v33 = vmul.f32 0.70710677, %v6111_v60  ;;  %v4365_v32 = vpop.f32.mrb[14].mxu1  ;;  %v1566_v63 = vmul.f32 0.5, %v6111_v60 }
 0x32b   : > { %v1656_v28 = vadd.f32 1.0, %v5037_v12  ;;  %5046 = verf.f32 %v1599_v49  ;;  %v6116_v54 = vadd.f32 %v4365_v32, %v6078_v50  ;;  %v1465_v22 = vpop.f32.mrb[15].mxu1  ;;  %4428 = vmatprep.mubr.f32.mxu0 %v1686_v11  ;;  %v1567_v12 = vmul.f32 0.5, %v6108_v8 }
 0x32c   : > { %5048 = verf.f32 %v1598_v33  ;;  %v6120_v15 = vadd.f32 %v1465_v22, %v6078_v50  ;;  %4429 = vmatmul.mubr.f32.gmra.mrb[36].mxu0 %v1687_v21  ;;  %v1689_v0 = vmul.f32 %v1657_v46, %v1561_v59 }
 0x32d   : > { %v5039_v2 = vpop.eup %5038  ;;  %v1601_v26 = vmul.f32 0.70710677, %v6116_v54  ;;  %v1688_v39 = vmul.f32 %v1656_v28, %v1560_v9 }
 0x32e   : > { %v5041_v14 = vpop.eup %5040  ;;  %v1659_v27 = vadd.f32 1.0, %v5039_v2  ;;  %v1600_v25 = vmul.f32 0.70710677, %v6120_v15  ;;  %v4368_v4 = vpop.f32.mrb[16].mxu1  ;;  %v1568_v2 = vmul.f32 0.5, %v6120_v15 }
 0x32f   : > { %v1658_v40 = vadd.f32 1.0, %v5041_v14  ;;  %5050 = verf.f32 %v1601_v26  ;;  %v6126_v6 = vadd.f32 %v4368_v4, %v6078_v50  ;;  %v1475_v38 = vpop.f32.mrb[17].mxu1  ;;  %4431 = vmatprep.mubr.f32.mxu0 %v1688_v39  ;;  %v1569_v14 = vmul.f32 0.5, %v6116_v54 }
 0x330   : > { %5052 = verf.f32 %v1600_v25  ;;  %v6130_v1 = vadd.f32 %v1475_v38, %v6078_v50  ;;  %4432 = vmatmul.mubr.f32.gmra.mrb[38].mxu0 %v1689_v0  ;;  %v1691_v19 = vmul.f32 %v1659_v27, %v1563_v58 }
 0x331   : > { %v5043_v16 = vpop.eup %5042  ;;  %v1603_v48 = vmul.f32 0.70710677, %v6126_v6  ;;  %v1690_v3 = vmul.f32 %v1658_v40, %v1562_v57 }
 0x332   : > { %v5045_v5 = vpop.eup %5044  ;;  %v1661_v13 = vadd.f32 1.0, %v5043_v16  ;;  %v1602_v18 = vmul.f32 0.70710677, %v6130_v1  ;;  %v4371_v20 = vpop.f32.mrb[18].mxu1  ;;  %v1570_v16 = vmul.f32 0.5, %v6130_v1 }
 0x333   : > { %v1660_v45 = vadd.f32 1.0, %v5045_v5  ;;  %5054 = verf.f32 %v1603_v48  ;;  %v6136_v30 = vadd.f32 %v4371_v20, %v6078_v50  ;;  %v1485_v47 = vpop.f32.mrb[19].mxu1  ;;  %4434 = vmatprep.mubr.f32.mxu0 %v1690_v3  ;;  %v1571_v5 = vmul.f32 0.5, %v6126_v6 }
 0x334   : > { %5056 = verf.f32 %v1602_v18  ;;  %v6140_v53 = vadd.f32 %v1485_v47, %v6078_v50  ;;  %4435 = vmatmul.mubr.f32.gmra.mrb[40].mxu0 %v1691_v19  ;;  %v1693_v37 = vmul.f32 %v1661_v13, %v1565_v62 }
 0x335   : > { %v5047_v17 = vpop.eup %5046  ;;  %v1605_v34 = vmul.f32 0.70710677, %v6136_v30  ;;  %v1692_v61 = vmul.f32 %v1660_v45, %v1564_v43 }
 0x336   : > { %v5049_v52 = vpop.eup %5048  ;;  %v1663_v31 = vadd.f32 1.0, %v5047_v17  ;;  %v1604_v44 = vmul.f32 0.70710677, %v6140_v53  ;;  %v4374_v51 = vpop.f32.mrb[20].mxu1  ;;  %v1572_v17 = vmul.f32 0.5, %v6140_v53 }
 0x337   : > { %v1662_v49 = vadd.f32 1.0, %v5049_v52  ;;  %5058 = verf.f32 %v1605_v34  ;;  %v6146_v29 = vadd.f32 %v4374_v51, %v6078_v50  ;;  %v1495_v11 = vpop.f32.mrb[21].mxu1  ;;  %4437 = vmatprep.mubr.f32.mxu0 %v1692_v61  ;;  %v1573_v52 = vmul.f32 0.5, %v6136_v30 }
 0x338   : > { %5060 = verf.f32 %v1604_v44  ;;  %v6150_v46 = vadd.f32 %v1495_v11, %v6078_v50  ;;  %4438 = vmatmul.mubr.f32.gmra.mrb[42].mxu0 %v1693_v37  ;;  %v1695_v59 = vmul.f32 %v1663_v31, %v1567_v12 }
 0x339   : > { %v5051_v33 = vpop.eup %5050  ;;  %v1607_v32 = vmul.f32 0.70710677, %v6146_v29  ;;  %v1694_v21 = vmul.f32 %v1662_v49, %v1566_v63 }
 0x33a   : > { %v5053_v9 = vpop.eup %5052  ;;  %v1665_v60 = vadd.f32 1.0, %v5051_v33  ;;  %v1606_v28 = vmul.f32 0.70710677, %v6150_v46  ;;  %v4377_v22 = vpop.f32.mrb[22].mxu1  ;;  %v1574_v33 = vmul.f32 0.5, %v6150_v46 }
 0x33b   : > { %v1664_v26 = vadd.f32 1.0, %v5053_v9  ;;  %5062 = verf.f32 %v1607_v32  ;;  %v6156_v8 = vadd.f32 %v4377_v22, %v6078_v50  ;;  %v1505_v39 = vpop.f32.mrb[23].mxu1  ;;  %4440 = vmatprep.mubr.f32.mxu0 %v1694_v21  ;;  %v1575_v9 = vmul.f32 0.5, %v6146_v29 }
 0x33c   : > { %5064 = verf.f32 %v1606_v28  ;;  %v6160_v27 = vadd.f32 %v1505_v39, %v6078_v50  ;;  %4441 = vmatmul.mubr.f32.gmra.mrb[44].mxu0 %v1695_v59  ;;  %v1697_v58 = vmul.f32 %v1665_v60, %v1569_v14 }
 0x33d   : > { %v5055_v25 = vpop.eup %5054  ;;  %v1609_v4 = vmul.f32 0.70710677, %v6156_v8  ;;  %v1696_v0 = vmul.f32 %v1664_v26, %v1568_v2  ;;  %v1577_v29 = vmul.f32 0.5, %v6156_v8 }
 0x33e   : > { %v5057_v57 = vpop.eup %5056  ;;  %v1667_v15 = vadd.f32 1.0, %v5055_v25  ;;  %v1608_v40 = vmul.f32 0.70710677, %v6160_v27  ;;  %v4380_v38 = vpop.f32.mrb[24].mxu1  ;;  %v1576_v25 = vmul.f32 0.5, %v6160_v27 }
 0x33f   : > { %v1666_v48 = vadd.f32 1.0, %v5057_v57  ;;  %5066 = verf.f32 %v1609_v4  ;;  %v6166_v54 = vadd.f32 %v4380_v38, %v6078_v50  ;;  %v1515_v3 = vpop.f32.mrb[25].mxu1  ;;  %4443 = vmatprep.mubr.f32.mxu0 %v1696_v0 }
 0x340   : > { %5068 = verf.f32 %v1608_v40  ;;  %v6170_v13 = vadd.f32 %v1515_v3, %v6078_v50  ;;  %4444 = vmatmul.mubr.f32.gmra.mrb[46].mxu0 %v1697_v58  ;;  %v1699_v62 = vmul.f32 %v1667_v15, %v1571_v5 }
 0x341   : > { %v5059_v18 = vpop.eup %5058  ;;  %v1611_v20 = vmul.f32 0.70710677, %v6166_v54  ;;  %v1698_v19 = vmul.f32 %v1666_v48, %v1570_v16 }
 0x342   : > { %v5061_v43 = vpop.eup %5060  ;;  %v1669_v1 = vadd.f32 1.0, %v5059_v18  ;;  %v1610_v45 = vmul.f32 0.70710677, %v6170_v13  ;;  %v4383_v47 = vpop.f32.mrb[26].mxu1  ;;  %v1578_v27 = vmul.f32 0.5, %v6170_v13 }
 0x343   : > { %v1668_v34 = vadd.f32 1.0, %v5061_v43  ;;  %5070 = verf.f32 %v1611_v20  ;;  %v6176_v6 = vadd.f32 %v4383_v47, %v6078_v50  ;;  %v1525_v61 = vpop.f32.mrb[27].mxu1  ;;  %4446 = vmatprep.mubr.f32.mxu0 %v1698_v19  ;;  %v1579_v20 = vmul.f32 0.5, %v6166_v54 }
 0x344   : > { %5072 = verf.f32 %v1610_v45  ;;  %v1526_v31 = vadd.f32 %v1525_v61, %v6078_v50  ;;  %4447 = vmatmul.mubr.f32.gmra.mrb[48].mxu0 %v1699_v62  ;;  %v1701_v12 = vmul.f32 %v1669_v1, %v1573_v52 }
 0x345   : > { %v5063_v44 = vpop.eup %5062  ;;  %v1613_v51 = vmul.f32 0.70710677, %v6176_v6  ;;  %v1700_v37 = vmul.f32 %v1668_v34, %v1572_v17  ;;  %v1581_v62 = vmul.f32 0.5, %v6176_v6 }
 0x346   : > { %v5065_v63 = vpop.eup %5064  ;;  %v1671_v49 = vadd.f32 1.0, %v5063_v44  ;;  %v1612_v53 = vmul.f32 0.70710677, %v1526_v31  ;;  %v4386_v11 = vpop.f32.mrb[28].mxu1  ;;  %v1580_v45 = vmul.f32 0.5, %v1526_v31 }
 0x347   : > { %v1670_v32 = vadd.f32 1.0, %v5065_v63  ;;  %5074 = verf.f32 %v1613_v51  ;;  %v1541_v21 = vadd.f32 %v4386_v11, %v6078_v50  ;;  %v1535_v30 = vpop.f32.mrb[29].mxu1  ;;  %4449 = vmatprep.mubr.f32.mxu0 %v1700_v37 }
 0x348   : > { %5076 = verf.f32 %v1612_v53  ;;  %v1536_v60 = vadd.f32 %v1535_v30, %v6078_v50  ;;  %4450 = vmatmul.mubr.f32.gmra.mrb[50].mxu0 %v1701_v12  ;;  %v1703_v46 = vmul.f32 %v1671_v49, %v1575_v9  ;;  %v6193_v30 = vsub.s32 1, %v5423_v35 }
 0x349   : > { %v5067_v28 = vpop.eup %5066  ;;  %v1615_v22 = vmul.f32 0.70710677, %v1541_v21  ;;  %v1702_v59 = vmul.f32 %v1670_v32, %v1574_v33  ;;  %v1583_v51 = vmul.f32 0.5, %v1541_v21  ;;  %v5278_v21 = vld [vmem:[%s7575_s5] sm:$0xff] }
 0x34a   : > { %v5069_v2 = vpop.eup %5068  ;;  %v1673_v26 = vadd.f32 1.0, %v5067_v28  ;;  %v1614_v39 = vmul.f32 0.70710677, %v1536_v60  ;;  %v4389_v14 = vpop.f32.mrb[30].mxu1  ;;  %v1582_v44 = vmul.f32 0.5, %v1536_v60  ;;  %v6199_v9 = vrot.slane %v5278_v21, %v6193_v30 }
 0x34b   : > { %v1672_v4 = vadd.f32 1.0, %v5069_v2  ;;  %5078 = verf.f32 %v1615_v22  ;;  %v1551_v0 = vadd.f32 %v4389_v14, %v6078_v50  ;;  %v1545_v57 = vpop.f32.mrb[31].mxu1  ;;  %4452 = vmatprep.mubr.f32.mxu0 %v1702_v59 }
 0x34c   : > { %5080 = verf.f32 %v1614_v39  ;;  %v1546_v15 = vadd.f32 %v1545_v57, %v6078_v50  ;;  %4453 = vmatmul.mubr.f32.gmra.mrb[52].mxu0 %v1703_v46  ;;  %v1705_v5 = vmul.f32 %v1673_v26, %v1577_v29 }
 0x34d   : > { %v5071_v40 = vpop.eup %5070  ;;  %v1617_v38 = vmul.f32 0.70710677, %v1551_v0  ;;  %v1704_v58 = vmul.f32 %v1672_v4, %v1576_v25  ;;  %v1585_v6 = vmul.f32 0.5, %v1551_v0 }
 0x34e   : > { %v5073_v16 = vpop.eup %5072  ;;  %v1675_v48 = vadd.f32 1.0, %v5071_v40  ;;  %v1616_v3 = vmul.f32 0.70710677, %v1546_v15  ;;  %v1584_v11 = vmul.f32 0.5, %v1546_v15 }
 0x34f   : > { %v1674_v18 = vadd.f32 1.0, %v5073_v16  ;;  %5082 = verf.f32 %v1617_v38  ;;  %4455 = vmatprep.mubr.f32.mxu0 %v1704_v58 }
 0x350   : > { %5084 = verf.f32 %v1616_v3  ;;  %4456 = vmatmul.mubr.f32.gmra.mrb[54].mxu0 %v1705_v5  ;;  %v1707_v1 = vmul.f32 %v1675_v48, %v1579_v20  ;;  %v7662_v20 = vld [vmem:[#allocation3_spill] sm:$0xff] }
 0x351   : > { %v5075_v8 = vpop.eup %5074  ;;  %v1706_v19 = vmul.f32 %v1674_v18, %v1578_v27  ;;  %v7661_v27 = vld [vmem:[#allocation4_spill] sm:$0xff] }
 0x352   : > { %v5077_v50 = vpop.eup %5076  ;;  %v1677_v43 = vadd.f32 1.0, %v5075_v8 }
 0x353   : > { %v1676_v47 = vadd.f32 1.0, %v5077_v50  ;;  %4458 = vmatprep.mubr.f32.mxu0 %v1706_v19 }
 0x354   : > { %4459 = vmatmul.mubr.f32.gmra.mrb[56].mxu0 %v1707_v1  ;;  %v1709_v52 = vmul.f32 %v1677_v43, %v1581_v62  ;;  %v7663_v43 = vld [vmem:[#allocation6_spill] sm:$0xff] }
 0x355   : > { %v5079_v17 = vpop.eup %5078  ;;  %v1708_v13 = vmul.f32 %v1676_v47, %v1580_v45  ;;  %v7664_v45 = vld [vmem:[#allocation5_spill] sm:$0xff] }
 0x356   : > { %v5081_v34 = vpop.eup %5080  ;;  %v1679_v61 = vadd.f32 1.0, %v5079_v17 }
 0x357   : > { %v1678_v54 = vadd.f32 1.0, %v5081_v34  ;;  %4461 = vmatprep.mubr.f32.mxu0 %v1708_v13 }
 0x358   : > { %4462 = vmatmul.mubr.f32.gmra.mrb[58].mxu0 %v1709_v52  ;;  %v1711_v31 = vmul.f32 %v1679_v61, %v1583_v51  ;;  %v7665_v61 = vld [vmem:[#allocation8_spill] sm:$0xff] }
 0x359   : > { %v5083_v37 = vpop.eup %5082  ;;  %v1710_v63 = vmul.f32 %v1678_v54, %v1582_v44  ;;  %v7666_v44 = vld [vmem:[#allocation7_spill] sm:$0xff] }
 0x35a   : > { %v5085_v49 = vpop.eup %5084  ;;  %v1681_v53 = vadd.f32 1.0, %v5083_v37 }
 0x35b   : > { %v1680_v12 = vadd.f32 1.0, %v5085_v49  ;;  %4464 = vmatprep.mubr.f32.mxu0 %v1710_v63 }
 0x35c   : > { %4465 = vmatmul.mubr.f32.gmra.mrb[60].mxu0 %v1711_v31  ;;  %v1713_v32 = vmul.f32 %v1681_v53, %v1585_v6  ;;  %v7667_v53 = vld [vmem:[#allocation10_spill] sm:$0xff] }
 0x35d   : > { %v1712_v33 = vmul.f32 %v1680_v12, %v1584_v11  ;;  %v7669_v11 = vld [vmem:[#allocation9_spill] sm:$0xff] }
 0x35f   : > { %4467 = vmatprep.mubr.f32.mxu0 %v1712_v33 }
 0x360   : > { %4468 = vmatmul.mubr.f32.gmra.mrb[62].mxu0 %v1713_v32 }
 0x3f7   : > { %v4424_v60 = vpop.f32.mrb[32].mxu0 }
 0x3f8   : > { %v1790_v28 = vadd.f32 %v4424_v60, %v6199_v9  ;;  %v1784_v22 = vpop.f32.mrb[33].mxu0  ;;  %v7671_v60 = vld [vmem:[#allocation12_spill] sm:$0xff] }
 0x3f9   : > { %v1785_v59 = vadd.f32 %v1784_v22, %v6199_v9  ;;  %v7673_v22 = vld [vmem:[#allocation11_spill] sm:$0xff] }
 0x3fa   : > { %v6204_v2 = vadd.f32 %v1790_v28, %v5465_v24 }
 0x3fb   : > { %v6207_v26 = vadd.f32 %v1785_v59, %v5453_v10  ;;  %v4427_v39 = vpop.f32.mrb[34].mxu0 }
 0x3fc   : > { %v1800_v14 = vadd.f32 %v4427_v39, %v6199_v9  ;;  %2013 = vadd.xlane.f32.xlu1 %v6204_v2  ;;  %v1794_v46 = vpop.f32.mrb[35].mxu0 }
 0x3fd   : > { %v1795_v25 = vadd.f32 %v1794_v46, %v6199_v9  ;;  %2011 = vadd.xlane.f32.xlu0 %v6207_v26 }
 0x3fe   : > { %v6214_v4 = vadd.f32 %v1800_v14, %v5477_v41 }
 0x3ff   : > { %v6217_v0 = vadd.f32 %v1795_v25, %v5463_v23  ;;  %v4430_v24 = vpop.f32.mrb[36].mxu0 }
 0x400   : > { %7657 = vst [vmem:[#allocation29_spill] sm:$0xff] %v6214_v4  ;;  %v1810_v10 = vadd.f32 %v4430_v24, %v6199_v9  ;;  %2017 = vadd.xlane.f32.xlu1 %v6214_v4  ;;  %v1804_v57 = vpop.f32.mrb[37].mxu0  ;;  %v7675_v24 = vld [vmem:[#allocation14_spill] sm:$0xff] }
 0x401   : > { %7658 = vst [vmem:[#allocation30_spill] sm:$0xff] %v6217_v0  ;;  %v1805_v29 = vadd.f32 %v1804_v57, %v6199_v9  ;;  %2015 = vadd.xlane.f32.xlu0 %v6217_v0  ;;  %v7677_v57 = vld [vmem:[#allocation13_spill] sm:$0xff] }
 0x402   : > { %v6224_v15 = vadd.f32 %v1810_v10, %v5492_v55 }
 0x403   : > { %v6227_v40 = vadd.f32 %v1805_v29, %v5479_v42  ;;  %v4433_v41 = vpop.f32.mrb[38].mxu0 }
 0x404   : > { %7659 = vst [vmem:[#allocation31_spill] sm:$0xff] %v6224_v15  ;;  %v1820_v23 = vadd.f32 %v4433_v41, %v6199_v9  ;;  %2021 = vadd.xlane.f32.xlu1 %v6224_v15  ;;  %v1814_v38 = vpop.f32.mrb[39].mxu0 }
 0x405   : > { %7660 = vst [vmem:[#allocation32_spill] sm:$0xff] %v6227_v40  ;;  %v1815_v58 = vadd.f32 %v1814_v38, %v6199_v9  ;;  %2019 = vadd.xlane.f32.xlu0 %v6227_v40 }
 0x406   : > { %v6234_v16 = vadd.f32 %v1820_v23, %v5507_v7 }
 0x407   : > { %v6237_v48 = vadd.f32 %v1815_v58, %v5494_v56  ;;  %v4436_v55 = vpop.f32.mrb[40].mxu0 }
 0x408   : > { %v1830_v42 = vadd.f32 %v4436_v55, %v6199_v9  ;;  %2025 = vadd.xlane.f32.xlu1 %v6234_v16  ;;  %v1824_v3 = vpop.f32.mrb[41].mxu0  ;;  %v7679_v55 = vld [vmem:[#allocation16_spill] sm:$0xff] }
 0x409   : > { %v1825_v5 = vadd.f32 %v1824_v3, %v6199_v9  ;;  %2023 = vadd.xlane.f32.xlu0 %v6237_v48  ;;  %v7681_v3 = vld [vmem:[#allocation15_spill] sm:$0xff] }
 0x40a   : > { %v6244_v18 = vadd.f32 %v1830_v42, %v7661_v27 }
 0x40b   : > { %v6247_v8 = vadd.f32 %v1825_v5, %v7662_v20  ;;  %v4439_v7 = vpop.f32.mrb[42].mxu0 }
 0x40c   : > { %v1840_v56 = vadd.f32 %v4439_v7, %v6199_v9  ;;  %2029 = vadd.xlane.f32.xlu1 %v6244_v18  ;;  %v1834_v19 = vpop.f32.mrb[43].mxu0 }
 0x40d   : > { %v1835_v50 = vadd.f32 %v1834_v19, %v6199_v9  ;;  %2027 = vadd.xlane.f32.xlu0 %v6247_v8  ;;  %v7683_v19 = vld [vmem:[#allocation18_spill] sm:$0xff] }
 0x40e   : > { %v6254_v1 = vadd.f32 %v1840_v56, %v7663_v43  ;;  %v7685_v43 = vld [vmem:[#allocation17_spill] sm:$0xff] }
 0x40f   : > { %v6257_v47 = vadd.f32 %v1835_v50, %v7664_v45  ;;  %v4442_v62 = vpop.f32.mrb[44].mxu0 }
 0x410   : > { %v1850_v17 = vadd.f32 %v4442_v62, %v6199_v9  ;;  %2033 = vadd.xlane.f32.xlu1 %v6254_v1  ;;  %v1844_v13 = vpop.f32.mrb[45].mxu0 }
 0x411   : > { %v1845_v34 = vadd.f32 %v1844_v13, %v6199_v9  ;;  %2031 = vadd.xlane.f32.xlu0 %v6257_v47 }
 0x412   : > { %v6264_v52 = vadd.f32 %v1850_v17, %v7665_v61  ;;  %v7687_v61 = vld [vmem:[#allocation20_spill] sm:$0xff] }
 0x413   : > { %v6267_v54 = vadd.f32 %v1845_v34, %v7666_v44  ;;  %v4445_v51 = vpop.f32.mrb[46].mxu0 }
 0x414   : > { %v1860_v37 = vadd.f32 %v4445_v51, %v6199_v9  ;;  %2037 = vadd.xlane.f32.xlu1 %v6264_v52  ;;  %v1854_v63 = vpop.f32.mrb[47].mxu0  ;;  %v7689_v51 = vld [vmem:[#allocation19_spill] sm:$0xff] }
 0x415   : > { %v1855_v49 = vadd.f32 %v1854_v63, %v6199_v9  ;;  %2035 = vadd.xlane.f32.xlu0 %v6267_v54 }
 0x416   : > { %v6274_v31 = vadd.f32 %v1860_v37, %v7667_v53 }
 0x417   : > { %v6277_v12 = vadd.f32 %v1855_v49, %v7669_v11  ;;  %v4448_v6 = vpop.f32.mrb[48].mxu0 }
 0x418   : > { %7668 = vst [vmem:[#allocation4_spill] sm:$0xff] %v6274_v31  ;;  %v1870_v33 = vadd.f32 %v4448_v6, %v6199_v9  ;;  %2041 = vadd.xlane.f32.xlu1 %v6274_v31  ;;  %v1864_v32 = vpop.f32.mrb[49].mxu0  ;;  %v7691_v6 = vld [vmem:[#allocation22_spill] sm:$0xff] }
 0x419   : > { %7670 = vst [vmem:[#allocation3_spill] sm:$0xff] %v6277_v12  ;;  %v1865_v21 = vadd.f32 %v1864_v32, %v6199_v9  ;;  %2039 = vadd.xlane.f32.xlu0 %v6277_v12  ;;  %v7693_v32 = vld [vmem:[#allocation21_spill] sm:$0xff] }
 0x41a   : > { %v6284_v28 = vadd.f32 %v1870_v33, %v7671_v60 }
 0x41b   : > { %v6287_v59 = vadd.f32 %v1865_v21, %v7673_v22  ;;  %v4451_v39 = vpop.f32.mrb[50].mxu0 }
 0x41c   : > { %7672 = vst [vmem:[#allocation6_spill] sm:$0xff] %v6284_v28  ;;  %v1880_v14 = vadd.f32 %v4451_v39, %v6199_v9  ;;  %2045 = vadd.xlane.f32.xlu1 %v6284_v28  ;;  %v1874_v46 = vpop.f32.mrb[51].mxu0 }
 0x41d   : > { %7674 = vst [vmem:[#allocation5_spill] sm:$0xff] %v6287_v59  ;;  %v1875_v25 = vadd.f32 %v1874_v46, %v6199_v9  ;;  %2043 = vadd.xlane.f32.xlu0 %v6287_v59  ;;  %v7695_v46 = vld [vmem:[#allocation24_spill] sm:$0xff] }
 0x41e   : > { %v6294_v10 = vadd.f32 %v1880_v14, %v7675_v24  ;;  %v7697_v24 = vld [vmem:[#allocation23_spill] sm:$0xff] }
 0x41f   : > { %v6297_v29 = vadd.f32 %v1875_v25, %v7677_v57  ;;  %v4454_v41 = vpop.f32.mrb[52].mxu0 }
 0x420   : > { %7676 = vst [vmem:[#allocation8_spill] sm:$0xff] %v6294_v10  ;;  %v1890_v23 = vadd.f32 %v4454_v41, %v6199_v9  ;;  %2049 = vadd.xlane.f32.xlu1 %v6294_v10  ;;  %v1884_v38 = vpop.f32.mrb[53].mxu0 }
 0x421   : > { %7678 = vst [vmem:[#allocation7_spill] sm:$0xff] %v6297_v29  ;;  %v1885_v58 = vadd.f32 %v1884_v38, %v6199_v9  ;;  %2047 = vadd.xlane.f32.xlu0 %v6297_v29 }
 0x422   : > { %v6304_v42 = vadd.f32 %v1890_v23, %v7679_v55  ;;  %v7699_v55 = vld [vmem:[#allocation26_spill] sm:$0xff] }
 0x423   : > { %v6307_v5 = vadd.f32 %v1885_v58, %v7681_v3  ;;  %v4457_v27 = vpop.f32.mrb[54].mxu0 }
 0x424   : > { %7680 = vst [vmem:[#allocation10_spill] sm:$0xff] %v6304_v42  ;;  %v1900_v20 = vadd.f32 %v4457_v27, %v6199_v9  ;;  %2053 = vadd.xlane.f32.xlu1 %v6304_v42  ;;  %v1894_v7 = vpop.f32.mrb[55].mxu0  ;;  %v7701_v27 = vld [vmem:[#allocation25_spill] sm:$0xff] }
 0x425   : > { %7682 = vst [vmem:[#allocation9_spill] sm:$0xff] %v6307_v5  ;;  %v1895_v56 = vadd.f32 %v1894_v7, %v6199_v9  ;;  %2051 = vadd.xlane.f32.xlu0 %v6307_v5  ;;  %v3951_v7 = vld [vmem:[%s7573_s3 + $0x80] sm:$0xff] }
 0x426   : > { %v6314_v50 = vadd.f32 %v1900_v20, %v7683_v19 }
 0x427   : > { %v6317_v45 = vadd.f32 %v1895_v56, %v7685_v43  ;;  %v4460_v62 = vpop.f32.mrb[56].mxu0  ;;  %v3953_v56 = vld [vmem:[%s7573_s3 + $0x90] sm:$0xff]  ;;  %v3954_v43 = vld [vmem:[%s7573_s3 + $0x98] sm:$0xff] }
 0x428   : > { %7684 = vst [vmem:[#allocation12_spill] sm:$0xff] %v6314_v50  ;;  %v1910_v17 = vadd.f32 %v4460_v62, %v6199_v9  ;;  %2057 = vadd.xlane.f32.xlu1 %v6314_v50  ;;  %v1904_v13 = vpop.f32.mrb[57].mxu0  ;;  %v4778_v62 = vpack.c.bf16 %v3954_v43, %v3953_v56 }
 0x429   : > { %7686 = vst [vmem:[#allocation11_spill] sm:$0xff] %v6317_v45  ;;  %v1905_v34 = vadd.f32 %v1904_v13, %v6199_v9  ;;  %2055 = vadd.xlane.f32.xlu0 %v6317_v45  ;;  %v3956_v13 = vld [vmem:[%s7573_s3 + $0xa8] sm:$0xff] }
 0x42a   : > { %v6324_v44 = vadd.f32 %v1910_v17, %v7687_v61  ;;  %v3955_v17 = vld [vmem:[%s7573_s3 + $0xa0] sm:$0xff]  ;;  %v3957_v61 = vld [vmem:[%s7573_s3 + $0xb0] sm:$0xff] }
 0x42b   : > { %v6327_v37 = vadd.f32 %v1905_v34, %v7689_v51  ;;  %v4463_v63 = vpop.f32.mrb[58].mxu0  ;;  %v4782_v34 = vpack.c.bf16 %v3956_v13, %v3955_v17  ;;  %v3958_v51 = vld [vmem:[%s7573_s3 + $0xb8] sm:$0xff] }
 0x42c   : > { %7688 = vst [vmem:[#allocation14_spill] sm:$0xff] %v6324_v44  ;;  %v1920_v49 = vadd.f32 %v4463_v63, %v6199_v9  ;;  %2061 = vadd.xlane.f32.xlu1 %v6324_v44  ;;  %v1914_v53 = vpop.f32.mrb[59].mxu0  ;;  %v4786_v63 = vpack.c.bf16 %v3958_v51, %v3957_v61 }
 0x42d   : > { %7690 = vst [vmem:[#allocation13_spill] sm:$0xff] %v6327_v37  ;;  %v1915_v11 = vadd.f32 %v1914_v53, %v6199_v9  ;;  %2059 = vadd.xlane.f32.xlu0 %v6327_v37  ;;  %v3960_v53 = vld [vmem:[%s7573_s3 + $0xc8] sm:$0xff] }
 0x42e   : > { %v6334_v33 = vadd.f32 %v1920_v49, %v7691_v6  ;;  %v3959_v49 = vld [vmem:[%s7573_s3 + $0xc0] sm:$0xff]  ;;  %v3961_v6 = vld [vmem:[%s7573_s3 + $0xd0] sm:$0xff] }
 0x42f   : > { %v6337_v21 = vadd.f32 %v1915_v11, %v7693_v32  ;;  %v4466_v60 = vpop.f32.mrb[60].mxu0  ;;  %v4790_v11 = vpack.c.bf16 %v3960_v53, %v3959_v49  ;;  %v3962_v32 = vld [vmem:[%s7573_s3 + $0xd8] sm:$0xff] }
 0x430   : > { %7692 = vst [vmem:[#allocation16_spill] sm:$0xff] %v6334_v33  ;;  %v1930_v22 = vadd.f32 %v4466_v60, %v6199_v9  ;;  %2065 = vadd.xlane.f32.xlu1 %v6334_v33  ;;  %v1924_v39 = vpop.f32.mrb[61].mxu0  ;;  %v4794_v60 = vpack.c.bf16 %v3962_v32, %v3961_v6 }
 0x431   : > { %7694 = vst [vmem:[#allocation15_spill] sm:$0xff] %v6337_v21  ;;  %v1925_v14 = vadd.f32 %v1924_v39, %v6199_v9  ;;  %2063 = vadd.xlane.f32.xlu0 %v6337_v21 }
 0x432   : > { %v6344_v25 = vadd.f32 %v1930_v22, %v7695_v46 }
 0x433   : > { %v6347_v57 = vadd.f32 %v1925_v14, %v7697_v24  ;;  %v4469_v41 = vpop.f32.mrb[62].mxu0 }
 0x434   : > { %7696 = vst [vmem:[#allocation18_spill] sm:$0xff] %v6344_v25  ;;  %v1940_v23 = vadd.f32 %v4469_v41, %v6199_v9  ;;  %2069 = vadd.xlane.f32.xlu1 %v6344_v25  ;;  %v1934_v38 = vpop.f32.mrb[63].mxu0 }
 0x435   : > { %7698 = vst [vmem:[#allocation17_spill] sm:$0xff] %v6347_v57  ;;  %v1935_v58 = vadd.f32 %v1934_v38, %v6199_v9  ;;  %2067 = vadd.xlane.f32.xlu0 %v6347_v57  ;;  %v3952_v9 = vld [vmem:[%s7573_s3 + $0x88] sm:$0xff] }
 0x436   : > { %v6354_v3 = vadd.f32 %v1940_v23, %v7699_v55  ;;  %v4774_v19 = vpack.c.bf16 %v3952_v9, %v3951_v7 }
 0x437   : > { %v6357_v20 = vadd.f32 %v1935_v58, %v7701_v27 }
 0x438   : > { %7700 = vst [vmem:[#allocation20_spill] sm:$0xff] %v6354_v3  ;;  %2073 = vadd.xlane.f32.xlu1 %v6354_v3  ;;  %4775 = vmatprep.subr.bf16.mxu1 %v4774_v19 }
 0x439   : > { %7702 = vst [vmem:[#allocation19_spill] sm:$0xff] %v6357_v20  ;;  %2071 = vadd.xlane.f32.xlu0 %v6357_v20  ;;  %4777 = vmatpush3.bf16.msra.mxu1 %v4774_v19 }
 0x43a   : > { %4779 = vmatprep.subr.bf16.mxu1 %v4778_v62 }
 0x43d   : > { %4781 = vmatpush3.bf16.msra.mxu1 %v4778_v62 }
 0x43e   : > { %4783 = vmatprep.subr.bf16.mxu1 %v4782_v34 }
 0x441   : > { %4785 = vmatpush3.bf16.msra.mxu1 %v4782_v34 }
 0x442   : > { %4787 = vmatprep.subr.bf16.mxu1 %v4786_v63 }
 0x445   : > { %4789 = vmatpush3.bf16.msra.mxu1 %v4786_v63 }
 0x446   : > { %4791 = vmatprep.subr.bf16.mxu1 %v4790_v11 }
 0x449   : > { %4793 = vmatpush3.bf16.msra.mxu1 %v4790_v11 }
 0x44a   : > { %4795 = vmatprep.subr.bf16.mxu1 %v4794_v60 }
 0x44d   : > { %4797 = vmatpush3.bf16.msra.mxu1 %v4794_v60 }
 0x489   : > { %v2014_v22 = vpop.xlane.xlu1 %2013 }
 0x48a   : > { %v2076_v39 = vmul.f32 0.03125, %v2014_v22  ;;  %v2012_v14 = vpop.xlane.xlu0 %2011 }
 0x48b   : > { %v2075_v46 = vmul.f32 0.03125, %v2012_v14 }
 0x48c   : > { %v2108_v24 = vsub.f32 %v6204_v2, %v2076_v39 }
 0x48d   : > { %v2107_v41 = vsub.f32 %v6207_v26, %v2075_v46  ;;  %v2018_v23 = vpop.xlane.xlu1 %2017 }
 0x48e   : > { %v2078_v38 = vmul.f32 0.03125, %v2018_v23  ;;  %v2016_v58 = vpop.xlane.xlu0 %2015  ;;  %v6401_v27 = vsel %vm313_vm1, %v2108_v24, 0.0 }
 0x48f   : > { %v2077_v7 = vmul.f32 0.03125, %v2016_v58  ;;  %v2172_v9 = vmul.f32 %v6401_v27, %v6401_v27  ;;  %v6407_v56 = vsel %vm313_vm1, %v2107_v41, 0.0 }
 0x490   : > { %v2110_v19 = vsub.f32 %v6214_v4, %v2078_v38  ;;  %v2171_v43 = vmul.f32 %v6407_v56, %v6407_v56 }
 0x491   : > { %v2109_v62 = vsub.f32 %v6217_v0, %v2077_v7  ;;  %v2022_v17 = vpop.xlane.xlu1 %2021  ;;  %2205 = vadd.xlane.f32.xlu1 %v2172_v9 }
 0x492   : > { %v2080_v13 = vmul.f32 0.03125, %v2022_v17  ;;  %2203 = vadd.xlane.f32.xlu0 %v2171_v43  ;;  %v2020_v34 = vpop.xlane.xlu0 %2019  ;;  %v6415_v61 = vsel %vm313_vm1, %v2110_v19, 0.0 }
 0x493   : > { %v2079_v51 = vmul.f32 0.03125, %v2020_v34  ;;  %v2174_v63 = vmul.f32 %v6415_v61, %v6415_v61  ;;  %v6421_v49 = vsel %vm313_vm1, %v2109_v62, 0.0 }
 0x494   : > { %v2112_v53 = vsub.f32 %v6224_v15, %v2080_v13  ;;  %v2173_v11 = vmul.f32 %v6421_v49, %v6421_v49 }
 0x495   : > { %v2111_v6 = vsub.f32 %v6227_v40, %v2079_v51  ;;  %v2026_v32 = vpop.xlane.xlu1 %2025  ;;  %2209 = vadd.xlane.f32.xlu1 %v2174_v63 }
 0x496   : > { %v2082_v60 = vmul.f32 0.03125, %v2026_v32  ;;  %2207 = vadd.xlane.f32.xlu0 %v2173_v11  ;;  %v2024_v22 = vpop.xlane.xlu0 %2023  ;;  %v6429_v39 = vsel %vm313_vm1, %v2112_v53, 0.0 }
 0x497   : > { %v2081_v14 = vmul.f32 0.03125, %v2024_v22  ;;  %v2176_v46 = vmul.f32 %v6429_v39, %v6429_v39  ;;  %v6435_v24 = vsel %vm313_vm1, %v2111_v6, 0.0 }
 0x498   : > { %v2114_v41 = vsub.f32 %v6234_v16, %v2082_v60  ;;  %v2175_v23 = vmul.f32 %v6435_v24, %v6435_v24 }
 0x499   : > { %v2113_v38 = vsub.f32 %v6237_v48, %v2081_v14  ;;  %v2030_v58 = vpop.xlane.xlu1 %2029  ;;  %2213 = vadd.xlane.f32.xlu1 %v2176_v46 }
 0x49a   : > { %v2084_v7 = vmul.f32 0.03125, %v2030_v58  ;;  %2211 = vadd.xlane.f32.xlu0 %v2175_v23  ;;  %v2028_v9 = vpop.xlane.xlu0 %2027  ;;  %v6443_v19 = vsel %vm313_vm1, %v2114_v41, 0.0 }
 0x49b   : > { %v2083_v43 = vmul.f32 0.03125, %v2028_v9  ;;  %v2178_v62 = vmul.f32 %v6443_v19, %v6443_v19  ;;  %v6449_v17 = vsel %vm313_vm1, %v2113_v38, 0.0 }
 0x49c   : > { %v2116_v13 = vsub.f32 %v6244_v18, %v2084_v7  ;;  %v2177_v34 = vmul.f32 %v6449_v17, %v6449_v17 }
 0x49d   : > { %v2115_v51 = vsub.f32 %v6247_v8, %v2083_v43  ;;  %v2034_v63 = vpop.xlane.xlu1 %2033  ;;  %2217 = vadd.xlane.f32.xlu1 %v2178_v62 }
 0x49e   : > { %v2086_v53 = vmul.f32 0.03125, %v2034_v63  ;;  %2215 = vadd.xlane.f32.xlu0 %v2177_v34  ;;  %v2032_v11 = vpop.xlane.xlu0 %2031  ;;  %v6457_v6 = vsel %vm313_vm1, %v2116_v13, 0.0 }
 0x49f   : > { %v2085_v32 = vmul.f32 0.03125, %v2032_v11  ;;  %v2180_v60 = vmul.f32 %v6457_v6, %v6457_v6  ;;  %v6463_v22 = vsel %vm313_vm1, %v2115_v51, 0.0 }
 0x4a0   : > { %v2118_v14 = vsub.f32 %v6254_v1, %v2086_v53  ;;  %v2179_v46 = vmul.f32 %v6463_v22, %v6463_v22 }
 0x4a1   : > { %v2117_v41 = vsub.f32 %v6257_v47, %v2085_v32  ;;  %v2038_v23 = vpop.xlane.xlu1 %2037  ;;  %2221 = vadd.xlane.f32.xlu1 %v2180_v60 }
 0x4a2   : > { %v2088_v38 = vmul.f32 0.03125, %v2038_v23  ;;  %2219 = vadd.xlane.f32.xlu0 %v2179_v46  ;;  %v2036_v58 = vpop.xlane.xlu0 %2035  ;;  %v6471_v7 = vsel %vm313_vm1, %v2118_v14, 0.0 }
 0x4a3   : > { %v2087_v9 = vmul.f32 0.03125, %v2036_v58  ;;  %v2182_v43 = vmul.f32 %v6471_v7, %v6471_v7  ;;  %v6477_v62 = vsel %vm313_vm1, %v2117_v41, 0.0 }
 0x4a4   : > { %v2120_v13 = vsub.f32 %v6264_v52, %v2088_v38  ;;  %v2181_v34 = vmul.f32 %v6477_v62, %v6477_v62 }
 0x4a5   : > { %v2119_v51 = vsub.f32 %v6267_v54, %v2087_v9  ;;  %v2042_v63 = vpop.xlane.xlu1 %2041  ;;  %2225 = vadd.xlane.f32.xlu1 %v2182_v43 }
 0x4a6   : > { %v2090_v53 = vmul.f32 0.03125, %v2042_v63  ;;  %2223 = vadd.xlane.f32.xlu0 %v2181_v34  ;;  %v2040_v11 = vpop.xlane.xlu0 %2039  ;;  %v6485_v32 = vsel %vm313_vm1, %v2120_v13, 0.0 }
 0x4a7   : > { %v2089_v60 = vmul.f32 0.03125, %v2040_v11  ;;  %v2184_v14 = vmul.f32 %v6485_v32, %v6485_v32  ;;  %v6491_v46 = vsel %vm313_vm1, %v2119_v51, 0.0 }
 0x4a8   : > { %v2122_v41 = vsub.f32 %v6274_v31, %v2090_v53  ;;  %v2183_v23 = vmul.f32 %v6491_v46, %v6491_v46 }
 0x4a9   : > { %v2121_v38 = vsub.f32 %v6277_v12, %v2089_v60  ;;  %v2046_v58 = vpop.xlane.xlu1 %2045  ;;  %2229 = vadd.xlane.f32.xlu1 %v2184_v14 }
 0x4aa   : > { %v2092_v9 = vmul.f32 0.03125, %v2046_v58  ;;  %2227 = vadd.xlane.f32.xlu0 %v2183_v23  ;;  %v2044_v43 = vpop.xlane.xlu0 %2043  ;;  %v6499_v13 = vsel %vm313_vm1, %v2122_v41, 0.0  ;;  %v3963_v41 = vld [vmem:[%s7573_s3 + $0xe0] sm:$0xff]  ;;  %v3964_v23 = vld [vmem:[%s7573_s3 + $0xe8] sm:$0xff] }
 0x4ab   : > { %v2091_v34 = vmul.f32 0.03125, %v2044_v43  ;;  %v2186_v51 = vmul.f32 %v6499_v13, %v6499_v13  ;;  %v6505_v63 = vsel %vm313_vm1, %v2121_v38, 0.0  ;;  %v4798_v43 = vpack.c.bf16 %v3964_v23, %v3963_v41 }
 0x4ac   : > { %v2124_v53 = vsub.f32 %v6284_v28, %v2092_v9  ;;  %v2185_v11 = vmul.f32 %v6505_v63, %v6505_v63 }
 0x4ad   : > { %v2123_v60 = vsub.f32 %v6287_v59, %v2091_v34  ;;  %v2050_v14 = vpop.xlane.xlu1 %2049  ;;  %2233 = vadd.xlane.f32.xlu1 %v2186_v51  ;;  %4799 = vmatprep.subr.bf16.mxu1 %v4798_v43 }
 0x4ae   : > { %v2094_v58 = vmul.f32 0.03125, %v2050_v14  ;;  %2231 = vadd.xlane.f32.xlu0 %v2185_v11  ;;  %v2048_v38 = vpop.xlane.xlu0 %2047  ;;  %v6519_v9 = vsel %vm313_vm1, %v2124_v53, 0.0  ;;  %v3965_v53 = vld [vmem:[%s7573_s3 + $0xf0] sm:$0xff]  ;;  %v3966_v11 = vld [vmem:[%s7573_s3 + $0xf8] sm:$0xff]  ;;  %4801 = vmatpush3.bf16.msra.mxu1 %v4798_v43 }
 0x4af   : > { %v2093_v15 = vmul.f32 0.03125, %v2048_v38  ;;  %v2188_v34 = vmul.f32 %v6519_v9, %v6519_v9  ;;  %v6525_v51 = vsel %vm313_vm1, %v2123_v60, 0.0  ;;  %v4802_v60 = vpack.c.bf16 %v3966_v11, %v3965_v53 }
 0x4b0   : > { %v2126_v40 = vsub.f32 %v6294_v10, %v2094_v58  ;;  %v2187_v14 = vmul.f32 %v6525_v51, %v6525_v51 }
 0x4b1   : > { %v2125_v41 = vsub.f32 %v6297_v29, %v2093_v15  ;;  %v2054_v23 = vpop.xlane.xlu1 %2053  ;;  %2237 = vadd.xlane.f32.xlu1 %v2188_v34  ;;  %4803 = vmatprep.subr.bf16.mxu1 %v4802_v60 }
 0x4b2   : > { %v2096_v38 = vmul.f32 0.03125, %v2054_v23  ;;  %2235 = vadd.xlane.f32.xlu0 %v2187_v14  ;;  %v2052_v58 = vpop.xlane.xlu0 %2051  ;;  %v6539_v4 = vsel %vm313_vm1, %v2126_v40, 0.0  ;;  %4805 = vmatpush3.bf16.msra.mxu1 %v4802_v60 }
 0x4b3   : > { %v2095_v0 = vmul.f32 0.03125, %v2052_v58  ;;  %v2190_v10 = vmul.f32 %v6539_v4, %v6539_v4  ;;  %v6545_v59 = vsel %vm313_vm1, %v2125_v41, 0.0 }
 0x4b4   : > { %v2128_v15 = vsub.f32 %v6304_v42, %v2096_v38  ;;  %v2189_v43 = vmul.f32 %v6545_v59, %v6545_v59 }
 0x4b5   : > { %v2127_v34 = vsub.f32 %v6307_v5, %v2095_v0  ;;  %v2058_v14 = vpop.xlane.xlu1 %2057  ;;  %2241 = vadd.xlane.f32.xlu1 %v2190_v10 }
 0x4b6   : > { %v2098_v40 = vmul.f32 0.03125, %v2058_v14  ;;  %2239 = vadd.xlane.f32.xlu0 %v2189_v43  ;;  %v2056_v53 = vpop.xlane.xlu0 %2055  ;;  %v6553_v11 = vsel %vm313_vm1, %v2128_v15, 0.0 }
 0x4b7   : > { %v2097_v41 = vmul.f32 0.03125, %v2056_v53  ;;  %v2192_v23 = vmul.f32 %v6553_v11, %v6553_v11  ;;  %v6559_v38 = vsel %vm313_vm1, %v2127_v34, 0.0 }
 0x4b8   : > { %v2130_v0 = vsub.f32 %v6314_v50, %v2098_v40  ;;  %v2191_v10 = vmul.f32 %v6559_v38, %v6559_v38 }
 0x4b9   : > { %v2129_v60 = vsub.f32 %v6317_v45, %v2097_v41  ;;  %v2062_v58 = vpop.xlane.xlu1 %2061  ;;  %2245 = vadd.xlane.f32.xlu1 %v2192_v23 }
 0x4ba   : > { %v2100_v43 = vmul.f32 0.03125, %v2062_v58  ;;  %2243 = vadd.xlane.f32.xlu0 %v2191_v10  ;;  %v2060_v15 = vpop.xlane.xlu0 %2059  ;;  %v6567_v14 = vsel %vm313_vm1, %v2130_v0, 0.0 }
 0x4bb   : > { %v2099_v53 = vmul.f32 0.03125, %v2060_v15  ;;  %v2194_v34 = vmul.f32 %v6567_v14, %v6567_v14  ;;  %v6573_v40 = vsel %vm313_vm1, %v2129_v60, 0.0 }
 0x4bc   : > { %v2132_v50 = vsub.f32 %v6324_v44, %v2100_v43  ;;  %v2193_v41 = vmul.f32 %v6573_v40, %v6573_v40 }
 0x4bd   : > { %v2131_v23 = vsub.f32 %v6327_v37, %v2099_v53  ;;  %v2066_v10 = vpop.xlane.xlu1 %2065  ;;  %2249 = vadd.xlane.f32.xlu1 %v2194_v34 }
 0x4be   : > { %v2102_v58 = vmul.f32 0.03125, %v2066_v10  ;;  %2247 = vadd.xlane.f32.xlu0 %v2193_v41  ;;  %v2064_v0 = vpop.xlane.xlu0 %2063  ;;  %v6581_v15 = vsel %vm313_vm1, %v2132_v50, 0.0 }
 0x4bf   : > { %v2101_v45 = vmul.f32 0.03125, %v2064_v0  ;;  %v2196_v60 = vmul.f32 %v6581_v15, %v6581_v15  ;;  %v6587_v43 = vsel %vm313_vm1, %v2131_v23, 0.0 }
 0x4c0   : > { %v2134_v44 = vsub.f32 %v6334_v33, %v2102_v58  ;;  %v2195_v53 = vmul.f32 %v6587_v43, %v6587_v43 }
 0x4c1   : > { %v2133_v34 = vsub.f32 %v6337_v21, %v2101_v45  ;;  %v2070_v41 = vpop.xlane.xlu1 %2069  ;;  %2253 = vadd.xlane.f32.xlu1 %v2196_v60 }
 0x4c2   : > { %v2104_v10 = vmul.f32 0.03125, %v2070_v41  ;;  %2251 = vadd.xlane.f32.xlu0 %v2195_v53  ;;  %v2068_v50 = vpop.xlane.xlu0 %2067  ;;  %v6595_v0 = vsel %vm313_vm1, %v2134_v44, 0.0 }
 0x4c3   : > { %v2103_v37 = vmul.f32 0.03125, %v2068_v50  ;;  %v2198_v23 = vmul.f32 %v6595_v0, %v6595_v0  ;;  %v6601_v58 = vsel %vm313_vm1, %v2133_v34, 0.0 }
 0x4c4   : > { %v2136_v33 = vsub.f32 %v6344_v25, %v2104_v10  ;;  %v2197_v45 = vmul.f32 %v6601_v58, %v6601_v58 }
 0x4c5   : > { %v2135_v60 = vsub.f32 %v6347_v57, %v2103_v37  ;;  %2257 = vadd.xlane.f32.xlu1 %v2198_v23  ;;  %v2074_v53 = vpop.xlane.xlu1 %2073 }
 0x4c6   : > { %v2106_v41 = vmul.f32 0.03125, %v2074_v53  ;;  %2255 = vadd.xlane.f32.xlu0 %v2197_v45  ;;  %v2072_v44 = vpop.xlane.xlu0 %2071  ;;  %v6609_v50 = vsel %vm313_vm1, %v2136_v33, 0.0 }
 0x4c7   : > { %v2105_v21 = vmul.f32 0.03125, %v2072_v44  ;;  %v2200_v34 = vmul.f32 %v6609_v50, %v6609_v50  ;;  %v6615_v10 = vsel %vm313_vm1, %v2135_v60, 0.0 }
 0x4c8   : > { %v2138_v25 = vsub.f32 %v6354_v3, %v2106_v41  ;;  %v2199_v37 = vmul.f32 %v6615_v10, %v6615_v10  ;;  %v3969_v41 = vld [vmem:[%s7574_s4 + $0x90] sm:$0xff] }
 0x4c9   : > { %v2137_v23 = vsub.f32 %v6357_v20, %v2105_v21  ;;  %2261 = vadd.xlane.f32.xlu1 %v2200_v34  ;;  %v3967_v21 = vld [vmem:[%s7574_s4 + $0x80] sm:$0xff]  ;;  %v3970_v34 = vld [vmem:[%s7574_s4 + $0x98] sm:$0xff] }
 0x4ca   : > { %v6623_v33 = vsel %vm313_vm1, %v2138_v25, 0.0  ;;  %2259 = vadd.xlane.f32.xlu0 %v2199_v37  ;;  %v3968_v25 = vld [vmem:[%s7574_s4 + $0x88] sm:$0xff]  ;;  %v4810_v37 = vpack.c.bf16 %v3970_v34, %v3969_v41  ;;  %v3975_v34 = vld [vmem:[%s7574_s4 + $0xc0] sm:$0xff] }
 0x4cb   : > { %v6627_v45 = vsel %vm313_vm1, %v2137_v23, 0.0  ;;  %v2202_v60 = vmul.f32 %v6623_v33, %v6623_v33  ;;  %v4806_v44 = vpack.c.bf16 %v3968_v25, %v3967_v21  ;;  %v3971_v23 = vld [vmem:[%s7574_s4 + $0xa0] sm:$0xff]  ;;  %v3973_v21 = vld [vmem:[%s7574_s4 + $0xb0] sm:$0xff]  ;;  %v3974_v25 = vld [vmem:[%s7574_s4 + $0xb8] sm:$0xff] }
 0x4cc   : > { %v2201_v53 = vmul.f32 %v6627_v45, %v6627_v45  ;;  %v4818_v41 = vpack.c.bf16 %v3974_v25, %v3973_v21 }
 0x4cd   : > { %2265 = vadd.xlane.f32.xlu1 %v2202_v60  ;;  %v3972_v60 = vld [vmem:[%s7574_s4 + $0xa8] sm:$0xff]  ;;  %4807 = vmatprep.subr.bf16.mxu0 %v4806_v44 }
 0x4ce   : > { %2263 = vadd.xlane.f32.xlu0 %v2201_v53  ;;  %4809 = vmatpush3.bf16.msra.mxu0 %v4806_v44  ;;  %v4814_v53 = vpack.c.bf16 %v3972_v60, %v3971_v23  ;;  %v3976_v44 = vld [vmem:[%s7574_s4 + $0xc8] sm:$0xff]  ;;  %v3977_v60 = vld [vmem:[%s7574_s4 + $0xd0] sm:$0xff] }
 0x4cf   : > { %4811 = vmatprep.subr.bf16.mxu0 %v4810_v37  ;;  %v4822_v23 = vpack.c.bf16 %v3976_v44, %v3975_v34 }
 0x4d2   : > { %4813 = vmatpush3.bf16.msra.mxu0 %v4810_v37  ;;  %v3978_v37 = vld [vmem:[%s7574_s4 + $0xd8] sm:$0xff] }
 0x4d3   : > { %4815 = vmatprep.subr.bf16.mxu0 %v4814_v53  ;;  %v4826_v21 = vpack.c.bf16 %v3978_v37, %v3977_v60 }
 0x4d6   : > { %4817 = vmatpush3.bf16.msra.mxu0 %v4814_v53 }
 0x4d7   : > { %4819 = vmatprep.subr.bf16.mxu0 %v4818_v41 }
 0x4da   : > { %4821 = vmatpush3.bf16.msra.mxu0 %v4818_v41 }
 0x4db   : > { %4823 = vmatprep.subr.bf16.mxu0 %v4822_v23 }
 0x4de   : > { %4825 = vmatpush3.bf16.msra.mxu0 %v4822_v23 }
 0x4df   : > { %4827 = vmatprep.subr.bf16.mxu0 %v4826_v21 }
 0x4e2   : > { %4829 = vmatpush3.bf16.msra.mxu0 %v4826_v21 }
 0x51e   : > { %v2206_v25 = vpop.xlane.xlu1 %2205 }
 0x51f   : > { %v2268_v55 = vmul.f32 0.03125, %v2206_v25  ;;  %v2204_v3 = vpop.xlane.xlu0 %2203 }
 0x520   : > { %v2267_v53 = vmul.f32 0.03125, %v2204_v3  ;;  %v6672_v3 = vld [vmem:[%s7575_s5 + $0x8] sm:$0xff] }
 0x521   : > { %v2300_v20 = vadd.f32 1e-05, %v2268_v55 }
 0x522   : > { %v2299_v34 = vadd.f32 1e-05, %v2267_v53  ;;  %v2210_v44 = vpop.xlane.xlu1 %2209 }
 0x523   : > { %5086 = vrsqrt.f32 %v2300_v20  ;;  %v2270_v57 = vmul.f32 0.03125, %v2210_v44  ;;  %v2208_v5 = vpop.xlane.xlu0 %2207 }
 0x524   : > { %5088 = vrsqrt.f32 %v2299_v34  ;;  %v2269_v42 = vmul.f32 0.03125, %v2208_v5 }
 0x525   : > { %v2302_v29 = vadd.f32 1e-05, %v2270_v57 }
 0x526   : > { %v2301_v28 = vadd.f32 1e-05, %v2269_v42  ;;  %v2214_v41 = vpop.xlane.xlu1 %2213  ;;  %v7704_v42 = vld [vmem:[#allocation28_spill] sm:$0xff] }
 0x527   : > { %5090 = vrsqrt.f32 %v2302_v29  ;;  %v2272_v60 = vmul.f32 0.03125, %v2214_v41  ;;  %v2212_v23 = vpop.xlane.xlu0 %2211  ;;  %v6676_v29 = vrot.slane %v6672_v3, %v7704_v42 }
 0x528   : > { %5092 = vrsqrt.f32 %v2301_v28  ;;  %v2271_v37 = vmul.f32 0.03125, %v2212_v23 }
 0x529   : > { %v2304_v21 = vadd.f32 1e-05, %v2272_v60 }
 0x52a   : > { %v2303_v55 = vadd.f32 1e-05, %v2271_v37  ;;  %v2218_v20 = vpop.xlane.xlu1 %2217 }
 0x52b   : > { %5094 = vrsqrt.f32 %v2304_v21  ;;  %v2274_v25 = vmul.f32 0.03125, %v2218_v20  ;;  %v2216_v53 = vpop.xlane.xlu0 %2215  ;;  %v7705_v20 = vsub.s32 3, %v5423_v35 }
 0x52c   : > { %5096 = vrsqrt.f32 %v2303_v55  ;;  %v2273_v5 = vmul.f32 0.03125, %v2216_v53 }
 0x52d   : > { %v5087_v57 = vpop.eup %5086  ;;  %v2306_v28 = vadd.f32 1e-05, %v2274_v25  ;;  %v6683_v55 = vrot.slane %v6672_v3, %v7705_v20 }
 0x52e   : > { %v5089_v34 = vpop.eup %5088  ;;  %v2364_v44 = vmul.f32 %v5087_v57, %v6401_v27  ;;  %v2305_v41 = vadd.f32 1e-05, %v2273_v5  ;;  %v2222_v60 = vpop.xlane.xlu1 %2221 }
 0x52f   : > { %5098 = vrsqrt.f32 %v2306_v28  ;;  %v2276_v23 = vmul.f32 0.03125, %v2222_v60  ;;  %v2220_v37 = vpop.xlane.xlu0 %2219  ;;  %v2363_v21 = vmul.f32 %v5089_v34, %v6407_v56 }
 0x530   : > { %5100 = vrsqrt.f32 %v2305_v41  ;;  %v2275_v53 = vmul.f32 0.03125, %v2220_v37  ;;  %v2400_v42 = vmul.f32 %v6676_v29, %v2364_v44 }
 0x531   : > { %v5091_v25 = vpop.eup %5090  ;;  %v2308_v12 = vadd.f32 1e-05, %v2276_v23  ;;  %v2399_v27 = vmul.f32 %v6676_v29, %v2363_v21 }
 0x532   : > { %v5093_v5 = vpop.eup %5092  ;;  %v2307_v57 = vadd.f32 1e-05, %v2275_v53  ;;  %v2226_v28 = vpop.xlane.xlu1 %2225  ;;  %v2366_v60 = vmul.f32 %v5091_v25, %v6415_v61  ;;  %v2436_v44 = vadd.f32 %v6683_v55, %v2400_v42 }
 0x533   : > { %5102 = vrsqrt.f32 %v2308_v12  ;;  %v2278_v56 = vmul.f32 0.03125, %v2226_v28  ;;  %v2224_v34 = vpop.xlane.xlu0 %2223  ;;  %v2435_v35 = vadd.f32 %v6683_v55, %v2399_v27  ;;  %v2365_v20 = vmul.f32 %v5093_v5, %v6421_v49 }
 0x534   : > { %5104 = vrsqrt.f32 %v2307_v57  ;;  %v2277_v41 = vmul.f32 0.03125, %v2224_v34  ;;  %v2402_v23 = vmul.f32 %v6676_v29, %v2366_v60 }
 0x535   : > { %v5095_v37 = vpop.eup %5094  ;;  %v2310_v21 = vadd.f32 1e-05, %v2278_v56  ;;  %4502 = vmatprep.mubr.f32.mxu1 %v2435_v35  ;;  %v2401_v53 = vmul.f32 %v6676_v29, %v2365_v20 }
 0x536   : > { %v5097_v31 = vpop.eup %5096  ;;  %v2309_v61 = vadd.f32 1e-05, %v2277_v41  ;;  %v2230_v12 = vpop.xlane.xlu1 %2229  ;;  %4503 = vmatmul.mubr.f32.vlgmr.msra.gmra.mrb[32].mxu1 %v2436_v44  ;;  %v2368_v25 = vmul.f32 %v5095_v37, %v6429_v39  ;;  %v2438_v28 = vadd.f32 %v6683_v55, %v2402_v23 }
 0x537   : > { %5106 = vrsqrt.f32 %v2310_v21  ;;  %v2280_v27 = vmul.f32 0.03125, %v2230_v12  ;;  %v2228_v49 = vpop.xlane.xlu0 %2227  ;;  %v2437_v5 = vadd.f32 %v6683_v55, %v2401_v53  ;;  %v2367_v42 = vmul.f32 %v5097_v31, %v6435_v24 }
 0x538   : > { %5108 = vrsqrt.f32 %v2309_v61  ;;  %v2279_v57 = vmul.f32 0.03125, %v2228_v49  ;;  %v2404_v60 = vmul.f32 %v6676_v29, %v2368_v25 }
 0x539   : > { %v5099_v56 = vpop.eup %5098  ;;  %v2312_v34 = vadd.f32 1e-05, %v2280_v27  ;;  %4505 = vmatprep.mubr.f32.mxu1 %v2437_v5  ;;  %v2403_v35 = vmul.f32 %v6676_v29, %v2367_v42 }
 0x53a   : > { %v5101_v20 = vpop.eup %5100  ;;  %v2311_v39 = vadd.f32 1e-05, %v2279_v57  ;;  %v2234_v41 = vpop.xlane.xlu1 %2233  ;;  %4506 = vmatmul.mubr.f32.gmra.mrb[34].mxu1 %v2438_v28  ;;  %v2370_v44 = vmul.f32 %v5099_v56, %v6443_v19  ;;  %v2440_v53 = vadd.f32 %v6683_v55, %v2404_v60 }
 0x53b   : > { %5110 = vrsqrt.f32 %v2312_v34  ;;  %v2282_v37 = vmul.f32 0.03125, %v2234_v41  ;;  %v2232_v31 = vpop.xlane.xlu0 %2231  ;;  %v2439_v24 = vadd.f32 %v6683_v55, %v2403_v35  ;;  %v2369_v23 = vmul.f32 %v5101_v20, %v6449_v17 }
 0x53c   : > { %5112 = vrsqrt.f32 %v2311_v39  ;;  %v2281_v21 = vmul.f32 0.03125, %v2232_v31  ;;  %v2406_v61 = vmul.f32 %v6676_v29, %v2370_v44 }
 0x53d   : > { %v5103_v12 = vpop.eup %5102  ;;  %v2314_v25 = vadd.f32 1e-05, %v2282_v37  ;;  %4508 = vmatprep.mubr.f32.mxu1 %v2439_v24  ;;  %v2405_v27 = vmul.f32 %v6676_v29, %v2369_v23 }
 0x53e   : > { %v5105_v49 = vpop.eup %5104  ;;  %v2313_v19 = vadd.f32 1e-05, %v2281_v21  ;;  %v2238_v5 = vpop.xlane.xlu1 %2237  ;;  %4509 = vmatmul.mubr.f32.gmra.mrb[36].mxu1 %v2440_v53  ;;  %v2372_v42 = vmul.f32 %v5103_v12, %v6457_v6  ;;  %v2442_v34 = vadd.f32 %v6683_v55, %v2406_v61 }
 0x53f   : > { %5114 = vrsqrt.f32 %v2314_v25  ;;  %v2284_v57 = vmul.f32 0.03125, %v2238_v5  ;;  %v2236_v17 = vpop.xlane.xlu0 %2235  ;;  %v2441_v28 = vadd.f32 %v6683_v55, %v2405_v27  ;;  %v2371_v60 = vmul.f32 %v5105_v49, %v6463_v22 }
 0x540   : > { %5116 = vrsqrt.f32 %v2313_v19  ;;  %v2283_v56 = vmul.f32 0.03125, %v2236_v17  ;;  %v2408_v35 = vmul.f32 %v6676_v29, %v2372_v42 }
 0x541   : > { %v5107_v20 = vpop.eup %5106  ;;  %v2316_v39 = vadd.f32 1e-05, %v2284_v57  ;;  %4511 = vmatprep.mubr.f32.mxu1 %v2441_v28  ;;  %v2407_v41 = vmul.f32 %v6676_v29, %v2371_v60 }
 0x542   : > { %v5109_v44 = vpop.eup %5108  ;;  %v2315_v6 = vadd.f32 1e-05, %v2283_v56  ;;  %v2242_v37 = vpop.xlane.xlu1 %2241  ;;  %4512 = vmatmul.mubr.f32.gmra.mrb[38].mxu1 %v2442_v34  ;;  %v2374_v31 = vmul.f32 %v5107_v20, %v6471_v7  ;;  %v2444_v61 = vadd.f32 %v6683_v55, %v2408_v35 }
 0x543   : > { %5118 = vrsqrt.f32 %v2316_v39  ;;  %v2286_v24 = vmul.f32 0.03125, %v2242_v37  ;;  %v2240_v22 = vpop.xlane.xlu0 %2239  ;;  %v2443_v23 = vadd.f32 %v6683_v55, %v2407_v41  ;;  %v2373_v21 = vmul.f32 %v5109_v44, %v6477_v62 }
 0x544   : > { %5120 = vrsqrt.f32 %v2315_v6  ;;  %v2285_v53 = vmul.f32 0.03125, %v2240_v22  ;;  %v2410_v12 = vmul.f32 %v6676_v29, %v2374_v31 }
 0x545   : > { %v5111_v25 = vpop.eup %5110  ;;  %v2318_v27 = vadd.f32 1e-05, %v2286_v24  ;;  %4514 = vmatprep.mubr.f32.mxu1 %v2443_v23  ;;  %v2409_v49 = vmul.f32 %v6676_v29, %v2373_v21 }
 0x546   : > { %v5113_v19 = vpop.eup %5112  ;;  %v2317_v7 = vadd.f32 1e-05, %v2285_v53  ;;  %v2246_v5 = vpop.xlane.xlu1 %2245  ;;  %4515 = vmatmul.mubr.f32.gmra.mrb[40].mxu1 %v2444_v61  ;;  %v2376_v42 = vmul.f32 %v5111_v25, %v6485_v32  ;;  %v2446_v56 = vadd.f32 %v6683_v55, %v2410_v12 }
 0x547   : > { %5122 = vrsqrt.f32 %v2318_v27  ;;  %v2288_v57 = vmul.f32 0.03125, %v2246_v5  ;;  %v2244_v62 = vpop.xlane.xlu0 %2243  ;;  %v2445_v17 = vadd.f32 %v6683_v55, %v2409_v49  ;;  %v2375_v28 = vmul.f32 %v5113_v19, %v6491_v46 }
 0x548   : > { %5124 = vrsqrt.f32 %v2317_v7  ;;  %v2287_v60 = vmul.f32 0.03125, %v2244_v62  ;;  %v2412_v34 = vmul.f32 %v6676_v29, %v2376_v42 }
 0x549   : > { %v5115_v35 = vpop.eup %5114  ;;  %v2320_v20 = vadd.f32 1e-05, %v2288_v57  ;;  %4517 = vmatprep.mubr.f32.mxu1 %v2445_v17  ;;  %v2411_v39 = vmul.f32 %v6676_v29, %v2375_v28 }
 0x54a   : > { %v5117_v41 = vpop.eup %5116  ;;  %v2319_v32 = vadd.f32 1e-05, %v2287_v60  ;;  %v2250_v44 = vpop.xlane.xlu1 %2249  ;;  %4518 = vmatmul.mubr.f32.gmra.mrb[42].mxu1 %v2446_v56  ;;  %v2378_v6 = vmul.f32 %v5115_v35, %v6499_v13  ;;  %v2448_v23 = vadd.f32 %v6683_v55, %v2412_v34 }
 0x54b   : > { %5126 = vrsqrt.f32 %v2320_v20  ;;  %v2290_v37 = vmul.f32 0.03125, %v2250_v44  ;;  %v2248_v46 = vpop.xlane.xlu0 %2247  ;;  %v2447_v31 = vadd.f32 %v6683_v55, %v2411_v39  ;;  %v2377_v24 = vmul.f32 %v5117_v41, %v6505_v63 }
 0x54c   : > { %5128 = vrsqrt.f32 %v2319_v32  ;;  %v2289_v22 = vmul.f32 0.03125, %v2248_v46  ;;  %v2414_v21 = vmul.f32 %v6676_v29, %v2378_v6 }
 0x54d   : > { %v5119_v53 = vpop.eup %5118  ;;  %v2322_v61 = vadd.f32 1e-05, %v2290_v37  ;;  %4520 = vmatprep.mubr.f32.mxu1 %v2447_v31  ;;  %v2413_v12 = vmul.f32 %v6676_v29, %v2377_v24 }
 0x54e   : > { %v5121_v25 = vpop.eup %5120  ;;  %v2321_v13 = vadd.f32 1e-05, %v2289_v22  ;;  %v2254_v27 = vpop.xlane.xlu1 %2253  ;;  %4521 = vmatmul.mubr.f32.gmra.mrb[44].mxu1 %v2448_v23  ;;  %v2380_v49 = vmul.f32 %v5119_v53, %v6519_v9  ;;  %v2450_v57 = vadd.f32 %v6683_v55, %v2414_v21 }
 0x54f   : > { %5130 = vrsqrt.f32 %v2322_v61  ;;  %v2292_v19 = vmul.f32 0.03125, %v2254_v27  ;;  %v2252_v63 = vpop.xlane.xlu0 %2251  ;;  %v2449_v7 = vadd.f32 %v6683_v55, %v2413_v12  ;;  %v2379_v5 = vmul.f32 %v5121_v25, %v6525_v51 }
 0x550   : > { %5132 = vrsqrt.f32 %v2321_v13  ;;  %v2291_v42 = vmul.f32 0.03125, %v2252_v63  ;;  %v2416_v62 = vmul.f32 %v6676_v29, %v2380_v49 }
 0x551   : > { %v5123_v17 = vpop.eup %5122  ;;  %v2324_v28 = vadd.f32 1e-05, %v2292_v19  ;;  %4523 = vmatprep.mubr.f32.mxu1 %v2449_v7  ;;  %v2415_v60 = vmul.f32 %v6676_v29, %v2379_v5 }
 0x552   : > { %v5125_v56 = vpop.eup %5124  ;;  %v2323_v9 = vadd.f32 1e-05, %v2291_v42  ;;  %v2258_v34 = vpop.xlane.xlu1 %2257  ;;  %4524 = vmatmul.mubr.f32.gmra.mrb[46].mxu1 %v2450_v57  ;;  %v2382_v35 = vmul.f32 %v5123_v17, %v6539_v4  ;;  %v2452_v44 = vadd.f32 %v6683_v55, %v2416_v62 }
 0x553   : > { %5134 = vrsqrt.f32 %v2324_v28  ;;  %v2294_v20 = vmul.f32 0.03125, %v2258_v34  ;;  %v2256_v51 = vpop.xlane.xlu0 %2255  ;;  %v2451_v39 = vadd.f32 %v6683_v55, %v2415_v60  ;;  %v2381_v41 = vmul.f32 %v5125_v56, %v6545_v59 }
 0x554   : > { %5136 = vrsqrt.f32 %v2323_v9  ;;  %v2293_v32 = vmul.f32 0.03125, %v2256_v51  ;;  %v2418_v6 = vmul.f32 %v6676_v29, %v2382_v35 }
 0x555   : > { %v5127_v37 = vpop.eup %5126  ;;  %v2326_v46 = vadd.f32 1e-05, %v2294_v20  ;;  %4526 = vmatprep.mubr.f32.mxu1 %v2451_v39  ;;  %v2417_v31 = vmul.f32 %v6676_v29, %v2381_v41 }
 0x556   : > { %v5129_v24 = vpop.eup %5128  ;;  %v2325_v4 = vadd.f32 1e-05, %v2293_v32  ;;  %v2262_v22 = vpop.xlane.xlu1 %2261  ;;  %4527 = vmatmul.mubr.f32.gmra.mrb[48].mxu1 %v2452_v44  ;;  %v2384_v23 = vmul.f32 %v5127_v37, %v6553_v11  ;;  %v2454_v25 = vadd.f32 %v6683_v55, %v2418_v6 }
 0x557   : > { %5138 = vrsqrt.f32 %v2326_v46  ;;  %v2296_v21 = vmul.f32 0.03125, %v2262_v22  ;;  %v2260_v59 = vpop.xlane.xlu0 %2259  ;;  %v2453_v53 = vadd.f32 %v6683_v55, %v2417_v31  ;;  %v2383_v61 = vmul.f32 %v5129_v24, %v6559_v38 }
 0x558   : > { %5140 = vrsqrt.f32 %v2325_v4  ;;  %v2295_v12 = vmul.f32 0.03125, %v2260_v59  ;;  %v2420_v13 = vmul.f32 %v6676_v29, %v2384_v23 }
 0x559   : > { %v5131_v27 = vpop.eup %5130  ;;  %v2328_v49 = vadd.f32 1e-05, %v2296_v21  ;;  %4529 = vmatprep.mubr.f32.mxu1 %v2453_v53  ;;  %v2419_v19 = vmul.f32 %v6676_v29, %v2383_v61 }
 0x55a   : > { %v5133_v63 = vpop.eup %5132  ;;  %v2327_v11 = vadd.f32 1e-05, %v2295_v12  ;;  %v2266_v7 = vpop.xlane.xlu1 %2265  ;;  %4530 = vmatmul.mubr.f32.gmra.mrb[50].mxu1 %v2454_v25  ;;  %v2386_v5 = vmul.f32 %v5131_v27, %v6567_v14  ;;  %v2456_v28 = vadd.f32 %v6683_v55, %v2420_v13 }
 0x55b   : > { %5142 = vrsqrt.f32 %v2328_v49  ;;  %v2298_v42 = vmul.f32 0.03125, %v2266_v7  ;;  %v2264_v38 = vpop.xlane.xlu0 %2263  ;;  %v2455_v57 = vadd.f32 %v6683_v55, %v2419_v19  ;;  %v2385_v62 = vmul.f32 %v5133_v63, %v6573_v40 }
 0x55c   : > { %5144 = vrsqrt.f32 %v2327_v11  ;;  %v2297_v17 = vmul.f32 0.03125, %v2264_v38  ;;  %v2422_v60 = vmul.f32 %v6676_v29, %v2386_v5  ;;  %v6793_v5 = vrot.slane %v6672_v3, %v5426_v36 }
 0x55d   : > { %v5135_v56 = vpop.eup %5134  ;;  %v2330_v9 = vadd.f32 1e-05, %v2298_v42  ;;  %4532 = vmatprep.mubr.f32.mxu1 %v2455_v57  ;;  %v2421_v34 = vmul.f32 %v6676_v29, %v2385_v62 }
 0x55e   : > { %v5137_v35 = vpop.eup %5136  ;;  %v2329_v14 = vadd.f32 1e-05, %v2297_v17  ;;  %4533 = vmatmul.mubr.f32.gmra.mrb[52].mxu1 %v2456_v28  ;;  %v2388_v20 = vmul.f32 %v5135_v56, %v6581_v15  ;;  %v2458_v39 = vadd.f32 %v6683_v55, %v2422_v60 }
 0x55f   : > { %5146 = vrsqrt.f32 %v2330_v9  ;;  %v2457_v51 = vadd.f32 %v6683_v55, %v2421_v34  ;;  %v2387_v40 = vmul.f32 %v5137_v35, %v6587_v43 }
 0x560   : > { %5148 = vrsqrt.f32 %v2329_v14  ;;  %v2424_v41 = vmul.f32 %v6676_v29, %v2388_v20 }
 0x561   : > { %v5139_v32 = vpop.eup %5138  ;;  %4535 = vmatprep.mubr.f32.mxu1 %v2457_v51  ;;  %v2423_v44 = vmul.f32 %v6676_v29, %v2387_v40 }
 0x562   : > { %v5141_v6 = vpop.eup %5140  ;;  %4536 = vmatmul.mubr.f32.gmra.mrb[54].mxu1 %v2458_v39  ;;  %v2390_v37 = vmul.f32 %v5139_v32, %v6595_v0  ;;  %v2460_v31 = vadd.f32 %v6683_v55, %v2424_v41 }
 0x563   : > { %v2459_v15 = vadd.f32 %v6683_v55, %v2423_v44  ;;  %v2389_v46 = vmul.f32 %v5141_v6, %v6601_v58 }
 0x564   : > { %v2426_v43 = vmul.f32 %v6676_v29, %v2390_v37 }
 0x565   : > { %v5143_v24 = vpop.eup %5142  ;;  %4538 = vmatprep.mubr.f32.mxu1 %v2459_v15  ;;  %v2425_v4 = vmul.f32 %v6676_v29, %v2389_v46 }
 0x566   : > { %v5145_v22 = vpop.eup %5144  ;;  %4539 = vmatmul.mubr.f32.gmra.mrb[56].mxu1 %v2460_v31  ;;  %v2392_v23 = vmul.f32 %v5143_v24, %v6609_v50  ;;  %v2462_v59 = vadd.f32 %v6683_v55, %v2426_v43 }
 0x567   : > { %v2461_v21 = vadd.f32 %v6683_v55, %v2425_v4  ;;  %v2391_v0 = vmul.f32 %v5145_v22, %v6615_v10 }
 0x568   : > { %v2428_v58 = vmul.f32 %v6676_v29, %v2392_v23 }
 0x569   : > { %v5147_v53 = vpop.eup %5146  ;;  %4541 = vmatprep.mubr.f32.mxu1 %v2461_v21  ;;  %v2427_v61 = vmul.f32 %v6676_v29, %v2391_v0 }
 0x56a   : > { %v5149_v12 = vpop.eup %5148  ;;  %4542 = vmatmul.mubr.f32.gmra.mrb[58].mxu1 %v2462_v59  ;;  %v2394_v25 = vmul.f32 %v5147_v53, %v6623_v33  ;;  %v2464_v27 = vadd.f32 %v6683_v55, %v2428_v58  ;;  %v3979_v33 = vld [vmem:[%s7574_s4 + $0xe0] sm:$0xff] }
 0x56b   : > { %v2463_v13 = vadd.f32 %v6683_v55, %v2427_v61  ;;  %v2393_v50 = vmul.f32 %v5149_v12, %v6627_v45  ;;  %v3980_v45 = vld [vmem:[%s7574_s4 + $0xe8] sm:$0xff] }
 0x56c   : > { %v2430_v10 = vmul.f32 %v6676_v29, %v2394_v25  ;;  %v4830_v11 = vpack.c.bf16 %v3980_v45, %v3979_v33 }
 0x56d   : > { %4544 = vmatprep.mubr.f32.mxu1 %v2463_v13  ;;  %v2429_v49 = vmul.f32 %v6676_v29, %v2393_v50  ;;  %v3981_v29 = vld [vmem:[%s7574_s4 + $0xf0] sm:$0xff] }
 0x56e   : > { %4545 = vmatmul.mubr.f32.gmra.mrb[60].mxu1 %v2464_v27  ;;  %v2466_v63 = vadd.f32 %v6683_v55, %v2430_v10  ;;  %4831 = vmatprep.subr.bf16.mxu0 %v4830_v11 }
 0x56f   : > { %v2465_v19 = vadd.f32 %v6683_v55, %v2429_v49  ;;  %4833 = vmatpush3.bf16.msra.mxu0 %v4830_v11  ;;  %v3982_v55 = vld [vmem:[%s7574_s4 + $0xf8] sm:$0xff] }
 0x570   : > { %v4834_v7 = vpack.c.bf16 %v3982_v55, %v3981_v29 }
 0x571   : > { %4547 = vmatprep.mubr.f32.mxu1 %v2465_v19 }
 0x572   : > { %4548 = vmatmul.mubr.f32.gmra.mrb[62].mxu1 %v2466_v63  ;;  %4835 = vmatprep.subr.bf16.mxu0 %v4834_v7 }
 0x573   : > { %4837 = vmatpush3.bf16.msra.mxu0 %v4834_v7 }
 0x609   : > { %v4504_v42 = vpop.f32.mrb[32].mxu1 }
 0x60a   : > { %v2543_v38 = vadd.f32 %v4504_v42, %v6793_v5  ;;  %v2537_v57 = vpop.f32.mrb[33].mxu1 }
 0x60b   : > { %v2538_v62 = vadd.f32 %v2537_v57, %v6793_v5 }
 0x60c   : > { %v2729_v17 = vmul.f32 0.70710677, %v2543_v38  ;;  %v2697_v0 = vmul.f32 0.5, %v2543_v38 }
 0x60d   : > { %v2728_v28 = vmul.f32 0.70710677, %v2538_v62  ;;  %v4507_v60 = vpop.f32.mrb[34].mxu1  ;;  %v2696_v4 = vmul.f32 0.5, %v2538_v62 }
 0x60e   : > { %5150 = verf.f32 %v2729_v17  ;;  %v2553_v56 = vadd.f32 %v4507_v60, %v6793_v5  ;;  %v2547_v9 = vpop.f32.mrb[35].mxu1 }
 0x60f   : > { %5152 = verf.f32 %v2728_v28  ;;  %v2548_v34 = vadd.f32 %v2547_v9, %v6793_v5 }
 0x610   : > { %v2731_v35 = vmul.f32 0.70710677, %v2553_v56  ;;  %v2699_v33 = vmul.f32 0.5, %v2553_v56 }
 0x611   : > { %v2730_v14 = vmul.f32 0.70710677, %v2548_v34  ;;  %v4510_v36 = vpop.f32.mrb[36].mxu1  ;;  %v2698_v10 = vmul.f32 0.5, %v2548_v34 }
 0x612   : > { %5154 = verf.f32 %v2731_v35  ;;  %v2563_v3 = vadd.f32 %v4510_v36, %v6793_v5  ;;  %v2557_v20 = vpop.f32.mrb[37].mxu1 }
 0x613   : > { %5156 = verf.f32 %v2730_v14  ;;  %v2558_v51 = vadd.f32 %v2557_v20, %v6793_v5 }
 0x614   : > { %v2733_v40 = vmul.f32 0.70710677, %v2563_v3  ;;  %v2701_v9 = vmul.f32 0.5, %v2563_v3 }
 0x615   : > { %v2732_v39 = vmul.f32 0.70710677, %v2558_v51  ;;  %v4513_v41 = vpop.f32.mrb[38].mxu1  ;;  %v2700_v17 = vmul.f32 0.5, %v2558_v51 }
 0x616   : > { %5158 = verf.f32 %v2733_v40  ;;  %v6802_v32 = vadd.f32 %v4513_v41, %v6793_v5  ;;  %v2567_v44 = vpop.f32.mrb[39].mxu1 }
 0x617   : > { %5160 = verf.f32 %v2732_v39  ;;  %v2568_v6 = vadd.f32 %v2567_v44, %v6793_v5 }
 0x618   : > { %v5151_v37 = vpop.eup %5150  ;;  %v2735_v15 = vmul.f32 0.70710677, %v6802_v32 }
 0x619   : > { %v5153_v46 = vpop.eup %5152  ;;  %v2793_v31 = vadd.f32 1.0, %v5151_v37  ;;  %v2734_v43 = vmul.f32 0.70710677, %v2568_v6  ;;  %v4516_v24 = vpop.f32.mrb[40].mxu1  ;;  %v2702_v44 = vmul.f32 0.5, %v2568_v6 }
 0x61a   : > { %v2792_v22 = vadd.f32 1.0, %v5153_v46  ;;  %5162 = verf.f32 %v2735_v15  ;;  %v6807_v23 = vadd.f32 %v4516_v24, %v6793_v5  ;;  %v2577_v21 = vpop.f32.mrb[41].mxu1  ;;  %v2703_v46 = vmul.f32 0.5, %v6802_v32 }
 0x61b   : > { %5164 = verf.f32 %v2734_v43  ;;  %v6810_v59 = vadd.f32 %v2577_v21, %v6793_v5  ;;  %v2825_v25 = vmul.f32 %v2793_v31, %v2697_v0 }
 0x61c   : > { %v5155_v58 = vpop.eup %5154  ;;  %v2737_v53 = vmul.f32 0.70710677, %v6807_v23  ;;  %v2824_v61 = vmul.f32 %v2792_v22, %v2696_v4 }
 0x61d   : > { %v5157_v12 = vpop.eup %5156  ;;  %v2795_v13 = vadd.f32 1.0, %v5155_v58  ;;  %v2736_v50 = vmul.f32 0.70710677, %v6810_v59  ;;  %v4519_v27 = vpop.f32.mrb[42].mxu1 }
 0x61e   : > { %v2794_v49 = vadd.f32 1.0, %v5157_v12  ;;  %5166 = verf.f32 %v2737_v53  ;;  %v6815_v19 = vadd.f32 %v4519_v27, %v6793_v5  ;;  %v2587_v63 = vpop.f32.mrb[43].mxu1  ;;  %4582 = vmatprep.mubr.f32.mxu0 %v2824_v61  ;;  %v2704_v53 = vmul.f32 0.5, %v6810_v59 }
 0x61f   : > { %5168 = verf.f32 %v2736_v50  ;;  %v6818_v45 = vadd.f32 %v2587_v63, %v6793_v5  ;;  %4583 = vmatmul.mubr.f32.vlgmr.msra.gmra.mrb[64].mxu0 %v2825_v25  ;;  %v2827_v62 = vmul.f32 %v2795_v13, %v2699_v33  ;;  %v2705_v25 = vmul.f32 0.5, %v6807_v23 }
 0x620   : > { %v5159_v11 = vpop.eup %5158  ;;  %v2739_v29 = vmul.f32 0.70710677, %v6815_v19  ;;  %v2826_v55 = vmul.f32 %v2794_v49, %v2698_v10 }
 0x621   : > { %v5161_v7 = vpop.eup %5160  ;;  %v2797_v42 = vadd.f32 1.0, %v5159_v11  ;;  %v2738_v38 = vmul.f32 0.70710677, %v6818_v45  ;;  %v4522_v57 = vpop.f32.mrb[44].mxu1 }
 0x622   : > { %v2796_v28 = vadd.f32 1.0, %v5161_v7  ;;  %5170 = verf.f32 %v2739_v29  ;;  %v6823_v60 = vadd.f32 %v4522_v57, %v6793_v5  ;;  %v2597_v56 = vpop.f32.mrb[45].mxu1  ;;  %4585 = vmatprep.mubr.f32.mxu0 %v2826_v55  ;;  %v2706_v29 = vmul.f32 0.5, %v6818_v45 }
 0x623   : > { %5172 = verf.f32 %v2738_v38  ;;  %v6826_v34 = vadd.f32 %v2597_v56, %v6793_v5  ;;  %4586 = vmatmul.mubr.f32.gmra.mrb[66].mxu0 %v2827_v62  ;;  %v2829_v41 = vmul.f32 %v2797_v42, %v2701_v9  ;;  %v2707_v42 = vmul.f32 0.5, %v6815_v19 }
 0x624   : > { %v5163_v35 = vpop.eup %5162  ;;  %v2741_v14 = vmul.f32 0.70710677, %v6823_v60  ;;  %v2828_v36 = vmul.f32 %v2796_v28, %v2700_v17 }
 0x625   : > { %v5165_v20 = vpop.eup %5164  ;;  %v2799_v40 = vadd.f32 1.0, %v5163_v35  ;;  %v2740_v51 = vmul.f32 0.70710677, %v6826_v34  ;;  %v4525_v39 = vpop.f32.mrb[46].mxu1 }
 0x626   : > { %v2798_v37 = vadd.f32 1.0, %v5165_v20  ;;  %5174 = verf.f32 %v2741_v14  ;;  %v6831_v3 = vadd.f32 %v4525_v39, %v6793_v5  ;;  %v2607_v15 = vpop.f32.mrb[47].mxu1  ;;  %4588 = vmatprep.mubr.f32.mxu0 %v2828_v36  ;;  %v2708_v14 = vmul.f32 0.5, %v6826_v34 }
 0x627   : > { %5176 = verf.f32 %v2740_v51  ;;  %v6835_v31 = vadd.f32 %v2607_v15, %v6793_v5  ;;  %4589 = vmatmul.mubr.f32.gmra.mrb[68].mxu0 %v2829_v41  ;;  %v2831_v58 = vmul.f32 %v2799_v40, %v2703_v46  ;;  %v2709_v40 = vmul.f32 0.5, %v6823_v60 }
 0x628   : > { %v5167_v43 = vpop.eup %5166  ;;  %v2743_v24 = vmul.f32 0.70710677, %v6831_v3  ;;  %v2830_v4 = vmul.f32 %v2798_v37, %v2702_v44 }
 0x629   : > { %v5169_v22 = vpop.eup %5168  ;;  %v2801_v6 = vadd.f32 1.0, %v5167_v43  ;;  %v2742_v21 = vmul.f32 0.70710677, %v6835_v31  ;;  %v4528_v0 = vpop.f32.mrb[48].mxu1 }
 0x62a   : > { %v2800_v61 = vadd.f32 1.0, %v5169_v22  ;;  %5178 = verf.f32 %v2743_v24  ;;  %v6841_v32 = vadd.f32 %v4528_v0, %v6793_v5  ;;  %v2617_v12 = vpop.f32.mrb[49].mxu1  ;;  %4591 = vmatprep.mubr.f32.mxu0 %v2830_v4  ;;  %v2710_v24 = vmul.f32 0.5, %v6835_v31 }
 0x62b   : > { %5180 = verf.f32 %v2742_v21  ;;  %v6845_v13 = vadd.f32 %v2617_v12, %v6793_v5  ;;  %4592 = vmatmul.mubr.f32.gmra.mrb[70].mxu0 %v2831_v58  ;;  %v2833_v11 = vmul.f32 %v2801_v6, %v2705_v25  ;;  %v2711_v6 = vmul.f32 0.5, %v6831_v3 }
 0x62c   : > { %v5171_v50 = vpop.eup %5170  ;;  %v2745_v27 = vmul.f32 0.70710677, %v6841_v32  ;;  %v2832_v10 = vmul.f32 %v2800_v61, %v2704_v53 }
 0x62d   : > { %v5173_v49 = vpop.eup %5172  ;;  %v2803_v59 = vadd.f32 1.0, %v5171_v50  ;;  %v2744_v63 = vmul.f32 0.70710677, %v6845_v13  ;;  %v4531_v33 = vpop.f32.mrb[50].mxu1 }
 0x62e   : > { %v2802_v55 = vadd.f32 1.0, %v5173_v49  ;;  %5182 = verf.f32 %v2745_v27  ;;  %v6851_v23 = vadd.f32 %v4531_v33, %v6793_v5  ;;  %v2627_v7 = vpop.f32.mrb[51].mxu1  ;;  %4594 = vmatprep.mubr.f32.mxu0 %v2832_v10  ;;  %v2712_v27 = vmul.f32 0.5, %v6845_v13 }
 0x62f   : > { %5184 = verf.f32 %v2744_v63  ;;  %v6855_v38 = vadd.f32 %v2627_v7, %v6793_v5  ;;  %4595 = vmatmul.mubr.f32.gmra.mrb[72].mxu0 %v2833_v11  ;;  %v2835_v35 = vmul.f32 %v2803_v59, %v2707_v42  ;;  %v2713_v59 = vmul.f32 0.5, %v6841_v32 }
 0x630   : > { %v5175_v57 = vpop.eup %5174  ;;  %v2747_v62 = vmul.f32 0.70710677, %v6851_v23  ;;  %v2834_v17 = vmul.f32 %v2802_v55, %v2706_v29 }
 0x631   : > { %v5177_v28 = vpop.eup %5176  ;;  %v2805_v45 = vadd.f32 1.0, %v5175_v57  ;;  %v2746_v56 = vmul.f32 0.70710677, %v6855_v38  ;;  %v4534_v9 = vpop.f32.mrb[52].mxu1 }
 0x632   : > { %v2804_v36 = vadd.f32 1.0, %v5177_v28  ;;  %5186 = verf.f32 %v2747_v62  ;;  %v6861_v19 = vadd.f32 %v4534_v9, %v6793_v5  ;;  %v2637_v20 = vpop.f32.mrb[53].mxu1  ;;  %4597 = vmatprep.mubr.f32.mxu0 %v2834_v17  ;;  %v2714_v62 = vmul.f32 0.5, %v6855_v38 }
 0x633   : > { %5188 = verf.f32 %v2746_v56  ;;  %v6865_v51 = vadd.f32 %v2637_v20, %v6793_v5  ;;  %4598 = vmatmul.mubr.f32.gmra.mrb[74].mxu0 %v2835_v35  ;;  %v2837_v43 = vmul.f32 %v2805_v45, %v2709_v40  ;;  %v2715_v45 = vmul.f32 0.5, %v6851_v23 }
 0x634   : > { %v5179_v39 = vpop.eup %5178  ;;  %v2749_v41 = vmul.f32 0.70710677, %v6861_v19  ;;  %v2836_v44 = vmul.f32 %v2804_v36, %v2708_v14 }
 0x635   : > { %v5181_v37 = vpop.eup %5180  ;;  %v2807_v34 = vadd.f32 1.0, %v5179_v39  ;;  %v2748_v15 = vmul.f32 0.70710677, %v6865_v51  ;;  %v4537_v46 = vpop.f32.mrb[54].mxu1 }
 0x636   : > { %v2806_v4 = vadd.f32 1.0, %v5181_v37  ;;  %5190 = verf.f32 %v2749_v41  ;;  %v6871_v60 = vadd.f32 %v4537_v46, %v6793_v5  ;;  %v2647_v22 = vpop.f32.mrb[55].mxu1  ;;  %4600 = vmatprep.mubr.f32.mxu0 %v2836_v44  ;;  %v2716_v41 = vmul.f32 0.5, %v6865_v51 }
 0x637   : > { %5192 = verf.f32 %v2748_v15  ;;  %v6875_v21 = vadd.f32 %v2647_v22, %v6793_v5  ;;  %4601 = vmatmul.mubr.f32.gmra.mrb[76].mxu0 %v2837_v43  ;;  %v2839_v50 = vmul.f32 %v2807_v34, %v2711_v6  ;;  %v2717_v34 = vmul.f32 0.5, %v6861_v19 }
 0x638   : > { %v5183_v0 = vpop.eup %5182  ;;  %v2751_v58 = vmul.f32 0.70710677, %v6871_v60  ;;  %v2838_v53 = vmul.f32 %v2806_v4, %v2710_v24  ;;  %v2719_v19 = vmul.f32 0.5, %v6871_v60 }
 0x639   : > { %v5185_v61 = vpop.eup %5184  ;;  %v2809_v31 = vadd.f32 1.0, %v5183_v0  ;;  %v2750_v12 = vmul.f32 0.70710677, %v6875_v21  ;;  %v4540_v25 = vpop.f32.mrb[56].mxu1 }
 0x63a   : > { %v2808_v10 = vadd.f32 1.0, %v5185_v61  ;;  %5194 = verf.f32 %v2751_v58  ;;  %v6881_v3 = vadd.f32 %v4540_v25, %v6793_v5  ;;  %v2657_v49 = vpop.f32.mrb[57].mxu1  ;;  %4603 = vmatprep.mubr.f32.mxu0 %v2838_v53  ;;  %v2718_v58 = vmul.f32 0.5, %v6875_v21 }
 0x63b   : > { %5196 = verf.f32 %v2750_v12  ;;  %v6885_v63 = vadd.f32 %v2657_v49, %v6793_v5  ;;  %4604 = vmatmul.mubr.f32.gmra.mrb[78].mxu0 %v2839_v50  ;;  %v2841_v57 = vmul.f32 %v2809_v31, %v2713_v59 }
 0x63c   : > { %v5187_v33 = vpop.eup %5186  ;;  %v2753_v11 = vmul.f32 0.70710677, %v6881_v3  ;;  %v2840_v29 = vmul.f32 %v2808_v10, %v2712_v27 }
 0x63d   : > { %v5189_v55 = vpop.eup %5188  ;;  %v2811_v13 = vadd.f32 1.0, %v5187_v33  ;;  %v2752_v7 = vmul.f32 0.70710677, %v6885_v63  ;;  %v4543_v42 = vpop.f32.mrb[58].mxu1  ;;  %v2720_v21 = vmul.f32 0.5, %v6885_v63 }
 0x63e   : > { %v2810_v17 = vadd.f32 1.0, %v5189_v55  ;;  %5198 = verf.f32 %v2753_v11  ;;  %v6891_v32 = vadd.f32 %v4543_v42, %v6793_v5  ;;  %v2667_v28 = vpop.f32.mrb[59].mxu1  ;;  %4606 = vmatprep.mubr.f32.mxu0 %v2840_v29  ;;  %v2721_v29 = vmul.f32 0.5, %v6881_v3 }
 0x63f   : > { %5200 = verf.f32 %v2752_v7  ;;  %v2668_v56 = vadd.f32 %v2667_v28, %v6793_v5  ;;  %4607 = vmatmul.mubr.f32.gmra.mrb[80].mxu0 %v2841_v57  ;;  %v2843_v39 = vmul.f32 %v2811_v13, %v2715_v45 }
 0x640   : > { %v5191_v9 = vpop.eup %5190  ;;  %v2755_v35 = vmul.f32 0.70710677, %v6891_v32  ;;  %v2842_v14 = vmul.f32 %v2810_v17, %v2714_v62  ;;  %v2723_v62 = vmul.f32 0.5, %v6891_v32 }
 0x641   : > { %v5193_v36 = vpop.eup %5192  ;;  %v2813_v20 = vadd.f32 1.0, %v5191_v9  ;;  %v2754_v38 = vmul.f32 0.70710677, %v2668_v56  ;;  %v4546_v40 = vpop.f32.mrb[60].mxu1  ;;  %v2722_v42 = vmul.f32 0.5, %v2668_v56 }
 0x642   : > { %v2812_v44 = vadd.f32 1.0, %v5193_v36  ;;  %5202 = verf.f32 %v2755_v35  ;;  %v2683_v37 = vadd.f32 %v4546_v40, %v6793_v5  ;;  %v2677_v23 = vpop.f32.mrb[61].mxu1  ;;  %4609 = vmatprep.mubr.f32.mxu0 %v2842_v14 }
 0x643   : > { %5204 = verf.f32 %v2754_v38  ;;  %v2678_v15 = vadd.f32 %v2677_v23, %v6793_v5  ;;  %4610 = vmatmul.mubr.f32.gmra.mrb[82].mxu0 %v2843_v39  ;;  %v2845_v51 = vmul.f32 %v2813_v20, %v2717_v34  ;;  %v5279_v34 = vld [vmem:[%s7575_s5 + $0x8] sm:$0xff] }
 0x644   : > { %v5195_v46 = vpop.eup %5194  ;;  %v2757_v43 = vmul.f32 0.70710677, %v2683_v37  ;;  %v2844_v24 = vmul.f32 %v2812_v44, %v2716_v41  ;;  %v2725_v14 = vmul.f32 0.5, %v2683_v37  ;;  %v6911_v37 = vrot.slane %v5279_v34, %v6193_v30 }
 0x645   : > { %v5197_v4 = vpop.eup %5196  ;;  %v2815_v22 = vadd.f32 1.0, %v5195_v46  ;;  %v2756_v6 = vmul.f32 0.70710677, %v2678_v15  ;;  %v4549_v0 = vpop.f32.mrb[62].mxu1  ;;  %v2724_v35 = vmul.f32 0.5, %v2678_v15 }
 0x646   : > { %v2814_v53 = vadd.f32 1.0, %v5197_v4  ;;  %5206 = verf.f32 %v2757_v43  ;;  %v2693_v61 = vadd.f32 %v4549_v0, %v6793_v5  ;;  %v2687_v31 = vpop.f32.mrb[63].mxu1  ;;  %4612 = vmatprep.mubr.f32.mxu0 %v2844_v24 }
 0x647   : > { %5208 = verf.f32 %v2756_v6  ;;  %v2688_v12 = vadd.f32 %v2687_v31, %v6793_v5  ;;  %4613 = vmatmul.mubr.f32.gmra.mrb[84].mxu0 %v2845_v51  ;;  %v2847_v33 = vmul.f32 %v2815_v22, %v2719_v19 }
 0x648   : > { %v5199_v25 = vpop.eup %5198  ;;  %v2759_v50 = vmul.f32 0.70710677, %v2693_v61  ;;  %v2846_v27 = vmul.f32 %v2814_v53, %v2718_v58  ;;  %v2727_v32 = vmul.f32 0.5, %v2693_v61 }
 0x649   : > { %v5201_v10 = vpop.eup %5200  ;;  %v2817_v49 = vadd.f32 1.0, %v5199_v25  ;;  %v2758_v59 = vmul.f32 0.70710677, %v2688_v12  ;;  %v2726_v39 = vmul.f32 0.5, %v2688_v12 }
 0x64a   : > { %v2816_v11 = vadd.f32 1.0, %v5201_v10  ;;  %5210 = verf.f32 %v2759_v50  ;;  %4615 = vmatprep.mubr.f32.mxu0 %v2846_v27 }
 0x64b   : > { %5212 = verf.f32 %v2758_v59  ;;  %4616 = vmatmul.mubr.f32.gmra.mrb[86].mxu0 %v2847_v33  ;;  %v2849_v7 = vmul.f32 %v2817_v49, %v2721_v29 }
 0x64c   : > { %v5203_v60 = vpop.eup %5202  ;;  %v2848_v55 = vmul.f32 %v2816_v11, %v2720_v21 }
 0x64d   : > { %v5205_v5 = vpop.eup %5204  ;;  %v2819_v13 = vadd.f32 1.0, %v5203_v60 }
 0x64e   : > { %v2818_v57 = vadd.f32 1.0, %v5205_v5  ;;  %4618 = vmatprep.mubr.f32.mxu0 %v2848_v55 }
 0x64f   : > { %4619 = vmatmul.mubr.f32.gmra.mrb[88].mxu0 %v2849_v7  ;;  %v2851_v9 = vmul.f32 %v2819_v13, %v2723_v62 }
 0x650   : > { %v5207_v17 = vpop.eup %5206  ;;  %v2850_v63 = vmul.f32 %v2818_v57, %v2722_v42  ;;  %v7706_v57 = vld [vmem:[#allocation4_spill] sm:$0xff] }
 0x651   : > { %v5209_v28 = vpop.eup %5208  ;;  %v2821_v45 = vadd.f32 1.0, %v5207_v17  ;;  %v7707_v17 = vld [vmem:[#allocation3_spill] sm:$0xff] }
 0x652   : > { %v2820_v3 = vadd.f32 1.0, %v5209_v28  ;;  %4621 = vmatprep.mubr.f32.mxu0 %v2850_v63 }
 0x653   : > { %4622 = vmatmul.mubr.f32.gmra.mrb[90].mxu0 %v2851_v9  ;;  %v2853_v56 = vmul.f32 %v2821_v45, %v2725_v14  ;;  %v7708_v9 = vld [vmem:[#allocation6_spill] sm:$0xff] }
 0x654   : > { %v5211_v36 = vpop.eup %5210  ;;  %v2852_v20 = vmul.f32 %v2820_v3, %v2724_v35  ;;  %v7709_v3 = vld [vmem:[#allocation5_spill] sm:$0xff] }
 0x655   : > { %v5213_v38 = vpop.eup %5212  ;;  %v2823_v40 = vadd.f32 1.0, %v5211_v36 }
 0x656   : > { %v2822_v41 = vadd.f32 1.0, %v5213_v38  ;;  %4624 = vmatprep.mubr.f32.mxu0 %v2852_v20 }
 0x657   : > { %4625 = vmatmul.mubr.f32.gmra.mrb[92].mxu0 %v2853_v56  ;;  %v2855_v23 = vmul.f32 %v2823_v40, %v2727_v32  ;;  %v7710_v56 = vld [vmem:[#allocation8_spill] sm:$0xff] }
 0x658   : > { %v2854_v44 = vmul.f32 %v2822_v41, %v2726_v39  ;;  %v7711_v41 = vld [vmem:[#allocation7_spill] sm:$0xff] }
 0x65a   : > { %4627 = vmatprep.mubr.f32.mxu0 %v2854_v44 }
 0x65b   : > { %4628 = vmatmul.mubr.f32.gmra.mrb[94].mxu0 %v2855_v23 }
 0x6f2   : > { %v4584_v15 = vpop.f32.mrb[64].mxu0 }
 0x6f3   : > { %v2932_v46 = vadd.f32 %v4584_v15, %v6911_v37  ;;  %v2926_v43 = vpop.f32.mrb[65].mxu0 }
 0x6f4   : > { %v2927_v4 = vadd.f32 %v2926_v43, %v6911_v37 }
 0x6f5   : > { %v6915_v24 = vadd.f32 %v2932_v46, %v6204_v2  ;;  %v7712_v46 = vld [vmem:[#allocation10_spill] sm:$0xff] }
 0x6f6   : > { %v6918_v22 = vpop.f32.mrb[66].mxu0  ;;  %v6924_v0 = vadd.f32 %v2927_v4, %v6207_v26  ;;  %v7713_v4 = vld [vmem:[#allocation9_spill] sm:$0xff] }
 0x6f7   : > { %3119 = vadd.xlane.f32.xlu0 %v6915_v24  ;;  %v6921_v6 = vpop.f32.mrb[67].mxu0 }
 0x6fa   : > { %v4590_v51 = vpop.f32.mrb[68].mxu0 }
 0x6fb   : > { %v6927_v58 = vadd.f32 %v4590_v51, %v6911_v37  ;;  %3117 = vadd.xlane.f32.xlu0 %v6924_v0  ;;  %v6930_v53 = vpop.f32.mrb[69].mxu0 }
 0x6fe   : > { %v4593_v2 = vpop.f32.mrb[70].mxu0 }
 0x6ff   : > { %v2962_v61 = vadd.f32 %v4593_v2, %v6911_v37  ;;  %v2956_v31 = vpop.f32.mrb[71].mxu0 }
 0x700   : > { %v2957_v19 = vadd.f32 %v2956_v31, %v6911_v37 }
 0x701   : > { %v6935_v12 = vadd.f32 %v2962_v61, %v6234_v16 }
 0x702   : > { %v6938_v26 = vadd.f32 %v2957_v19, %v6237_v48  ;;  %v4596_v25 = vpop.f32.mrb[72].mxu0 }
 0x703   : > { %v2972_v50 = vadd.f32 %v4596_v25, %v6911_v37  ;;  %3131 = vadd.xlane.f32.xlu1 %v6935_v12  ;;  %v2966_v27 = vpop.f32.mrb[73].mxu0  ;;  %v7714_v25 = vld [vmem:[#allocation12_spill] sm:$0xff] }
 0x704   : > { %v2967_v10 = vadd.f32 %v2966_v27, %v6911_v37  ;;  %3129 = vadd.xlane.f32.xlu0 %v6938_v26  ;;  %v7715_v27 = vld [vmem:[#allocation11_spill] sm:$0xff] }
 0x705   : > { %v6945_v49 = vadd.f32 %v2972_v50, %v6244_v18 }
 0x706   : > { %v6948_v59 = vadd.f32 %v2967_v10, %v6247_v8  ;;  %v4599_v16 = vpop.f32.mrb[74].mxu0 }
 0x707   : > { %v2982_v48 = vadd.f32 %v4599_v16, %v6911_v37  ;;  %3135 = vadd.xlane.f32.xlu1 %v6945_v49  ;;  %v2976_v33 = vpop.f32.mrb[75].mxu0 }
 0x708   : > { %v2977_v21 = vadd.f32 %v2976_v33, %v6911_v37  ;;  %3133 = vadd.xlane.f32.xlu0 %v6948_v59 }
 0x709   : > { %v6955_v11 = vadd.f32 %v2982_v48, %v6254_v1 }
 0x70a   : > { %v6958_v29 = vadd.f32 %v2977_v21, %v6257_v47  ;;  %v4602_v18 = vpop.f32.mrb[76].mxu0 }
 0x70b   : > { %v2992_v8 = vadd.f32 %v4602_v18, %v6911_v37  ;;  %3139 = vadd.xlane.f32.xlu1 %v6955_v11  ;;  %v2986_v60 = vpop.f32.mrb[77].mxu0  ;;  %v7716_v18 = vld [vmem:[#allocation14_spill] sm:$0xff] }
 0x70c   : > { %v2987_v55 = vadd.f32 %v2986_v60, %v6911_v37  ;;  %3137 = vadd.xlane.f32.xlu0 %v6958_v29  ;;  %v2937_v60 = vadd.f32 %v6921_v6, %v6911_v37  ;;  %v7719_v6 = vld [vmem:[#allocation30_spill] sm:$0xff] }
 0x70d   : > { %v6965_v5 = vadd.f32 %v2992_v8, %v6264_v52 }
 0x70e   : > { %v6968_v13 = vadd.f32 %v2987_v55, %v6267_v54  ;;  %v4605_v1 = vpop.f32.mrb[78].mxu0  ;;  %v7717_v55 = vld [vmem:[#allocation13_spill] sm:$0xff] }
 0x70f   : > { %v3002_v47 = vadd.f32 %v4605_v1, %v6911_v37  ;;  %3143 = vadd.xlane.f32.xlu1 %v6965_v5  ;;  %v2996_v7 = vpop.f32.mrb[79].mxu0 }
 0x710   : > { %v2997_v42 = vadd.f32 %v2996_v7, %v6911_v37  ;;  %3141 = vadd.xlane.f32.xlu0 %v6968_v13 }
 0x711   : > { %v6975_v62 = vadd.f32 %v3002_v47, %v7706_v57  ;;  %v7718_v57 = vld [vmem:[#allocation16_spill] sm:$0xff] }
 0x712   : > { %v6978_v63 = vadd.f32 %v2997_v42, %v7707_v17  ;;  %v4608_v52 = vpop.f32.mrb[80].mxu0 }
 0x713   : > { %v3012_v54 = vadd.f32 %v4608_v52, %v6911_v37  ;;  %3147 = vadd.xlane.f32.xlu1 %v6975_v62  ;;  %v3006_v28 = vpop.f32.mrb[81].mxu0 }
 0x714   : > { %v3007_v45 = vadd.f32 %v3006_v28, %v6911_v37  ;;  %3145 = vadd.xlane.f32.xlu0 %v6978_v63  ;;  %v7042_v28 = vadd.f32 %v2937_v60, %v7719_v6 }
 0x715   : > { %v6985_v35 = vadd.f32 %v3012_v54, %v7708_v9  ;;  %v2942_v54 = vadd.f32 %v6918_v22, %v6911_v37  ;;  %v2947_v22 = vadd.f32 %v6930_v53, %v6911_v37  ;;  %v7724_v53 = vld [vmem:[#allocation17_spill] sm:$0xff] }
 0x716   : > { %v6988_v14 = vadd.f32 %v3007_v45, %v7709_v3  ;;  %v4611_v36 = vpop.f32.mrb[82].mxu0 }
 0x717   : > { %v3022_v20 = vadd.f32 %v4611_v36, %v6911_v37  ;;  %3151 = vadd.xlane.f32.xlu1 %v6985_v35  ;;  %v3016_v38 = vpop.f32.mrb[83].mxu0  ;;  %v7720_v36 = vld [vmem:[#allocation15_spill] sm:$0xff] }
 0x718   : > { %v3017_v40 = vadd.f32 %v3016_v38, %v6911_v37  ;;  %3149 = vadd.xlane.f32.xlu0 %v6988_v14 }
 0x719   : > { %v6995_v39 = vadd.f32 %v3022_v20, %v7710_v56 }
 0x71a   : > { %v6998_v32 = vadd.f32 %v3017_v40, %v7711_v41  ;;  %v4614_v44 = vpop.f32.mrb[84].mxu0  ;;  %v7721_v40 = vld [vmem:[#allocation29_spill] sm:$0xff] }
 0x71b   : > { %v3032_v23 = vadd.f32 %v4614_v44, %v6911_v37  ;;  %3155 = vadd.xlane.f32.xlu1 %v6995_v39  ;;  %v3026_v34 = vpop.f32.mrb[85].mxu0  ;;  %v7052_v56 = vadd.f32 %v2942_v54, %v7721_v40 }
 0x71c   : > { %v3027_v15 = vadd.f32 %v3026_v34, %v6911_v37  ;;  %3153 = vadd.xlane.f32.xlu0 %v6998_v32 }
 0x71d   : > { %v7005_v43 = vadd.f32 %v3032_v23, %v7712_v46 }
 0x71e   : > { %v7008_v51 = vadd.f32 %v3027_v15, %v7713_v4  ;;  %v4617_v2 = vpop.f32.mrb[86].mxu0  ;;  %v7722_v15 = vld [vmem:[#allocation18_spill] sm:$0xff]  ;;  %v7723_v4 = vld [vmem:[#allocation32_spill] sm:$0xff] }
 0x71f   : > { %v3042_v61 = vadd.f32 %v4617_v2, %v6911_v37  ;;  %3159 = vadd.xlane.f32.xlu1 %v7005_v43  ;;  %v3036_v31 = vpop.f32.mrb[87].mxu0  ;;  %v7064_v2 = vadd.f32 %v2947_v22, %v7723_v4 }
 0x720   : > { %v3037_v19 = vadd.f32 %v3036_v31, %v6911_v37  ;;  %3157 = vadd.xlane.f32.xlu0 %v7008_v51  ;;  %v7725_v31 = vld [vmem:[#allocation31_spill] sm:$0xff] }
 0x721   : > { %v7015_v50 = vadd.f32 %v3042_v61, %v7714_v25 }
 0x722   : > { %v7018_v10 = vadd.f32 %v3037_v19, %v7715_v27  ;;  %v4620_v16 = vpop.f32.mrb[88].mxu0  ;;  %v7073_v19 = vadd.f32 %v6927_v58, %v7725_v31  ;;  %v7727_v27 = vld [vmem:[#allocation20_spill] sm:$0xff] }
 0x723   : > { %v3052_v48 = vadd.f32 %v4620_v16, %v6911_v37  ;;  %3163 = vadd.xlane.f32.xlu1 %v7015_v50  ;;  %v3046_v33 = vpop.f32.mrb[89].mxu0  ;;  %v3574_v58 = vld [vmem:[%s7576_s6 + $0x8] sm:$0xff] }
 0x724   : > { %v3047_v21 = vadd.f32 %v3046_v33, %v6911_v37  ;;  %3161 = vadd.xlane.f32.xlu0 %v7018_v10  ;;  %v3575_v33 = vld [vmem:[%s7576_s6 + $0x10] sm:$0xff] }
 0x725   : > { %v7025_v8 = vadd.f32 %v3052_v48, %v7716_v18  ;;  %v3573_v48 = vld [vmem:[%s7576_s6] sm:$0xff]  ;;  %v3576_v18 = vld [vmem:[%s7576_s6 + $0x18] sm:$0xff] }
 0x726   : > { %v7030_v1 = vadd.f32 %v3047_v21, %v7717_v55  ;;  %v4623_v47 = vpop.f32.mrb[90].mxu0  ;;  %v4838_v21 = vpack.c.bf16 %v3574_v58, %v3573_v48  ;;  %v4842_v60 = vpack.c.bf16 %v3576_v18, %v3575_v33  ;;  %v3577_v55 = vld [vmem:[%s7576_s6 + $0x20] sm:$0xff] }
 0x727   : > { %v3062_v7 = vadd.f32 %v4623_v47, %v6911_v37  ;;  %3167 = vadd.xlane.f32.xlu1 %v7025_v8  ;;  %v3056_v42 = vpop.f32.mrb[91].mxu0  ;;  %v3578_v47 = vld [vmem:[%s7576_s6 + $0x28] sm:$0xff] }
 0x728   : > { %3165 = vadd.xlane.f32.xlu0 %v7030_v1  ;;  %v3057_v52 = vadd.f32 %v3056_v42, %v6911_v37  ;;  %4870 = vmatprep.subr.bf16.mxu1 %v4838_v21 }
 0x729   : > { %v7036_v17 = vadd.f32 %v3062_v7, %v7718_v57  ;;  %4839 = vmatprep.subr.bf16.mxu0 %v4838_v21  ;;  %4878 = vmatpush3.bf16.msra.mxu1 %v4838_v21  ;;  %v4846_v7 = vpack.c.bf16 %v3578_v47, %v3577_v55 }
 0x72a   : > { %v4626_v45 = vpop.f32.mrb[92].mxu0  ;;  %v7048_v20 = vadd.f32 %v3057_v52, %v7720_v36  ;;  %4841 = vmatpush3.bf16.msra.mxu0 %v4838_v21  ;;  %4871 = vmatprep.subr.bf16.mxu1 %v4842_v60 }
 0x72b   : > { %3171 = vadd.xlane.f32.xlu1 %v7036_v17  ;;  %v3066_v9 = vpop.f32.mrb[93].mxu0  ;;  %v3072_v38 = vadd.f32 %v4626_v45, %v6911_v37  ;;  %4843 = vmatprep.subr.bf16.mxu0 %v4842_v60 }
 0x72c   : > { %v3067_v3 = vadd.f32 %v3066_v9, %v6911_v37  ;;  %3121 = vadd.xlane.f32.xlu0 %v7042_v28 }
 0x72d   : > { %v7061_v46 = vadd.f32 %v3072_v38, %v7722_v15  ;;  %4879 = vmatpush3.bf16.msra.mxu1 %v4842_v60 }
 0x72e   : > { %v4629_v41 = vpop.f32.mrb[94].mxu0  ;;  %v7069_v61 = vadd.f32 %v3067_v3, %v7724_v53  ;;  %4845 = vmatpush3.bf16.msra.mxu0 %v4842_v60  ;;  %4872 = vmatprep.subr.bf16.mxu1 %v4846_v7 }
 0x72f   : > { %v3082_v44 = vadd.f32 %v4629_v41, %v6911_v37  ;;  %3169 = vadd.xlane.f32.xlu1 %v7048_v20  ;;  %v3076_v23 = vpop.f32.mrb[95].mxu0  ;;  %4847 = vmatprep.subr.bf16.mxu0 %v4846_v7 }
 0x730   : > { %v3077_v34 = vadd.f32 %v3076_v23, %v6911_v37  ;;  %3123 = vadd.xlane.f32.xlu0 %v7052_v56  ;;  %v7726_v37 = vld [vmem:[#allocation19_spill] sm:$0xff] }
 0x731   : > { %v7082_v16 = vadd.f32 %v3082_v44, %v7727_v27  ;;  %4880 = vmatpush3.bf16.msra.mxu1 %v4846_v7 }
 0x732   : > { %v7078_v25 = vadd.f32 %v3077_v34, %v7726_v37  ;;  %4849 = vmatpush3.bf16.msra.mxu0 %v4846_v7 }
 0x733   : > { %3175 = vadd.xlane.f32.xlu1 %v7061_v46 }
 0x734   : > { %3125 = vadd.xlane.f32.xlu0 %v7064_v2 }
 0x737   : > { %3173 = vadd.xlane.f32.xlu1 %v7069_v61 }
 0x738   : > { %3127 = vadd.xlane.f32.xlu0 %v7073_v19 }
 0x73b   : > { %3177 = vadd.xlane.f32.xlu1 %v7078_v25 }
 0x73f   : > { %3179 = vadd.xlane.f32.xlu1 %v7082_v16 }
 0x784   : > { %v3120_v42 = vpop.xlane.xlu0 %3119 }
 0x785   : > { %v3182_v57 = vmul.f32 0.03125, %v3120_v42 }
 0x787   : > { %v3214_v52 = vsub.f32 %v6915_v24, %v3182_v57 }
 0x788   : > { %v3118_v54 = vpop.xlane.xlu0 %3117 }
 0x789   : > { %v7106_v45 = vsel %vm313_vm1, %v3214_v52, 0.0  ;;  %v3181_v9 = vmul.f32 0.03125, %v3118_v54 }
 0x78a   : > { %v3278_v3 = vmul.f32 %v7106_v45, %v7106_v45 }
 0x78b   : > { %v3213_v36 = vsub.f32 %v6924_v0, %v3181_v9 }
 0x78c   : > { %3311 = vadd.xlane.f32.xlu0 %v3278_v3 }
 0x78d   : > { %v7113_v38 = vsel %vm313_vm1, %v3213_v36, 0.0 }
 0x78e   : > { %v3277_v40 = vmul.f32 %v7113_v38, %v7113_v38 }
 0x790   : > { %v3132_v24 = vpop.xlane.xlu1 %3131  ;;  %3309 = vadd.xlane.f32.xlu0 %v3277_v40  ;;  %v3579_v40 = vld [vmem:[%s7576_s6 + $0x30] sm:$0xff] }
 0x791   : > { %v3188_v22 = vmul.f32 0.03125, %v3132_v24  ;;  %v3130_v41 = vpop.xlane.xlu0 %3129  ;;  %v3580_v24 = vld [vmem:[%s7576_s6 + $0x38] sm:$0xff] }
 0x792   : > { %v3187_v44 = vmul.f32 0.03125, %v3130_v41 }
 0x793   : > { %v3220_v23 = vsub.f32 %v6935_v12, %v3188_v22 }
 0x794   : > { %v3219_v34 = vsub.f32 %v6938_v26, %v3187_v44  ;;  %v3136_v15 = vpop.xlane.xlu1 %3135  ;;  %v4850_v44 = vpack.c.bf16 %v3580_v24, %v3579_v40 }
 0x795   : > { %v7121_v0 = vsel %vm313_vm1, %v3220_v23, 0.0  ;;  %v3190_v4 = vmul.f32 0.03125, %v3136_v15  ;;  %v3134_v53 = vpop.xlane.xlu0 %3133 }
 0x796   : > { %v7125_v31 = vsel %vm313_vm1, %v3219_v34, 0.0  ;;  %v3189_v37 = vmul.f32 0.03125, %v3134_v53  ;;  %v3284_v27 = vmul.f32 %v7121_v0, %v7121_v0  ;;  %4873 = vmatprep.subr.bf16.mxu1 %v4850_v44  ;;  %4851 = vmatprep.subr.bf16.mxu0 %v4850_v44 }
 0x797   : > { %v3222_v48 = vsub.f32 %v6945_v49, %v3190_v4  ;;  %v3283_v12 = vmul.f32 %v7125_v31, %v7125_v31  ;;  %4881 = vmatpush3.bf16.msra.mxu1 %v4850_v44  ;;  %4853 = vmatpush3.bf16.msra.mxu0 %v4850_v44  ;;  %v3586_v44 = vld [vmem:[%s7576_s6 + $0x68] sm:$0xff] }
 0x798   : > { %v3221_v26 = vsub.f32 %v6948_v59, %v3189_v37  ;;  %v3140_v58 = vpop.xlane.xlu1 %3139  ;;  %3323 = vadd.xlane.f32.xlu1 %v3284_v27  ;;  %v3581_v27 = vld [vmem:[%s7576_s6 + $0x40] sm:$0xff] }
 0x799   : > { %v7135_v33 = vsel %vm313_vm1, %v3222_v48, 0.0  ;;  %v3192_v21 = vmul.f32 0.03125, %v3140_v58  ;;  %3321 = vadd.xlane.f32.xlu0 %v3283_v12  ;;  %v3138_v18 = vpop.xlane.xlu0 %3137  ;;  %v3582_v48 = vld [vmem:[%s7576_s6 + $0x48] sm:$0xff] }
 0x79a   : > { %v7139_v60 = vsel %vm313_vm1, %v3221_v26, 0.0  ;;  %v3191_v55 = vmul.f32 0.03125, %v3138_v18  ;;  %v3286_v49 = vmul.f32 %v7135_v33, %v7135_v33  ;;  %v4854_v58 = vpack.c.bf16 %v3582_v48, %v3581_v27 }
 0x79b   : > { %v3224_v47 = vsub.f32 %v6955_v11, %v3192_v21  ;;  %v3285_v59 = vmul.f32 %v7139_v60, %v7139_v60 }
 0x79c   : > { %v3223_v7 = vsub.f32 %v6958_v29, %v3191_v55  ;;  %v3144_v42 = vpop.xlane.xlu1 %3143  ;;  %3327 = vadd.xlane.f32.xlu1 %v3286_v49  ;;  %4855 = vmatprep.subr.bf16.mxu0 %v4854_v58 }
 0x79d   : > { %v7149_v57 = vsel %vm313_vm1, %v3224_v47, 0.0  ;;  %v3194_v52 = vmul.f32 0.03125, %v3144_v42  ;;  %3325 = vadd.xlane.f32.xlu0 %v3285_v59  ;;  %v3142_v54 = vpop.xlane.xlu0 %3141  ;;  %4874 = vmatprep.subr.bf16.mxu1 %v4854_v58  ;;  %v3584_v42 = vld [vmem:[%s7576_s6 + $0x58] sm:$0xff] }
 0x79e   : > { %v7153_v9 = vsel %vm313_vm1, %v3223_v7, 0.0  ;;  %v3193_v3 = vmul.f32 0.03125, %v3142_v54  ;;  %v3288_v11 = vmul.f32 %v7149_v57, %v7149_v57  ;;  %4857 = vmatpush3.bf16.msra.mxu0 %v4854_v58  ;;  %4882 = vmatpush3.bf16.msra.mxu1 %v4854_v58  ;;  %v3583_v7 = vld [vmem:[%s7576_s6 + $0x50] sm:$0xff]  ;;  %v3588_v58 = vld [vmem:[%s7576_s6 + $0x78] sm:$0xff] }
 0x79f   : > { %v3226_v36 = vsub.f32 %v6965_v5, %v3194_v52  ;;  %v3287_v29 = vmul.f32 %v7153_v9, %v7153_v9 }
 0x7a0   : > { %v3225_v22 = vsub.f32 %v6968_v13, %v3193_v3  ;;  %v3148_v41 = vpop.xlane.xlu1 %3147  ;;  %3331 = vadd.xlane.f32.xlu1 %v3288_v11  ;;  %v4858_v3 = vpack.c.bf16 %v3584_v42, %v3583_v7 }
 0x7a1   : > { %v7169_v23 = vsel %vm313_vm1, %v3226_v36, 0.0  ;;  %v3196_v5 = vmul.f32 0.03125, %v3148_v41  ;;  %3329 = vadd.xlane.f32.xlu0 %v3287_v29  ;;  %v3146_v34 = vpop.xlane.xlu0 %3145  ;;  %v3585_v41 = vld [vmem:[%s7576_s6 + $0x60] sm:$0xff] }
 0x7a2   : > { %v7173_v15 = vsel %vm313_vm1, %v3225_v22, 0.0  ;;  %v3195_v4 = vmul.f32 0.03125, %v3146_v34  ;;  %v3290_v53 = vmul.f32 %v7169_v23, %v7169_v23  ;;  %4859 = vmatprep.subr.bf16.mxu0 %v4858_v3  ;;  %4875 = vmatprep.subr.bf16.mxu1 %v4858_v3 }
 0x7a3   : > { %v3228_v13 = vsub.f32 %v6975_v62, %v3196_v5  ;;  %v3289_v37 = vmul.f32 %v7173_v15, %v7173_v15  ;;  %4861 = vmatpush3.bf16.msra.mxu0 %v4858_v3  ;;  %4883 = vmatpush3.bf16.msra.mxu1 %v4858_v3 }
 0x7a4   : > { %v3227_v12 = vsub.f32 %v6978_v63, %v3195_v4  ;;  %v3152_v26 = vpop.xlane.xlu1 %3151  ;;  %3335 = vadd.xlane.f32.xlu1 %v3290_v53  ;;  %v4862_v4 = vpack.c.bf16 %v3586_v44, %v3585_v41 }
 0x7a5   : > { %v7189_v62 = vsel %vm313_vm1, %v3228_v13, 0.0  ;;  %v3198_v21 = vmul.f32 0.03125, %v3152_v26  ;;  %3333 = vadd.xlane.f32.xlu0 %v3289_v37  ;;  %v3150_v18 = vpop.xlane.xlu0 %3149  ;;  %v3587_v26 = vld [vmem:[%s7576_s6 + $0x70] sm:$0xff] }
 0x7a6   : > { %v7193_v55 = vsel %vm313_vm1, %v3227_v12, 0.0  ;;  %v3197_v49 = vmul.f32 0.03125, %v3150_v18  ;;  %v3292_v47 = vmul.f32 %v7189_v62, %v7189_v62  ;;  %4863 = vmatprep.subr.bf16.mxu0 %v4862_v4  ;;  %4876 = vmatprep.subr.bf16.mxu1 %v4862_v4 }
 0x7a7   : > { %v3230_v63 = vsub.f32 %v6985_v35, %v3198_v21  ;;  %v3291_v59 = vmul.f32 %v7193_v55, %v7193_v55  ;;  %4865 = vmatpush3.bf16.msra.mxu0 %v4862_v4  ;;  %4884 = vmatpush3.bf16.msra.mxu1 %v4862_v4 }
 0x7a8   : > { %v3229_v52 = vsub.f32 %v6988_v14, %v3197_v49  ;;  %v3156_v54 = vpop.xlane.xlu1 %3155  ;;  %3339 = vadd.xlane.f32.xlu1 %v3292_v47  ;;  %v4866_v49 = vpack.c.bf16 %v3588_v58, %v3587_v26 }
 0x7a9   : > { %v7209_v35 = vsel %vm313_vm1, %v3230_v63, 0.0  ;;  %v3200_v11 = vmul.f32 0.03125, %v3156_v54  ;;  %3337 = vadd.xlane.f32.xlu0 %v3291_v59  ;;  %v3154_v36 = vpop.xlane.xlu0 %3153 }
 0x7aa   : > { %v7213_v29 = vsel %vm313_vm1, %v3229_v52, 0.0  ;;  %v3199_v40 = vmul.f32 0.03125, %v3154_v36  ;;  %v3294_v24 = vmul.f32 %v7209_v35, %v7209_v35  ;;  %4867 = vmatprep.subr.bf16.mxu0 %v4866_v49  ;;  %4877 = vmatprep.subr.bf16.mxu1 %v4866_v49 }
 0x7ab   : > { %v3232_v14 = vsub.f32 %v6995_v39, %v3200_v11  ;;  %v3293_v22 = vmul.f32 %v7213_v29, %v7213_v29  ;;  %4869 = vmatpush3.bf16.msra.mxu0 %v4866_v49  ;;  %4885 = vmatpush3.bf16.msra.mxu1 %v4866_v49 }
 0x7ac   : > { %v3231_v5 = vsub.f32 %v6998_v32, %v3199_v40  ;;  %v3160_v34 = vpop.xlane.xlu1 %3159  ;;  %3343 = vadd.xlane.f32.xlu1 %v3294_v24 }
 0x7ad   : > { %v7229_v39 = vsel %vm313_vm1, %v3232_v14, 0.0  ;;  %v3202_v53 = vmul.f32 0.03125, %v3160_v34  ;;  %3341 = vadd.xlane.f32.xlu0 %v3293_v22  ;;  %v3158_v13 = vpop.xlane.xlu0 %3157 }
 0x7ae   : > { %v7233_v37 = vsel %vm313_vm1, %v3231_v5, 0.0  ;;  %v3201_v27 = vmul.f32 0.03125, %v3158_v13  ;;  %v3296_v48 = vmul.f32 %v7229_v39, %v7229_v39 }
 0x7af   : > { %v3234_v32 = vsub.f32 %v7005_v43, %v3202_v53  ;;  %v3295_v12 = vmul.f32 %v7233_v37, %v7233_v37 }
 0x7b0   : > { %v3233_v21 = vsub.f32 %v7008_v51, %v3201_v27  ;;  %v3164_v18 = vpop.xlane.xlu1 %3163  ;;  %3347 = vadd.xlane.f32.xlu1 %v3296_v48 }
 0x7b1   : > { %v7249_v43 = vsel %vm313_vm1, %v3234_v32, 0.0  ;;  %v3204_v47 = vmul.f32 0.03125, %v3164_v18  ;;  %3345 = vadd.xlane.f32.xlu0 %v3295_v12  ;;  %v3162_v63 = vpop.xlane.xlu0 %3161 }
 0x7b2   : > { %v7253_v59 = vsel %vm313_vm1, %v3233_v21, 0.0  ;;  %v3203_v7 = vmul.f32 0.03125, %v3162_v63  ;;  %v3298_v42 = vmul.f32 %v7249_v43, %v7249_v43 }
 0x7b3   : > { %v3236_v51 = vsub.f32 %v7015_v50, %v3204_v47  ;;  %v3297_v52 = vmul.f32 %v7253_v59, %v7253_v59 }
 0x7b4   : > { %v3235_v54 = vsub.f32 %v7018_v10, %v3203_v7  ;;  %v3168_v3 = vpop.xlane.xlu1 %3167  ;;  %3351 = vadd.xlane.f32.xlu1 %v3298_v42 }
 0x7b5   : > { %v7263_v11 = vsel %vm313_vm1, %v3236_v51, 0.0  ;;  %v3206_v36 = vmul.f32 0.03125, %v3168_v3  ;;  %3349 = vadd.xlane.f32.xlu0 %v3297_v52  ;;  %v3166_v40 = vpop.xlane.xlu0 %3165 }
 0x7b6   : > { %v7267_v24 = vsel %vm313_vm1, %v3235_v54, 0.0  ;;  %v3205_v50 = vmul.f32 0.03125, %v3166_v40  ;;  %v3300_v14 = vmul.f32 %v7263_v11, %v7263_v11 }
 0x7b7   : > { %v3238_v22 = vsub.f32 %v7025_v8, %v3206_v36  ;;  %v3299_v10 = vmul.f32 %v7267_v24, %v7267_v24 }
 0x7b8   : > { %v3237_v41 = vsub.f32 %v7030_v1, %v3205_v50  ;;  %v3172_v44 = vpop.xlane.xlu1 %3171  ;;  %3355 = vadd.xlane.f32.xlu1 %v3300_v14 }
 0x7b9   : > { %v7277_v5 = vsel %vm313_vm1, %v3238_v22, 0.0  ;;  %v3208_v34 = vmul.f32 0.03125, %v3172_v44  ;;  %3353 = vadd.xlane.f32.xlu0 %v3299_v10  ;;  %v3122_v4 = vpop.xlane.xlu0 %3121 }
 0x7ba   : > { %v7281_v53 = vsel %vm313_vm1, %v3237_v41, 0.0  ;;  %v3183_v13 = vmul.f32 0.03125, %v3122_v4  ;;  %v3302_v8 = vmul.f32 %v7277_v5, %v7277_v5 }
 0x7bb   : > { %v3240_v27 = vsub.f32 %v7036_v17, %v3208_v34  ;;  %v3301_v1 = vmul.f32 %v7281_v53, %v7281_v53 }
 0x7bc   : > { %v3215_v48 = vsub.f32 %v7042_v28, %v3183_v13  ;;  %v3170_v32 = vpop.xlane.xlu1 %3169  ;;  %3359 = vadd.xlane.f32.xlu1 %v3302_v8 }
 0x7bd   : > { %v7291_v12 = vsel %vm313_vm1, %v3240_v27, 0.0  ;;  %v3207_v26 = vmul.f32 0.03125, %v3170_v32  ;;  %3357 = vadd.xlane.f32.xlu0 %v3301_v1  ;;  %v3124_v58 = vpop.xlane.xlu0 %3123 }
 0x7be   : > { %v7295_v21 = vsel %vm313_vm1, %v3215_v48, 0.0  ;;  %v3184_v18 = vmul.f32 0.03125, %v3124_v58  ;;  %v3304_v17 = vmul.f32 %v7291_v12, %v7291_v12 }
 0x7bf   : > { %v3239_v49 = vsub.f32 %v7048_v20, %v3207_v26  ;;  %v3279_v28 = vmul.f32 %v7295_v21, %v7295_v21 }
 0x7c0   : > { %v3216_v47 = vsub.f32 %v7052_v56, %v3184_v18  ;;  %v3176_v63 = vpop.xlane.xlu1 %3175  ;;  %3363 = vadd.xlane.f32.xlu1 %v3304_v17 }
 0x7c1   : > { %v7305_v7 = vsel %vm313_vm1, %v3239_v49, 0.0  ;;  %v3210_v42 = vmul.f32 0.03125, %v3176_v63  ;;  %3313 = vadd.xlane.f32.xlu0 %v3279_v28  ;;  %v3126_v51 = vpop.xlane.xlu0 %3125 }
 0x7c2   : > { %v7309_v52 = vsel %vm313_vm1, %v3216_v47, 0.0  ;;  %v3185_v54 = vmul.f32 0.03125, %v3126_v51  ;;  %v3303_v20 = vmul.f32 %v7305_v7, %v7305_v7 }
 0x7c3   : > { %v3242_v3 = vsub.f32 %v7061_v46, %v3210_v42  ;;  %v3280_v56 = vmul.f32 %v7309_v52, %v7309_v52 }
 0x7c4   : > { %v3217_v36 = vsub.f32 %v7064_v2, %v3185_v54  ;;  %v3174_v40 = vpop.xlane.xlu1 %3173  ;;  %3361 = vadd.xlane.f32.xlu1 %v3303_v20 }
 0x7c5   : > { %v7319_v50 = vsel %vm313_vm1, %v3242_v3, 0.0  ;;  %v3209_v14 = vmul.f32 0.03125, %v3174_v40  ;;  %3315 = vadd.xlane.f32.xlu0 %v3280_v56  ;;  %v3128_v22 = vpop.xlane.xlu0 %3127 }
 0x7c6   : > { %v7323_v10 = vsel %vm313_vm1, %v3217_v36, 0.0  ;;  %v3186_v41 = vmul.f32 0.03125, %v3128_v22  ;;  %v3306_v46 = vmul.f32 %v7319_v50, %v7319_v50 }
 0x7c7   : > { %v3241_v44 = vsub.f32 %v7069_v61, %v3209_v14  ;;  %v3281_v2 = vmul.f32 %v7323_v10, %v7323_v10 }
 0x7c8   : > { %v3218_v34 = vsub.f32 %v7073_v19, %v3186_v41  ;;  %3367 = vadd.xlane.f32.xlu1 %v3306_v46  ;;  %v3178_v4 = vpop.xlane.xlu1 %3177  ;;  %v5280_v46 = vld [vmem:[%s7572_s2] sm:$0xff] }
 0x7c9   : > { %v7333_v13 = vsel %vm313_vm1, %v3241_v44, 0.0  ;;  %v3211_v8 = vmul.f32 0.03125, %v3178_v4  ;;  %3317 = vadd.xlane.f32.xlu0 %v3281_v2  ;;  %v7362_v44 = vrot.slane %v5280_v46, %v6193_v30 }
 0x7ca   : > { %v7337_v27 = vsel %vm313_vm1, %v3218_v34, 0.0  ;;  %v3305_v61 = vmul.f32 %v7333_v13, %v7333_v13 }
 0x7cb   : > { %v3243_v1 = vsub.f32 %v7078_v25, %v3211_v8  ;;  %v3282_v19 = vmul.f32 %v7337_v27, %v7337_v27 }
 0x7cc   : > { %3365 = vadd.xlane.f32.xlu1 %v3305_v61  ;;  %v3180_v48 = vpop.xlane.xlu1 %3179 }
 0x7cd   : > { %v7346_v32 = vsel %vm313_vm1, %v3243_v1, 0.0  ;;  %v3212_v26 = vmul.f32 0.03125, %v3180_v48  ;;  %3319 = vadd.xlane.f32.xlu0 %v3282_v19  ;;  %v7729_v48 = vld [vmem:[#allocation28_spill] sm:$0xff] }
 0x7ce   : > { %v3307_v58 = vmul.f32 %v7346_v32, %v7346_v32 }
 0x7cf   : > { %v3244_v18 = vsub.f32 %v7082_v16, %v3212_v26  ;;  %v7366_v26 = vrot.slane %v5280_v46, %v7729_v48 }
 0x7d0   : > { %3369 = vadd.xlane.f32.xlu1 %v3307_v58 }
 0x7d1   : > { %v7353_v25 = vsel %vm313_vm1, %v3244_v18, 0.0 }
 0x7d2   : > { %v3308_v17 = vmul.f32 %v7353_v25, %v7353_v25 }
 0x7d4   : > { %3371 = vadd.xlane.f32.xlu1 %v3308_v17 }
 0x819   : > { %v3312_v49 = vpop.xlane.xlu0 %3311 }
 0x81a   : > { %v3374_v28 = vmul.f32 0.03125, %v3312_v49 }
 0x81c   : > { %v3406_v47 = vadd.f32 1e-05, %v3374_v28 }
 0x81d   : > { %v3310_v63 = vpop.xlane.xlu0 %3309 }
 0x81e   : > { %5214 = vrsqrt.f32 %v3406_v47  ;;  %v3373_v42 = vmul.f32 0.03125, %v3310_v63 }
 0x820   : > { %v3405_v51 = vadd.f32 1e-05, %v3373_v42 }
 0x822   : > { %5216 = vrsqrt.f32 %v3405_v51 }
 0x825   : > { %v3324_v54 = vpop.xlane.xlu1 %3323 }
 0x826   : > { %v3380_v20 = vmul.f32 0.03125, %v3324_v54  ;;  %v3322_v16 = vpop.xlane.xlu0 %3321 }
 0x827   : > { %v3379_v3 = vmul.f32 0.03125, %v3322_v16 }
 0x828   : > { %v5215_v56 = vpop.eup %5214  ;;  %v3412_v6 = vadd.f32 1e-05, %v3380_v20 }
 0x829   : > { %v3411_v36 = vadd.f32 1e-05, %v3379_v3  ;;  %v3328_v40 = vpop.xlane.xlu1 %3327  ;;  %v3470_v14 = vmul.f32 %v5215_v56, %v7106_v45 }
 0x82a   : > { %5218 = vrsqrt.f32 %v3412_v6  ;;  %v3382_v22 = vmul.f32 0.03125, %v3328_v40  ;;  %v3326_v41 = vpop.xlane.xlu0 %3325 }
 0x82b   : > { %5220 = vrsqrt.f32 %v3411_v36  ;;  %v3381_v2 = vmul.f32 0.03125, %v3326_v41  ;;  %v3506_v58 = vmul.f32 %v7362_v44, %v3470_v14 }
 0x82c   : > { %v5217_v34 = vpop.eup %5216  ;;  %v3414_v4 = vadd.f32 1e-05, %v3382_v22 }
 0x82d   : > { %v3413_v8 = vadd.f32 1e-05, %v3381_v2  ;;  %v3332_v61 = vpop.xlane.xlu1 %3331  ;;  %v3469_v1 = vmul.f32 %v5217_v34, %v7113_v38  ;;  %v3542_v42 = vadd.f32 %v7366_v26, %v3506_v58 }
 0x82e   : > { %5222 = vrsqrt.f32 %v3414_v4  ;;  %v3384_v45 = vmul.f32 0.03125, %v3332_v61  ;;  %v3330_v19 = vpop.xlane.xlu0 %3329 }
 0x82f   : > { %5224 = vrsqrt.f32 %v3413_v8  ;;  %v3383_v18 = vmul.f32 0.03125, %v3330_v19  ;;  %v3505_v30 = vmul.f32 %v7362_v44, %v3469_v1 }
 0x830   : > { %v3416_v17 = vadd.f32 1e-05, %v3384_v45 }
 0x831   : > { %v3415_v49 = vadd.f32 1e-05, %v3383_v18  ;;  %v3336_v28 = vpop.xlane.xlu1 %3335  ;;  %v3541_v47 = vadd.f32 %v7366_v26, %v3505_v30 }
 0x832   : > { %5226 = vrsqrt.f32 %v3416_v17  ;;  %v3386_v63 = vmul.f32 0.03125, %v3336_v28  ;;  %v3334_v38 = vpop.xlane.xlu0 %3333 }
 0x833   : > { %5228 = vrsqrt.f32 %v3415_v49  ;;  %v3385_v51 = vmul.f32 0.03125, %v3334_v38  ;;  %4662 = vmatprep.mubr.f32.mxu0 %v3541_v47 }
 0x834   : > { %v5219_v54 = vpop.eup %5218  ;;  %v3418_v20 = vadd.f32 1e-05, %v3386_v63  ;;  %4663 = vmatmul.mubr.f32.vlgmr.msra.gmra.mrb[96].mxu0 %v3542_v42 }
 0x835   : > { %v5221_v16 = vpop.eup %5220  ;;  %v3476_v3 = vmul.f32 %v5219_v54, %v7121_v0  ;;  %v3417_v56 = vadd.f32 1e-05, %v3385_v51  ;;  %v3340_v6 = vpop.xlane.xlu1 %3339 }
 0x836   : > { %5230 = vrsqrt.f32 %v3418_v20  ;;  %v3388_v36 = vmul.f32 0.03125, %v3340_v6  ;;  %v3338_v40 = vpop.xlane.xlu0 %3337  ;;  %v3475_v14 = vmul.f32 %v5221_v16, %v7125_v31 }
 0x837   : > { %5232 = vrsqrt.f32 %v3417_v56  ;;  %v3387_v22 = vmul.f32 0.03125, %v3338_v40  ;;  %v3512_v41 = vmul.f32 %v7362_v44, %v3476_v3 }
 0x838   : > { %v5223_v46 = vpop.eup %5222  ;;  %v3420_v2 = vadd.f32 1e-05, %v3388_v36  ;;  %v3511_v34 = vmul.f32 %v7362_v44, %v3475_v14 }
 0x839   : > { %v5225_v4 = vpop.eup %5224  ;;  %v3419_v8 = vadd.f32 1e-05, %v3387_v22  ;;  %v3344_v61 = vpop.xlane.xlu1 %3343  ;;  %v3478_v0 = vmul.f32 %v5223_v46, %v7135_v33  ;;  %v3548_v58 = vadd.f32 %v7366_v26, %v3512_v41 }
 0x83a   : > { %5234 = vrsqrt.f32 %v3420_v2  ;;  %v3390_v1 = vmul.f32 0.03125, %v3344_v61  ;;  %v3342_v45 = vpop.xlane.xlu0 %3341  ;;  %v3547_v19 = vadd.f32 %v7366_v26, %v3511_v34  ;;  %v3477_v31 = vmul.f32 %v5225_v4, %v7139_v60 }
 0x83b   : > { %5236 = vrsqrt.f32 %v3419_v8  ;;  %v3389_v48 = vmul.f32 0.03125, %v3342_v45  ;;  %v3514_v18 = vmul.f32 %v7362_v44, %v3478_v0 }
 0x83c   : > { %v5227_v30 = vpop.eup %5226  ;;  %v3422_v17 = vadd.f32 1e-05, %v3390_v1  ;;  %4671 = vmatprep.mubr.f32.mxu1 %v3547_v19  ;;  %v3513_v49 = vmul.f32 %v7362_v44, %v3477_v31 }
 0x83d   : > { %v5229_v28 = vpop.eup %5228  ;;  %v3421_v33 = vadd.f32 1e-05, %v3389_v48  ;;  %v3348_v47 = vpop.xlane.xlu1 %3347  ;;  %4672 = vmatmul.mubr.f32.vlgmr.msra.gmra.mrb[64].mxu1 %v3548_v58  ;;  %v3480_v63 = vmul.f32 %v5227_v30, %v7149_v57  ;;  %v3550_v20 = vadd.f32 %v7366_v26, %v3514_v18 }
 0x83e   : > { %5238 = vrsqrt.f32 %v3422_v17  ;;  %v3392_v38 = vmul.f32 0.03125, %v3348_v47  ;;  %v3346_v60 = vpop.xlane.xlu0 %3345  ;;  %v3549_v42 = vadd.f32 %v7366_v26, %v3513_v49  ;;  %v3479_v51 = vmul.f32 %v5229_v28, %v7153_v9 }
 0x83f   : > { %5240 = vrsqrt.f32 %v3421_v33  ;;  %v3391_v54 = vmul.f32 0.03125, %v3346_v60  ;;  %v3516_v16 = vmul.f32 %v7362_v44, %v3480_v63 }
 0x840   : > { %v5231_v3 = vpop.eup %5230  ;;  %v3424_v56 = vadd.f32 1e-05, %v3392_v38  ;;  %4674 = vmatprep.mubr.f32.mxu1 %v3549_v42  ;;  %v3515_v6 = vmul.f32 %v7362_v44, %v3479_v51 }
 0x841   : > { %v5233_v36 = vpop.eup %5232  ;;  %v3423_v57 = vadd.f32 1e-05, %v3391_v54  ;;  %v3352_v40 = vpop.xlane.xlu1 %3351  ;;  %4675 = vmatmul.mubr.f32.gmra.mrb[66].mxu1 %v3550_v20  ;;  %v3482_v14 = vmul.f32 %v5231_v3, %v7169_v23  ;;  %v3552_v34 = vadd.f32 %v7366_v26, %v3516_v16 }
 0x842   : > { %5242 = vrsqrt.f32 %v3424_v56  ;;  %v3394_v22 = vmul.f32 0.03125, %v3352_v40  ;;  %v3350_v9 = vpop.xlane.xlu0 %3349  ;;  %v3551_v41 = vadd.f32 %v7366_v26, %v3515_v6  ;;  %v3481_v46 = vmul.f32 %v5233_v36, %v7173_v15 }
 0x843   : > { %5244 = vrsqrt.f32 %v3423_v57  ;;  %v3393_v2 = vmul.f32 0.03125, %v3350_v9  ;;  %v3518_v4 = vmul.f32 %v7362_v44, %v3482_v14 }
 0x844   : > { %v5235_v8 = vpop.eup %5234  ;;  %v3426_v61 = vadd.f32 1e-05, %v3394_v22  ;;  %4677 = vmatprep.mubr.f32.mxu1 %v3551_v41  ;;  %v3517_v0 = vmul.f32 %v7362_v44, %v3481_v46 }
 0x845   : > { %v5237_v1 = vpop.eup %5236  ;;  %v3425_v23 = vadd.f32 1e-05, %v3393_v2  ;;  %v3356_v45 = vpop.xlane.xlu1 %3355  ;;  %4678 = vmatmul.mubr.f32.gmra.mrb[68].mxu1 %v3552_v34  ;;  %v3484_v19 = vmul.f32 %v5235_v8, %v7189_v62  ;;  %v3554_v30 = vadd.f32 %v7366_v26, %v3518_v4 }
 0x846   : > { %5246 = vrsqrt.f32 %v3426_v61  ;;  %v3396_v31 = vmul.f32 0.03125, %v3356_v45  ;;  %v3354_v15 = vpop.xlane.xlu0 %3353  ;;  %v3553_v48 = vadd.f32 %v7366_v26, %v3517_v0  ;;  %v3483_v58 = vmul.f32 %v5237_v1, %v7193_v55 }
 0x847   : > { %5248 = vrsqrt.f32 %v3425_v23  ;;  %v3395_v18 = vmul.f32 0.03125, %v3354_v15  ;;  %v3520_v17 = vmul.f32 %v7362_v44, %v3484_v19 }
 0x848   : > { %v5239_v49 = vpop.eup %5238  ;;  %v3428_v28 = vadd.f32 1e-05, %v3396_v31  ;;  %4680 = vmatprep.mubr.f32.mxu1 %v3553_v48  ;;  %v3519_v33 = vmul.f32 %v7362_v44, %v3483_v58 }
 0x849   : > { %v5241_v47 = vpop.eup %5240  ;;  %v3427_v62 = vadd.f32 1e-05, %v3395_v18  ;;  %v3360_v63 = vpop.xlane.xlu1 %3359  ;;  %4681 = vmatmul.mubr.f32.gmra.mrb[70].mxu1 %v3554_v30  ;;  %v3486_v38 = vmul.f32 %v5239_v49, %v7209_v35  ;;  %v3556_v20 = vadd.f32 %v7366_v26, %v3520_v17 }
 0x84a   : > { %5250 = vrsqrt.f32 %v3428_v28  ;;  %v3398_v60 = vmul.f32 0.03125, %v3360_v63  ;;  %v3358_v55 = vpop.xlane.xlu0 %3357  ;;  %v3555_v42 = vadd.f32 %v7366_v26, %v3519_v33  ;;  %v3485_v51 = vmul.f32 %v5241_v47, %v7213_v29 }
 0x84b   : > { %5252 = vrsqrt.f32 %v3427_v62  ;;  %v3397_v54 = vmul.f32 0.03125, %v3358_v55  ;;  %v3522_v16 = vmul.f32 %v7362_v44, %v3486_v38 }
 0x84c   : > { %v5243_v3 = vpop.eup %5242  ;;  %v3430_v56 = vadd.f32 1e-05, %v3398_v60  ;;  %4683 = vmatprep.mubr.f32.mxu1 %v3555_v42  ;;  %v3521_v6 = vmul.f32 %v7362_v44, %v3485_v51 }
 0x84d   : > { %v5245_v36 = vpop.eup %5244  ;;  %v3429_v35 = vadd.f32 1e-05, %v3397_v54  ;;  %v3364_v57 = vpop.xlane.xlu1 %3363  ;;  %4684 = vmatmul.mubr.f32.gmra.mrb[72].mxu1 %v3556_v20  ;;  %v3488_v40 = vmul.f32 %v5243_v3, %v7229_v39  ;;  %v3558_v46 = vadd.f32 %v7366_v26, %v3522_v16 }
 0x84e   : > { %5254 = vrsqrt.f32 %v3430_v56  ;;  %v3400_v14 = vmul.f32 0.03125, %v3364_v57  ;;  %v3314_v29 = vpop.xlane.xlu0 %3313  ;;  %v3557_v22 = vadd.f32 %v7366_v26, %v3521_v6  ;;  %v3487_v9 = vmul.f32 %v5245_v36, %v7233_v37 }
 0x84f   : > { %5256 = vrsqrt.f32 %v3429_v35  ;;  %v3375_v41 = vmul.f32 0.03125, %v3314_v29  ;;  %v3524_v2 = vmul.f32 %v7362_v44, %v3488_v40 }
 0x850   : > { %v5247_v34 = vpop.eup %5246  ;;  %v3432_v4 = vadd.f32 1e-05, %v3400_v14  ;;  %4686 = vmatprep.mubr.f32.mxu1 %v3557_v22  ;;  %v3523_v8 = vmul.f32 %v7362_v44, %v3487_v9 }
 0x851   : > { %v5249_v61 = vpop.eup %5248  ;;  %v3407_v39 = vadd.f32 1e-05, %v3375_v41  ;;  %v3362_v0 = vpop.xlane.xlu1 %3361  ;;  %4687 = vmatmul.mubr.f32.gmra.mrb[74].mxu1 %v3558_v46  ;;  %v3490_v1 = vmul.f32 %v5247_v34, %v7249_v43  ;;  %v3560_v15 = vadd.f32 %v7366_v26, %v3524_v2 }
 0x852   : > { %5258 = vrsqrt.f32 %v3432_v4  ;;  %v3399_v23 = vmul.f32 0.03125, %v3362_v0  ;;  %v3316_v37 = vpop.xlane.xlu0 %3315  ;;  %v3559_v45 = vadd.f32 %v7366_v26, %v3523_v8  ;;  %v3489_v19 = vmul.f32 %v5249_v61, %v7253_v59 }
 0x853   : > { %5260 = vrsqrt.f32 %v3407_v39  ;;  %v3376_v31 = vmul.f32 0.03125, %v3316_v37  ;;  %v3526_v48 = vmul.f32 %v7362_v44, %v3490_v1 }
 0x854   : > { %v5251_v58 = vpop.eup %5250  ;;  %v3431_v18 = vadd.f32 1e-05, %v3399_v23  ;;  %4689 = vmatprep.mubr.f32.mxu1 %v3559_v45  ;;  %v3525_v30 = vmul.f32 %v7362_v44, %v3489_v19 }
 0x855   : > { %v5253_v17 = vpop.eup %5252  ;;  %v3408_v43 = vadd.f32 1e-05, %v3376_v31  ;;  %v3368_v49 = vpop.xlane.xlu1 %3367  ;;  %4690 = vmatmul.mubr.f32.gmra.mrb[76].mxu1 %v3560_v15  ;;  %v3492_v28 = vmul.f32 %v5251_v58, %v7263_v11  ;;  %v3562_v38 = vadd.f32 %v7366_v26, %v3526_v48 }
 0x856   : > { %5262 = vrsqrt.f32 %v3431_v18  ;;  %v3402_v33 = vmul.f32 0.03125, %v3368_v49  ;;  %v3318_v59 = vpop.xlane.xlu0 %3317  ;;  %v3561_v47 = vadd.f32 %v7366_v26, %v3525_v30  ;;  %v3491_v62 = vmul.f32 %v5253_v17, %v7267_v24 }
 0x857   : > { %5264 = vrsqrt.f32 %v3408_v43  ;;  %v3377_v63 = vmul.f32 0.03125, %v3318_v59  ;;  %v3528_v60 = vmul.f32 %v7362_v44, %v3492_v28 }
 0x858   : > { %v5255_v55 = vpop.eup %5254  ;;  %v3434_v42 = vadd.f32 1e-05, %v3402_v33  ;;  %4692 = vmatprep.mubr.f32.mxu1 %v3561_v47  ;;  %v3527_v51 = vmul.f32 %v7362_v44, %v3491_v62 }
 0x859   : > { %v5257_v54 = vpop.eup %5256  ;;  %v3409_v11 = vadd.f32 1e-05, %v3377_v63  ;;  %v3366_v20 = vpop.xlane.xlu1 %3365  ;;  %4693 = vmatmul.mubr.f32.gmra.mrb[78].mxu1 %v3562_v38  ;;  %v3494_v16 = vmul.f32 %v5255_v55, %v7277_v5  ;;  %v3564_v35 = vadd.f32 %v7366_v26, %v3528_v60 }
 0x85a   : > { %5266 = vrsqrt.f32 %v3434_v42  ;;  %v3401_v3 = vmul.f32 0.03125, %v3366_v20  ;;  %v3320_v24 = vpop.xlane.xlu0 %3319  ;;  %v3563_v56 = vadd.f32 %v7366_v26, %v3527_v51  ;;  %v3493_v6 = vmul.f32 %v5257_v54, %v7281_v53 }
 0x85b   : > { %5268 = vrsqrt.f32 %v3409_v11  ;;  %v3378_v36 = vmul.f32 0.03125, %v3320_v24  ;;  %v3530_v57 = vmul.f32 %v7362_v44, %v3494_v16 }
 0x85c   : > { %v5259_v40 = vpop.eup %5258  ;;  %v3433_v14 = vadd.f32 1e-05, %v3401_v3  ;;  %4695 = vmatprep.mubr.f32.mxu1 %v3563_v56  ;;  %v3529_v29 = vmul.f32 %v7362_v44, %v3493_v6 }
 0x85d   : > { %v5261_v22 = vpop.eup %5260  ;;  %v3410_v5 = vadd.f32 1e-05, %v3378_v36  ;;  %v3370_v9 = vpop.xlane.xlu1 %3369  ;;  %4696 = vmatmul.mubr.f32.gmra.mrb[80].mxu1 %v3564_v35  ;;  %v3496_v41 = vmul.f32 %v5259_v40, %v7291_v12  ;;  %v3566_v34 = vadd.f32 %v7366_v26, %v3530_v57 }
 0x85e   : > { %5270 = vrsqrt.f32 %v3433_v14  ;;  %v3403_v46 = vmul.f32 0.03125, %v3370_v9  ;;  %v3565_v53 = vadd.f32 %v7366_v26, %v3529_v29  ;;  %v3471_v2 = vmul.f32 %v5261_v22, %v7295_v21 }
 0x85f   : > { %5272 = vrsqrt.f32 %v3410_v5  ;;  %v3532_v12 = vmul.f32 %v7362_v44, %v3496_v41 }
 0x860   : > { %v5263_v4 = vpop.eup %5262  ;;  %v3435_v8 = vadd.f32 1e-05, %v3403_v46  ;;  %4698 = vmatprep.mubr.f32.mxu1 %v3565_v53  ;;  %v3507_v61 = vmul.f32 %v7362_v44, %v3471_v2 }
 0x861   : > { %v5265_v39 = vpop.eup %5264  ;;  %v3372_v0 = vpop.xlane.xlu1 %3371  ;;  %4699 = vmatmul.mubr.f32.gmra.mrb[82].mxu1 %v3566_v34  ;;  %v3495_v1 = vmul.f32 %v5263_v4, %v7305_v7  ;;  %v3568_v7 = vadd.f32 %v7366_v26, %v3532_v12 }
 0x862   : > { %5274 = vrsqrt.f32 %v3435_v8  ;;  %v3404_v23 = vmul.f32 0.03125, %v3372_v0  ;;  %v3543_v37 = vadd.f32 %v7366_v26, %v3507_v61  ;;  %v3472_v21 = vmul.f32 %v5265_v39, %v7309_v52 }
 0x863   : > { %v3531_v45 = vmul.f32 %v7362_v44, %v3495_v1 }
 0x864   : > { %v5267_v19 = vpop.eup %5266  ;;  %v3436_v31 = vadd.f32 1e-05, %v3404_v23  ;;  %4665 = vmatprep.mubr.f32.mxu0 %v3543_v37  ;;  %v3508_v15 = vmul.f32 %v7362_v44, %v3472_v21 }
 0x865   : > { %v5269_v48 = vpop.eup %5268  ;;  %v3567_v58 = vadd.f32 %v7366_v26, %v3531_v45  ;;  %v3498_v17 = vmul.f32 %v5267_v19, %v7319_v50 }
 0x866   : > { %5276 = vrsqrt.f32 %v3436_v31  ;;  %v3544_v18 = vadd.f32 %v7366_v26, %v3508_v15  ;;  %v3473_v30 = vmul.f32 %v5269_v48, %v7323_v10 }
 0x867   : > { %4701 = vmatprep.mubr.f32.mxu1 %v3567_v58  ;;  %v3534_v47 = vmul.f32 %v7362_v44, %v3498_v17 }
 0x868   : > { %v5271_v52 = vpop.eup %5270  ;;  %4666 = vmatmul.mubr.f32.gmra.mrb[98].mxu0 %v3544_v18  ;;  %4702 = vmatmul.mubr.f32.gmra.mrb[84].mxu1 %v3568_v7  ;;  %v3509_v43 = vmul.f32 %v7362_v44, %v3473_v30 }
 0x869   : > { %v5273_v49 = vpop.eup %5272  ;;  %v3497_v28 = vmul.f32 %v5271_v52, %v7333_v13  ;;  %v3570_v13 = vadd.f32 %v7366_v26, %v3534_v47 }
 0x86a   : > { %v3545_v33 = vadd.f32 %v7366_v26, %v3509_v43  ;;  %v3474_v59 = vmul.f32 %v5273_v49, %v7337_v27 }
 0x86b   : > { %v3533_v62 = vmul.f32 %v7362_v44, %v3497_v28 }
 0x86c   : > { %v5275_v10 = vpop.eup %5274  ;;  %4668 = vmatprep.mubr.f32.mxu0 %v3545_v33  ;;  %v3510_v50 = vmul.f32 %v7362_v44, %v3474_v59 }
 0x86d   : > { %v3569_v63 = vadd.f32 %v7366_v26, %v3533_v62  ;;  %v3499_v38 = vmul.f32 %v5275_v10, %v7346_v32  ;;  %v7462_v32 = vld [vmem:[#allocation2] ss:$0 sm:$0xff] }
 0x86e   : > { %v3546_v60 = vadd.f32 %v7366_v26, %v3510_v50 }
 0x86f   : > { %4704 = vmatprep.mubr.f32.mxu1 %v3569_v63  ;;  %v3535_v27 = vmul.f32 %v7362_v44, %v3499_v38 }
 0x870   : > { %v5277_v55 = vpop.eup %5276  ;;  %4669 = vmatmul.mubr.f32.gmra.mrb[100].mxu0 %v3546_v60  ;;  %4705 = vmatmul.mubr.f32.gmra.mrb[86].mxu1 %v3570_v13 }
 0x871   : > { %v3571_v42 = vadd.f32 %v7366_v26, %v3535_v27  ;;  %v3500_v51 = vmul.f32 %v5277_v55, %v7353_v25 }
 0x873   : > { %4707 = vmatprep.mubr.f32.mxu1 %v3571_v42  ;;  %v3536_v54 = vmul.f32 %v7362_v44, %v3500_v51 }
 0x875   : > { %v3572_v11 = vadd.f32 %v7366_v26, %v3536_v54 }
 0x877   : > { %4708 = vmatmul.mubr.f32.gmra.mrb[88].mxu1 %v3572_v11 }
 0x907   : > { %v4664_v20 = vpop.f32.mrb[96].mxu0 }
 0x908   : > { %v3668_v25 = vadd.f32 %v4664_v20, %v7462_v32  ;;  %v3662_v44 = vpop.f32.mrb[97].mxu0 }
 0x909   : > { %v3663_v26 = vadd.f32 %v7462_v32, %v3662_v44 }
 0x90a   : > { %3823 = vst.msk [vmem:[%s7469_s30 + $0x8] sm:$0xff] %vm3821_vm2, %v3668_v25 }
 0x90b   : > { %3822 = vst.msk [vmem:[%s7469_s30] sm:$0xff] %vm3821_vm2, %v3663_v26 }
 0x910   : > { %v4673_v16 = vpop.f32.mrb[64].mxu1 }
 0x911   : > { %v3698_v3 = vadd.f32 %v4673_v16, %v7462_v32  ;;  %v3692_v24 = vpop.f32.mrb[65].mxu1 }
 0x912   : > { %v3693_v56 = vadd.f32 %v7462_v32, %v3692_v24 }
 0x913   : > { %3829 = vst.msk [vmem:[%s7469_s30 + $0x38] sm:$0xff] %vm3821_vm2, %v3698_v3 }
 0x914   : > { %3828 = vst.msk [vmem:[%s7469_s30 + $0x30] sm:$0xff] %vm3821_vm2, %v3693_v56  ;;  %v4676_v6 = vpop.f32.mrb[66].mxu1 }
 0x915   : > { %v3708_v36 = vadd.f32 %v4676_v6, %v7462_v32  ;;  %v3702_v35 = vpop.f32.mrb[67].mxu1 }
 0x916   : > { %v3703_v57 = vadd.f32 %v7462_v32, %v3702_v35 }
 0x917   : > { %3831 = vst.msk [vmem:[%s7469_s30 + $0x48] sm:$0xff] %vm3821_vm2, %v3708_v36 }
 0x918   : > { %3830 = vst.msk [vmem:[%s7469_s30 + $0x40] sm:$0xff] %vm3821_vm2, %v3703_v57  ;;  %v4679_v40 = vpop.f32.mrb[68].mxu1 }
 0x919   : > { %v3718_v14 = vadd.f32 %v4679_v40, %v7462_v32  ;;  %v3712_v29 = vpop.f32.mrb[69].mxu1 }
 0x91a   : > { %v3713_v22 = vadd.f32 %v7462_v32, %v3712_v29 }
 0x91b   : > { %3833 = vst.msk [vmem:[%s7469_s30 + $0x58] sm:$0xff] %vm3821_vm2, %v3718_v14 }
 0x91c   : > { %3832 = vst.msk [vmem:[%s7469_s30 + $0x50] sm:$0xff] %vm3821_vm2, %v3713_v22  ;;  %v4682_v5 = vpop.f32.mrb[70].mxu1 }
 0x91d   : > { %v3728_v9 = vadd.f32 %v4682_v5, %v7462_v32  ;;  %v3722_v41 = vpop.f32.mrb[71].mxu1 }
 0x91e   : > { %v3723_v46 = vadd.f32 %v7462_v32, %v3722_v41 }
 0x91f   : > { %3835 = vst.msk [vmem:[%s7469_s30 + $0x68] sm:$0xff] %vm3821_vm2, %v3728_v9 }
 0x920   : > { %3834 = vst.msk [vmem:[%s7469_s30 + $0x60] sm:$0xff] %vm3821_vm2, %v3723_v46  ;;  %v4685_v53 = vpop.f32.mrb[72].mxu1 }
 0x921   : > { %v3738_v2 = vadd.f32 %v4685_v53, %v7462_v32  ;;  %v3732_v34 = vpop.f32.mrb[73].mxu1 }
 0x922   : > { %v3733_v4 = vadd.f32 %v7462_v32, %v3732_v34 }
 0x923   : > { %3837 = vst.msk [vmem:[%s7469_s30 + $0x78] sm:$0xff] %vm3821_vm2, %v3738_v2 }
 0x924   : > { %3836 = vst.msk [vmem:[%s7469_s30 + $0x70] sm:$0xff] %vm3821_vm2, %v3733_v4  ;;  %v4688_v8 = vpop.f32.mrb[74].mxu1 }
 0x925   : > { %v3748_v61 = vadd.f32 %v4688_v8, %v7462_v32  ;;  %v3742_v39 = vpop.f32.mrb[75].mxu1 }
 0x926   : > { %v3743_v0 = vadd.f32 %v7462_v32, %v3742_v39 }
 0x927   : > { %3839 = vst.msk [vmem:[%s7469_s30 + $0x88] sm:$0xff] %vm3821_vm2, %v3748_v61 }
 0x928   : > { %3838 = vst.msk [vmem:[%s7469_s30 + $0x80] sm:$0xff] %vm3821_vm2, %v3743_v0  ;;  %v4691_v1 = vpop.f32.mrb[76].mxu1 }
 0x929   : > { %v3758_v12 = vadd.f32 %v4691_v1, %v7462_v32  ;;  %v3752_v23 = vpop.f32.mrb[77].mxu1 }
 0x92a   : > { %v3753_v37 = vadd.f32 %v7462_v32, %v3752_v23 }
 0x92b   : > { %3841 = vst.msk [vmem:[%s7469_s30 + $0x98] sm:$0xff] %vm3821_vm2, %v3758_v12 }
 0x92c   : > { %3840 = vst.msk [vmem:[%s7469_s30 + $0x90] sm:$0xff] %vm3821_vm2, %v3753_v37  ;;  %v4694_v21 = vpop.f32.mrb[78].mxu1 }
 0x92d   : > { %v3768_v45 = vadd.f32 %v4694_v21, %v7462_v32  ;;  %v3762_v19 = vpop.f32.mrb[79].mxu1 }
 0x92e   : > { %v3763_v31 = vadd.f32 %v7462_v32, %v3762_v19 }
 0x92f   : > { %3843 = vst.msk [vmem:[%s7469_s30 + $0xa8] sm:$0xff] %vm3821_vm2, %v3768_v45 }
 0x930   : > { %3842 = vst.msk [vmem:[%s7469_s30 + $0xa0] sm:$0xff] %vm3821_vm2, %v3763_v31  ;;  %v4697_v15 = vpop.f32.mrb[80].mxu1 }
 0x931   : > { %v3778_v48 = vadd.f32 %v4697_v15, %v7462_v32  ;;  %v3772_v58 = vpop.f32.mrb[81].mxu1 }
 0x932   : > { %v3773_v7 = vadd.f32 %v7462_v32, %v3772_v58 }
 0x933   : > { %3845 = vst.msk [vmem:[%s7469_s30 + $0xb8] sm:$0xff] %vm3821_vm2, %v3778_v48 }
 0x934   : > { %3844 = vst.msk [vmem:[%s7469_s30 + $0xb0] sm:$0xff] %vm3821_vm2, %v3773_v7  ;;  %v4700_v18 = vpop.f32.mrb[82].mxu1 }
 0x935   : > { %v3788_v30 = vadd.f32 %v4700_v18, %v7462_v32  ;;  %v3782_v17 = vpop.f32.mrb[83].mxu1 }
 0x936   : > { %v3783_v52 = vadd.f32 %v7462_v32, %v3782_v17 }
 0x937   : > { %3847 = vst.msk [vmem:[%s7469_s30 + $0xc8] sm:$0xff] %vm3821_vm2, %v3788_v30 }
 0x938   : > { %3846 = vst.msk [vmem:[%s7469_s30 + $0xc0] sm:$0xff] %vm3821_vm2, %v3783_v52 }
 0x93b   : > { %v4667_v43 = vpop.f32.mrb[98].mxu0  ;;  %v4703_v49 = vpop.f32.mrb[84].mxu1 }
 0x93c   : > { %v3678_v28 = vadd.f32 %v4667_v43, %v7462_v32  ;;  %v3798_v33 = vadd.f32 %v4703_v49, %v7462_v32  ;;  %v3672_v59 = vpop.f32.mrb[99].mxu0  ;;  %v3792_v47 = vpop.f32.mrb[85].mxu1 }
 0x93d   : > { %v3673_v62 = vadd.f32 %v7462_v32, %v3672_v59  ;;  %v3793_v10 = vadd.f32 %v7462_v32, %v3792_v47 }
 0x93e   : > { %3825 = vst.msk [vmem:[%s7469_s30 + $0x18] sm:$0xff] %vm3821_vm2, %v3678_v28  ;;  %3849 = vst.msk [vmem:[%s7469_s30 + $0xd8] sm:$0xff] %vm3821_vm2, %v3798_v33 }
 0x93f   : > { %3824 = vst.msk [vmem:[%s7469_s30 + $0x10] sm:$0xff] %vm3821_vm2, %v3673_v62  ;;  %3848 = vst.msk [vmem:[%s7469_s30 + $0xd0] sm:$0xff] %vm3821_vm2, %v3793_v10 }
 0x943   : > { %v4670_v50 = vpop.f32.mrb[100].mxu0  ;;  %v4706_v63 = vpop.f32.mrb[86].mxu1 }
 0x944   : > { %v3688_v38 = vadd.f32 %v4670_v50, %v7462_v32  ;;  %v3808_v60 = vadd.f32 %v4706_v63, %v7462_v32  ;;  %v3682_v13 = vpop.f32.mrb[101].mxu0  ;;  %v3802_v27 = vpop.f32.mrb[87].mxu1 }
 0x945   : > { %v3683_v55 = vadd.f32 %v7462_v32, %v3682_v13  ;;  %v3803_v42 = vadd.f32 %v7462_v32, %v3802_v27 }
 0x946   : > { %3827 = vst.msk [vmem:[%s7469_s30 + $0x28] sm:$0xff] %vm3821_vm2, %v3688_v38  ;;  %3851 = vst.msk [vmem:[%s7469_s30 + $0xe8] sm:$0xff] %vm3821_vm2, %v3808_v60 }
 0x947   : > { %3826 = vst.msk [vmem:[%s7469_s30 + $0x20] sm:$0xff] %vm3821_vm2, %v3683_v55  ;;  %3850 = vst.msk [vmem:[%s7469_s30 + $0xe0] sm:$0xff] %vm3821_vm2, %v3803_v42 }
 0x94a   : > { %v4709_v51 = vpop.f32.mrb[88].mxu1 }
 0x94b   : > { %v3818_v54 = vadd.f32 %v4709_v51, %v7462_v32  ;;  %v3812_v11 = vpop.f32.mrb[89].mxu1 }
 0x94c   : > { %v3813_v20 = vadd.f32 %v7462_v32, %v3812_v11 }
 0x94d   : > { %3853 = vst.msk [vmem:[%s7469_s30 + $0xf8] sm:$0xff] %vm3821_vm2, %v3818_v54 }
 0x94e   : > { %3852 = vst.msk [vmem:[%s7469_s30 + $0xf0] sm:$0xff] %vm3821_vm2, %v3813_v20 }
 0x94f PF: > { %s20_s29 = sadd.s32 1, %s5287_s29  }
 0x950   : > { %p17_p4 = scmp.ge.s32.totalorder %s20_s29, 4  }
 0x952   :  { %19 = sbr.rel (!%p17_p4) target bundleno = 3 (0x3), region = 85 }

</bundles_post_ra>
